<compile_context>
chip_gen: v7x
topology: tpu7x:2x2x1
jax: 0.10.0
libtpu: 0.0.40
codegen_flags: <defaults>
</compile_context>

<pallas_src>
import jax
import jax.numpy as jnp
from jax.experimental import pallas as pl
from jax.experimental.pallas import tpu as pltpu

_HALO = 8   # left/right halo rows of the padded activation buffers (sublane-aligned interior)


def _round_up(x, m):
    return (x + m - 1) // m * m


# ------------------------------ fused kernel --------------------------------

def _fused_dropout_cnn_kernel(
    patch1_ref,
    w1_ref, b1_ref, w2_ref, b2_ref, w3_ref, b3_ref, w4_ref, b4_ref,
    fcw_ref, fcb_ref, outw_ref, outb_ref,
    o_ref,
    xp2_ref, xp3_ref, xp4_ref, patch_ref,
):
    B = o_ref.shape[0]
    K = w1_ref.shape[0]                       # conv kernel size (15)

    # ---- one-time init: zero the im2col pad columns + the activation halos only ----
    patch_ref[...] = jnp.zeros_like(patch_ref)
    for xp in (xp2_ref, xp3_ref, xp4_ref):
        Lpad, C = xp.shape[1], xp.shape[2]
        z = jnp.zeros((B, _HALO, C), jnp.float32)
        xp[:, 0:_HALO, :] = z
        xp[:, Lpad - _HALO:Lpad, :] = z

    def conv_relu_pool(patch, w_ref, b_ref):
        """patch rows = [even-position block ; odd-position block] -> pooled (M//2, Cout) f32."""
        M = patch.shape[0]
        y = jnp.dot(patch, w_ref[...], preferred_element_type=jnp.float32)   # one MXU dot/layer
        y = jnp.maximum(y + b_ref[...], 0.0)                                 # bias + ReLU (f32)
        return jnp.maximum(y[:M // 2], y[M // 2:])                           # MaxPool1d(2) in regs

    def build_patches(xp_ref):
        """im2col staged through the shared VMEM patch scratch.

        Even/odd output positions go to separate row blocks (so pooling is a static-half
        max after the matmul). Each shifted window is loaded ONCE (stride-2 sublane read,
        shared between even-block window k and odd-block window k-1) and stored at static
        lane offset k*Cin, so the matmul reads one lane-aligned (M, KCpad) bf16 slab.
        """
        Cin = xp_ref.shape[2]
        Lh = (xp_ref.shape[1] - 2 * _HALO) // 2      # pooled (output) length of this layer
        M2 = B * Lh
        for s in range(1, K + 2):                    # padded window start offsets 1 .. K+1
            win = xp_ref[:, pl.ds(s, Lh, stride=2), :]
            win = win.reshape(M2, Cin).astype(jnp.bfloat16)
            k_even = s - 1                           # window index for even output positions
            if k_even < K:
                patch_ref[0:M2, k_even * Cin:(k_even + 1) * Cin] = win
            k_odd = s - 2                            # window index for odd output positions
            if k_odd >= 0:
                patch_ref[M2:2 * M2, k_odd * Cin:(k_odd + 1) * Cin] = win
        return 2 * M2

    def store_act(xp_ref, pooled):
        """Write pooled activation into the (sublane-aligned) interior of a halo buffer."""
        Cout = pooled.shape[1]
        Lh = pooled.shape[0] // B
        xp_ref[:, _HALO:_HALO + Lh, :] = pooled.reshape(B, Lh, Cout)

    # ---------------- conv1 (Cin = 1; im2col prepared host-side) ----------------
    p = conv_relu_pool(patch1_ref[...], w1_ref, b1_ref)
    store_act(xp2_ref, p)

    # ---------------- conv2 .. conv4 (dropout = eval-mode identity) ----------------
    for xp_ref, w_ref, b_ref, xp_next in (
        (xp2_ref, w2_ref, b2_ref, xp3_ref),
        (xp3_ref, w3_ref, b3_ref, xp4_ref),
        (xp4_ref, w4_ref, b4_ref, None),
    ):
        M = build_patches(xp_ref)
        p = conv_relu_pool(patch_ref[0:M, 0:w_ref.shape[0]], w_ref, b_ref)
        if xp_next is not None:
            store_act(xp_next, p)
    # TODO(synk): nn.Dropout is stochastic; implemented here as eval-mode identity.

    # ---------------- FC (+ReLU): ONE MXU dot over K = L4*C4 ----------------
    C4 = w4_ref.shape[1]
    L4 = p.shape[0] // B
    p3d = p.reshape(B, L4, C4)
    flat = jnp.concatenate([p3d[:, j, :] for j in range(L4)], axis=-1)    # (B, L4*C4), l-major
    hfc = jnp.dot(flat.astype(jnp.bfloat16), fcw_ref[...],
                  preferred_element_type=jnp.float32)
    hfc = jnp.maximum(hfc + fcb_ref[...], 0.0)

    # ---------------- output head (out_features == 1): VPU mul + lane reduce ----------------
    o_ref[...] = jnp.sum(hfc * outw_ref[...], axis=-1, keepdims=True) + outb_ref[...]


# --------------------------------- wrapper ----------------------------------

def dropout_cnn_forward(x_ncl, params):
    """Forward pass of DropoutCNN (eval mode). x_ncl: (B, 1, spec_len) -> (B, 1)."""
    B, cin0, L0 = x_ncl.shape
    assert cin0 == 1
    K = params["conv1_w"].shape[2]
    pad = K // 2
    assert L0 % 16 == 0, "kernel assumes an even length at every MaxPool1d(2) stage"

    # ---- conv1 im2col host-side (Cin = 1): rows = [even-position block ; odd block] ----
    xpad = jnp.pad(x_ncl.reshape(B, L0).astype(jnp.float32), ((0, 0), (pad, pad + 1)))
    Lh0 = L0 // 2

    def _parity_block(parity):
        cols = [xpad[:, k + parity:k + parity + L0:2, None] for k in range(K)]
        return jnp.concatenate(cols, axis=-1).reshape(B * Lh0, K)

    patch1 = jnp.concatenate([_parity_block(0), _parity_block(1)], axis=0)
    patch1 = patch1.astype(jnp.bfloat16)                                   # (B*L0, K)

    # ---- conv weights: (Cout, Cin, K) -> (K*Cin, Cout), rows (k, cin); layers 2-4 are
    #      zero-padded to the next multiple of 128 rows so the patch matmul is lane-aligned.
    conv_args, chans, kcpads = [], [], []
    for i in range(1, 5):
        w = params[f"conv{i}_w"]
        c_out, c_in, k = w.shape
        chans.append((c_in, c_out))
        w_mat = jnp.transpose(w, (2, 1, 0)).reshape(k * c_in, c_out)
        if i >= 2:
            kcpad = _round_up(k * c_in, 128)
            kcpads.append(kcpad)
            w_mat = jnp.pad(w_mat, ((0, kcpad - k * c_in), (0, 0)))
        conv_args += [w_mat.astype(jnp.bfloat16),
                      params[f"conv{i}_b"].reshape(1, c_out).astype(jnp.float32)]

    # ---- FC weight rows pre-permuted from torch flatten order (c-major, l-minor) to the
    #      kernel's channels-last (l-major, c-minor) order (one-time, host-side)
    C4 = chans[-1][1]
    fc_w = params["fc_w"]                                   # (F, fc_size)
    F, fc_size = fc_w.shape
    L4 = F // C4
    fcw = fc_w.reshape(C4, L4, fc_size).transpose(1, 0, 2).reshape(F, fc_size)
    fcw = fcw.astype(jnp.bfloat16)
    fcb = params["fc_b"].reshape(1, fc_size).astype(jnp.float32)
    outw = params["out_w"].reshape(1, fc_size).astype(jnp.float32)
    outb = params["out_b"].reshape(1, 1).astype(jnp.float32)

    args = (patch1, *conv_args, fcw, fcb, outw, outb)

    # ---- per-layer lengths and VMEM scratch ----
    Ls = [L0 // (2 ** i) for i in range(5)]                 # L0 .. L4
    scratch = [
        pltpu.VMEM((B, Ls[1] + 2 * _HALO, chans[1][0]), jnp.float32),   # xp2 (conv2 input)
        pltpu.VMEM((B, Ls[2] + 2 * _HALO, chans[2][0]), jnp.float32),   # xp3 (conv3 input)
        pltpu.VMEM((B, Ls[3] + 2 * _HALO, chans[3][0]), jnp.float32),   # xp4 (conv4 input)
        pltpu.VMEM((B * Ls[1], max(kcpads)), jnp.bfloat16),             # shared im2col patch slab
    ]

    vmem = pl.BlockSpec(memory_space=pltpu.MemorySpace.VMEM)
    return pl.pallas_call(
        _fused_dropout_cnn_kernel,
        out_shape=jax.ShapeDtypeStruct((B, 1), jnp.float32),
        in_specs=[vmem] * len(args),
        out_specs=vmem,
        scratch_shapes=scratch,
    )(*args)


# ------------------------------- reference ----------------------------------

def reference_forward(x_ncl, params):
    """Pure-JAX reference with the same bf16-operand / f32-accumulate matmul precision."""
    bf = jnp.bfloat16
    x = x_ncl.astype(jnp.float32)
    for i in range(1, 5):
        w = params[f"conv{i}_w"]
        b = params[f"conv{i}_b"]
        x = jax.lax.conv_general_dilated(
            x.astype(bf), w.astype(bf), window_strides=(1,),
            padding=[(w.shape[2] // 2, w.shape[2] // 2)],
            dimension_numbers=("NCH", "OIH", "NCH"),
            preferred_element_type=jnp.float32)
        x = jnp.maximum(x + b[None, :, None], 0.0)
        Bc, Cc, Lc = x.shape
        x = jnp.max(x.reshape(Bc, Cc, Lc // 2, 2), axis=-1)
    xf = x.reshape(x.shape[0], -1)                          # torch flatten(start_dim=1)
    h = jnp.dot(xf.astype(bf), params["fc_w"].astype(bf),
                preferred_element_type=jnp.float32) + params["fc_b"]
    h = jnp.maximum(h, 0.0)
    return jnp.sum(h * params["out_w"].T, axis=-1, keepdims=True) + params["out_b"]


# ------------------------------- parameters ---------------------------------

def init_params(key, spec_len=128, kernel=15, filters=8, fc_size=32):
    ks = jax.random.split(key, 12)
    scale = 0.05

    def _n(k, shape):
        return scale * jax.random.normal(k, shape, dtype=jnp.float32)

    L = spec_len
    params = {}
    chans = [(1, filters), (filters, 2 * filters), (2 * filters, 4 * filters),
             (4 * filters, 4 * filters)]
    for i, (cin, cout) in enumerate(chans, start=1):
        params[f"conv{i}_w"] = _n(ks[2 * (i - 1)], (cout, cin, kernel))
        params[f"conv{i}_b"] = _n(ks[2 * (i - 1) + 1], (cout,))
        L = L // 2  # same-padded conv keeps length, maxpool(2) halves it
    F = 4 * filters * L
    params["fc_w"] = _n(ks[8], (F, fc_size))   # = torch Linear weight.T (rows in flatten order)
    params["fc_b"] = _n(ks[9], (fc_size,))
    params["out_w"] = _n(ks[10], (fc_size, 1))
    params["out_b"] = _n(ks[11], (1,))
    return params


# ---------------------------------- main -------------------------------------

if __name__ == "__main__":
    spec_len = 128
    batch = 2

    key = jax.random.PRNGKey(0)
    k_param, k_x = jax.random.split(key)
    params = init_params(k_param, spec_len=spec_len, kernel=15, filters=8, fc_size=32)

    x = jax.random.normal(k_x, (batch, 1, spec_len), dtype=jnp.float32)

    fwd = jax.jit(lambda xx: dropout_cnn_forward(xx, params))
    y = jax.block_until_ready(fwd(x))

    assert y.shape == (batch, 1), y.shape
    assert bool(jnp.all(jnp.isfinite(y)))

    y_ref = jax.block_until_ready(reference_forward(x, params))
    max_err = float(jnp.max(jnp.abs(y - y_ref)))
    assert max_err < 2e-3, f"kernel/reference mismatch: max |err| = {max_err}"

    print("KERNEL_OK")
</pallas_src>

<mosaic_0001>
module attributes {stable_mosaic.version = 11 : i64} {
  func.func @_fused_dropout_cnn_kernel(%arg0: memref<256x15xbf16, #tpu.memory_space<vmem>>, %arg1: memref<15x8xbf16, #tpu.memory_space<vmem>>, %arg2: memref<1x8xf32, #tpu.memory_space<vmem>>, %arg3: memref<128x16xbf16, #tpu.memory_space<vmem>>, %arg4: memref<1x16xf32, #tpu.memory_space<vmem>>, %arg5: memref<256x32xbf16, #tpu.memory_space<vmem>>, %arg6: memref<1x32xf32, #tpu.memory_space<vmem>>, %arg7: memref<512x32xbf16, #tpu.memory_space<vmem>>, %arg8: memref<1x32xf32, #tpu.memory_space<vmem>>, %arg9: memref<256x32xbf16, #tpu.memory_space<vmem>>, %arg10: memref<1x32xf32, #tpu.memory_space<vmem>>, %arg11: memref<1x32xf32, #tpu.memory_space<vmem>>, %arg12: memref<1x1xf32, #tpu.memory_space<vmem>>, %arg13: memref<2x1xf32, #tpu.memory_space<vmem>>, %arg14: memref<2x80x8xf32, #tpu.memory_space<vmem>>, %arg15: memref<2x48x16xf32, #tpu.memory_space<vmem>>, %arg16: memref<2x32x32xf32, #tpu.memory_space<vmem>>, %arg17: memref<128x512xbf16, #tpu.memory_space<vmem>>) attributes {dimension_semantics = [], scalar_prefetch = 0 : i64, scratch_operands = 4 : i64, tpu.core_type = #tpu.core_type<tc>} {
    %cst = arith.constant 0.000000e+00 : bf16
    %0 = vector.broadcast %cst : bf16 to vector<128x512xbf16>
    %c0 = arith.constant 0 : index
    %c0_0 = arith.constant 0 : index
    %1 = vector.load %arg17[%c0, %c0_0] : memref<128x512xbf16, #tpu.memory_space<vmem>>, vector<128x512xbf16>
    tpu.vector_store %arg17[%c0, %c0_0], %0 {strides = array<i32>} : memref<128x512xbf16, #tpu.memory_space<vmem>>, vector<128x512xbf16>,
    %cst_1 = arith.constant 0.000000e+00 : f32
    %2 = vector.broadcast %cst_1 : f32 to vector<2x8x8xf32>
    %c0_2 = arith.constant 0 : index
    %c0_3 = arith.constant 0 : index
    %c0_4 = arith.constant 0 : index
    %3 = vector.load %arg14[%c0_2, %c0_3, %c0_4] : memref<2x80x8xf32, #tpu.memory_space<vmem>>, vector<2x8x8xf32>
    tpu.vector_store %arg14[%c0_2, %c0_3, %c0_4], %2 {strides = array<i32>} : memref<2x80x8xf32, #tpu.memory_space<vmem>>, vector<2x8x8xf32>,
    %c0_5 = arith.constant 0 : index
    %c72 = arith.constant 72 : index
    %c0_6 = arith.constant 0 : index
    %4 = vector.load %arg14[%c0_5, %c72, %c0_6] : memref<2x80x8xf32, #tpu.memory_space<vmem>>, vector<2x8x8xf32>
    tpu.vector_store %arg14[%c0_5, %c72, %c0_6], %2 {strides = array<i32>} : memref<2x80x8xf32, #tpu.memory_space<vmem>>, vector<2x8x8xf32>,
    %cst_7 = arith.constant 0.000000e+00 : f32
    %5 = vector.broadcast %cst_7 : f32 to vector<2x8x16xf32>
    %c0_8 = arith.constant 0 : index
    %c0_9 = arith.constant 0 : index
    %c0_10 = arith.constant 0 : index
    %6 = vector.load %arg15[%c0_8, %c0_9, %c0_10] : memref<2x48x16xf32, #tpu.memory_space<vmem>>, vector<2x8x16xf32>
    tpu.vector_store %arg15[%c0_8, %c0_9, %c0_10], %5 {strides = array<i32>} : memref<2x48x16xf32, #tpu.memory_space<vmem>>, vector<2x8x16xf32>,
    %c0_11 = arith.constant 0 : index
    %c40 = arith.constant 40 : index
    %c0_12 = arith.constant 0 : index
    %7 = vector.load %arg15[%c0_11, %c40, %c0_12] : memref<2x48x16xf32, #tpu.memory_space<vmem>>, vector<2x8x16xf32>
    tpu.vector_store %arg15[%c0_11, %c40, %c0_12], %5 {strides = array<i32>} : memref<2x48x16xf32, #tpu.memory_space<vmem>>, vector<2x8x16xf32>,
    %cst_13 = arith.constant 0.000000e+00 : f32
    %8 = vector.broadcast %cst_13 : f32 to vector<2x8x32xf32>
    %c0_14 = arith.constant 0 : index
    %c0_15 = arith.constant 0 : index
    %c0_16 = arith.constant 0 : index
    %9 = vector.load %arg16[%c0_14, %c0_15, %c0_16] : memref<2x32x32xf32, #tpu.memory_space<vmem>>, vector<2x8x32xf32>
    tpu.vector_store %arg16[%c0_14, %c0_15, %c0_16], %8 {strides = array<i32>} : memref<2x32x32xf32, #tpu.memory_space<vmem>>, vector<2x8x32xf32>,
    %c0_17 = arith.constant 0 : index
    %c24 = arith.constant 24 : index
    %c0_18 = arith.constant 0 : index
    %10 = vector.load %arg16[%c0_17, %c24, %c0_18] : memref<2x32x32xf32, #tpu.memory_space<vmem>>, vector<2x8x32xf32>
    tpu.vector_store %arg16[%c0_17, %c24, %c0_18], %8 {strides = array<i32>} : memref<2x32x32xf32, #tpu.memory_space<vmem>>, vector<2x8x32xf32>,
    %c0_19 = arith.constant 0 : index
    %c0_20 = arith.constant 0 : index
    %11 = vector.load %arg0[%c0_19, %c0_20] : memref<256x15xbf16, #tpu.memory_space<vmem>>, vector<256x15xbf16>
    %c0_21 = arith.constant 0 : index
    %c0_22 = arith.constant 0 : index
    %12 = vector.load %arg1[%c0_21, %c0_22] : memref<15x8xbf16, #tpu.memory_space<vmem>>, vector<15x8xbf16>
    %cst_23 = arith.constant dense<0.000000e+00> : vector<256x8xf32>
    %13 = tpu.matmul %11, %12, %cst_23 {dimension_numbers = #tpu.dot_dimension_numbers<[1], [0], [0], [1], [0, 0, 1, 1], [], []>} : vector<256x15xbf16>, vector<15x8xbf16>, vector<256x8xf32> -> vector<256x8xf32>
    %c0_24 = arith.constant 0 : index
    %c0_25 = arith.constant 0 : index
    %14 = vector.load %arg2[%c0_24, %c0_25] : memref<1x8xf32, #tpu.memory_space<vmem>>, vector<1x8xf32>
    %15 = vector.broadcast %14 : vector<1x8xf32> to vector<256x8xf32>
    %16 = arith.addf %13, %15 : vector<256x8xf32>
    %cst_26 = arith.constant 0.000000e+00 : f32
    %17 = vector.broadcast %cst_26 : f32 to vector<256x8xf32>
    %18 = arith.maximumf %16, %17 : vector<256x8xf32>
    %19 = vector.extract_strided_slice %18 {offsets = [0, 0], sizes = [128, 8], strides = [1, 1]} : vector<256x8xf32> to vector<128x8xf32>
    %20 = vector.extract_strided_slice %18 {offsets = [128, 0], sizes = [128, 8], strides = [1, 1]} : vector<256x8xf32> to vector<128x8xf32>
    %21 = arith.maximumf %19, %20 : vector<128x8xf32>
    %22 = vector.shape_cast %21 : vector<128x8xf32> to vector<2x64x8xf32>
    %c0_27 = arith.constant 0 : index
    %c8 = arith.constant 8 : index
    %c0_28 = arith.constant 0 : index
    %23 = vector.load %arg14[%c0_27, %c8, %c0_28] : memref<2x80x8xf32, #tpu.memory_space<vmem>>, vector<2x64x8xf32>
    tpu.vector_store %arg14[%c0_27, %c8, %c0_28], %22 {strides = array<i32>} : memref<2x80x8xf32, #tpu.memory_space<vmem>>, vector<2x64x8xf32>,
    %c0_29 = arith.constant 0 : index
    %c1 = arith.constant 1 : index
    %c0_30 = arith.constant 0 : index
    %24 = tpu.strided_load %arg14[%c0_29, %c1, %c0_30] {strides = array<i32: 1, 2, 1>} : memref<2x80x8xf32, #tpu.memory_space<vmem>>, vector<2x32x8xf32>
    %25 = vector.shape_cast %24 : vector<2x32x8xf32> to vector<64x8xf32>
    %26 = arith.truncf %25 : vector<64x8xf32> to vector<64x8xbf16>
    %c0_31 = arith.constant 0 : index
    %c0_32 = arith.constant 0 : index
    %27 = vector.load %arg17[%c0_31, %c0_32] : memref<128x512xbf16, #tpu.memory_space<vmem>>, vector<64x8xbf16>
    tpu.vector_store %arg17[%c0_31, %c0_32], %26 {strides = array<i32>} : memref<128x512xbf16, #tpu.memory_space<vmem>>, vector<64x8xbf16>,
    %c0_33 = arith.constant 0 : index
    %c2 = arith.constant 2 : index
    %c0_34 = arith.constant 0 : index
    %28 = tpu.strided_load %arg14[%c0_33, %c2, %c0_34] {strides = array<i32: 1, 2, 1>} : memref<2x80x8xf32, #tpu.memory_space<vmem>>, vector<2x32x8xf32>
    %29 = vector.shape_cast %28 : vector<2x32x8xf32> to vector<64x8xf32>
    %30 = arith.truncf %29 : vector<64x8xf32> to vector<64x8xbf16>
    %c0_35 = arith.constant 0 : index
    %c8_36 = arith.constant 8 : index
    %31 = vector.load %arg17[%c0_35, %c8_36] : memref<128x512xbf16, #tpu.memory_space<vmem>>, vector<64x8xbf16>
    tpu.vector_store %arg17[%c0_35, %c8_36], %30 {strides = array<i32>} : memref<128x512xbf16, #tpu.memory_space<vmem>>, vector<64x8xbf16>,
    %c64 = arith.constant 64 : index
    %c0_37 = arith.constant 0 : index
    %32 = vector.load %arg17[%c64, %c0_37] : memref<128x512xbf16, #tpu.memory_space<vmem>>, vector<64x8xbf16>
    tpu.vector_store %arg17[%c64, %c0_37], %30 {strides = array<i32>} : memref<128x512xbf16, #tpu.memory_space<vmem>>, vector<64x8xbf16>,
    %c0_38 = arith.constant 0 : index
    %c3 = arith.constant 3 : index
    %c0_39 = arith.constant 0 : index
    %33 = tpu.strided_load %arg14[%c0_38, %c3, %c0_39] {strides = array<i32: 1, 2, 1>} : memref<2x80x8xf32, #tpu.memory_space<vmem>>, vector<2x32x8xf32>
    %34 = vector.shape_cast %33 : vector<2x32x8xf32> to vector<64x8xf32>
    %35 = arith.truncf %34 : vector<64x8xf32> to vector<64x8xbf16>
    %c0_40 = arith.constant 0 : index
    %c16 = arith.constant 16 : index
    %36 = vector.load %arg17[%c0_40, %c16] : memref<128x512xbf16, #tpu.memory_space<vmem>>, vector<64x8xbf16>
    tpu.vector_store %arg17[%c0_40, %c16], %35 {strides = array<i32>} : memref<128x512xbf16, #tpu.memory_space<vmem>>, vector<64x8xbf16>,
    %c64_41 = arith.constant 64 : index
    %c8_42 = arith.constant 8 : index
    %37 = vector.load %arg17[%c64_41, %c8_42] : memref<128x512xbf16, #tpu.memory_space<vmem>>, vector<64x8xbf16>
    tpu.vector_store %arg17[%c64_41, %c8_42], %35 {strides = array<i32>} : memref<128x512xbf16, #tpu.memory_space<vmem>>, vector<64x8xbf16>,
    %c0_43 = arith.constant 0 : index
    %c4 = arith.constant 4 : index
    %c0_44 = arith.constant 0 : index
    %38 = tpu.strided_load %arg14[%c0_43, %c4, %c0_44] {strides = array<i32: 1, 2, 1>} : memref<2x80x8xf32, #tpu.memory_space<vmem>>, vector<2x32x8xf32>
    %39 = vector.shape_cast %38 : vector<2x32x8xf32> to vector<64x8xf32>
    %40 = arith.truncf %39 : vector<64x8xf32> to vector<64x8xbf16>
    %c0_45 = arith.constant 0 : index
    %c24_46 = arith.constant 24 : index
    %41 = vector.load %arg17[%c0_45, %c24_46] : memref<128x512xbf16, #tpu.memory_space<vmem>>, vector<64x8xbf16>
    tpu.vector_store %arg17[%c0_45, %c24_46], %40 {strides = array<i32>} : memref<128x512xbf16, #tpu.memory_space<vmem>>, vector<64x8xbf16>,
    %c64_47 = arith.constant 64 : index
    %c16_48 = arith.constant 16 : index
    %42 = vector.load %arg17[%c64_47, %c16_48] : memref<128x512xbf16, #tpu.memory_space<vmem>>, vector<64x8xbf16>
    tpu.vector_store %arg17[%c64_47, %c16_48], %40 {strides = array<i32>} : memref<128x512xbf16, #tpu.memory_space<vmem>>, vector<64x8xbf16>,
    %c0_49 = arith.constant 0 : index
    %c5 = arith.constant 5 : index
    %c0_50 = arith.constant 0 : index
    %43 = tpu.strided_load %arg14[%c0_49, %c5, %c0_50] {strides = array<i32: 1, 2, 1>} : memref<2x80x8xf32, #tpu.memory_space<vmem>>, vector<2x32x8xf32>
    %44 = vector.shape_cast %43 : vector<2x32x8xf32> to vector<64x8xf32>
    %45 = arith.truncf %44 : vector<64x8xf32> to vector<64x8xbf16>
    %c0_51 = arith.constant 0 : index
    %c32 = arith.constant 32 : index
    %46 = vector.load %arg17[%c0_51, %c32] : memref<128x512xbf16, #tpu.memory_space<vmem>>, vector<64x8xbf16>
    tpu.vector_store %arg17[%c0_51, %c32], %45 {strides = array<i32>} : memref<128x512xbf16, #tpu.memory_space<vmem>>, vector<64x8xbf16>,
    %c64_52 = arith.constant 64 : index
    %c24_53 = arith.constant 24 : index
    %47 = vector.load %arg17[%c64_52, %c24_53] : memref<128x512xbf16, #tpu.memory_space<vmem>>, vector<64x8xbf16>
    tpu.vector_store %arg17[%c64_52, %c24_53], %45 {strides = array<i32>} : memref<128x512xbf16, #tpu.memory_space<vmem>>, vector<64x8xbf16>,
    %c0_54 = arith.constant 0 : index
    %c6 = arith.constant 6 : index
    %c0_55 = arith.constant 0 : index
    %48 = tpu.strided_load %arg14[%c0_54, %c6, %c0_55] {strides = array<i32: 1, 2, 1>} : memref<2x80x8xf32, #tpu.memory_space<vmem>>, vector<2x32x8xf32>
    %49 = vector.shape_cast %48 : vector<2x32x8xf32> to vector<64x8xf32>
    %50 = arith.truncf %49 : vector<64x8xf32> to vector<64x8xbf16>
    %c0_56 = arith.constant 0 : index
    %c40_57 = arith.constant 40 : index
    %51 = vector.load %arg17[%c0_56, %c40_57] : memref<128x512xbf16, #tpu.memory_space<vmem>>, vector<64x8xbf16>
    tpu.vector_store %arg17[%c0_56, %c40_57], %50 {strides = array<i32>} : memref<128x512xbf16, #tpu.memory_space<vmem>>, vector<64x8xbf16>,
    %c64_58 = arith.constant 64 : index
    %c32_59 = arith.constant 32 : index
    %52 = vector.load %arg17[%c64_58, %c32_59] : memref<128x512xbf16, #tpu.memory_space<vmem>>, vector<64x8xbf16>
    tpu.vector_store %arg17[%c64_58, %c32_59], %50 {strides = array<i32>} : memref<128x512xbf16, #tpu.memory_space<vmem>>, vector<64x8xbf16>,
    %c0_60 = arith.constant 0 : index
    %c7 = arith.constant 7 : index
    %c0_61 = arith.constant 0 : index
    %53 = tpu.strided_load %arg14[%c0_60, %c7, %c0_61] {strides = array<i32: 1, 2, 1>} : memref<2x80x8xf32, #tpu.memory_space<vmem>>, vector<2x32x8xf32>
    %54 = vector.shape_cast %53 : vector<2x32x8xf32> to vector<64x8xf32>
    %55 = arith.truncf %54 : vector<64x8xf32> to vector<64x8xbf16>
    %c0_62 = arith.constant 0 : index
    %c48 = arith.constant 48 : index
    %56 = vector.load %arg17[%c0_62, %c48] : memref<128x512xbf16, #tpu.memory_space<vmem>>, vector<64x8xbf16>
    tpu.vector_store %arg17[%c0_62, %c48], %55 {strides = array<i32>} : memref<128x512xbf16, #tpu.memory_space<vmem>>, vector<64x8xbf16>,
    %c64_63 = arith.constant 64 : index
    %c40_64 = arith.constant 40 : index
    %57 = vector.load %arg17[%c64_63, %c40_64] : memref<128x512xbf16, #tpu.memory_space<vmem>>, vector<64x8xbf16>
    tpu.vector_store %arg17[%c64_63, %c40_64], %55 {strides = array<i32>} : memref<128x512xbf16, #tpu.memory_space<vmem>>, vector<64x8xbf16>,
    %c0_65 = arith.constant 0 : index
    %c8_66 = arith.constant 8 : index
    %c0_67 = arith.constant 0 : index
    %58 = tpu.strided_load %arg14[%c0_65, %c8_66, %c0_67] {strides = array<i32: 1, 2, 1>} : memref<2x80x8xf32, #tpu.memory_space<vmem>>, vector<2x32x8xf32>
    %59 = vector.shape_cast %58 : vector<2x32x8xf32> to vector<64x8xf32>
    %60 = arith.truncf %59 : vector<64x8xf32> to vector<64x8xbf16>
    %c0_68 = arith.constant 0 : index
    %c56 = arith.constant 56 : index
    %61 = vector.load %arg17[%c0_68, %c56] : memref<128x512xbf16, #tpu.memory_space<vmem>>, vector<64x8xbf16>
    tpu.vector_store %arg17[%c0_68, %c56], %60 {strides = array<i32>} : memref<128x512xbf16, #tpu.memory_space<vmem>>, vector<64x8xbf16>,
    %c64_69 = arith.constant 64 : index
    %c48_70 = arith.constant 48 : index
    %62 = vector.load %arg17[%c64_69, %c48_70] : memref<128x512xbf16, #tpu.memory_space<vmem>>, vector<64x8xbf16>
    tpu.vector_store %arg17[%c64_69, %c48_70], %60 {strides = array<i32>} : memref<128x512xbf16, #tpu.memory_space<vmem>>, vector<64x8xbf16>,
    %c0_71 = arith.constant 0 : index
    %c9 = arith.constant 9 : index
    %c0_72 = arith.constant 0 : index
    %63 = tpu.strided_load %arg14[%c0_71, %c9, %c0_72] {strides = array<i32: 1, 2, 1>} : memref<2x80x8xf32, #tpu.memory_space<vmem>>, vector<2x32x8xf32>
    %64 = vector.shape_cast %63 : vector<2x32x8xf32> to vector<64x8xf32>
    %65 = arith.truncf %64 : vector<64x8xf32> to vector<64x8xbf16>
    %c0_73 = arith.constant 0 : index
    %c64_74 = arith.constant 64 : index
    %66 = vector.load %arg17[%c0_73, %c64_74] : memref<128x512xbf16, #tpu.memory_space<vmem>>, vector<64x8xbf16>
    tpu.vector_store %arg17[%c0_73, %c64_74], %65 {strides = array<i32>} : memref<128x512xbf16, #tpu.memory_space<vmem>>, vector<64x8xbf16>,
    %c64_75 = arith.constant 64 : index
    %c56_76 = arith.constant 56 : index
    %67 = vector.load %arg17[%c64_75, %c56_76] : memref<128x512xbf16, #tpu.memory_space<vmem>>, vector<64x8xbf16>
    tpu.vector_store %arg17[%c64_75, %c56_76], %65 {strides = array<i32>} : memref<128x512xbf16, #tpu.memory_space<vmem>>, vector<64x8xbf16>,
    %c0_77 = arith.constant 0 : index
    %c10 = arith.constant 10 : index
    %c0_78 = arith.constant 0 : index
    %68 = tpu.strided_load %arg14[%c0_77, %c10, %c0_78] {strides = array<i32: 1, 2, 1>} : memref<2x80x8xf32, #tpu.memory_space<vmem>>, vector<2x32x8xf32>
    %69 = vector.shape_cast %68 : vector<2x32x8xf32> to vector<64x8xf32>
    %70 = arith.truncf %69 : vector<64x8xf32> to vector<64x8xbf16>
    %c0_79 = arith.constant 0 : index
    %c72_80 = arith.constant 72 : index
    %71 = vector.load %arg17[%c0_79, %c72_80] : memref<128x512xbf16, #tpu.memory_space<vmem>>, vector<64x8xbf16>
    tpu.vector_store %arg17[%c0_79, %c72_80], %70 {strides = array<i32>} : memref<128x512xbf16, #tpu.memory_space<vmem>>, vector<64x8xbf16>,
    %c64_81 = arith.constant 64 : index
    %c64_82 = arith.constant 64 : index
    %72 = vector.load %arg17[%c64_81, %c64_82] : memref<128x512xbf16, #tpu.memory_space<vmem>>, vector<64x8xbf16>
    tpu.vector_store %arg17[%c64_81, %c64_82], %70 {strides = array<i32>} : memref<128x512xbf16, #tpu.memory_space<vmem>>, vector<64x8xbf16>,
    %c0_83 = arith.constant 0 : index
    %c11 = arith.constant 11 : index
    %c0_84 = arith.constant 0 : index
    %73 = tpu.strided_load %arg14[%c0_83, %c11, %c0_84] {strides = array<i32: 1, 2, 1>} : memref<2x80x8xf32, #tpu.memory_space<vmem>>, vector<2x32x8xf32>
    %74 = vector.shape_cast %73 : vector<2x32x8xf32> to vector<64x8xf32>
    %75 = arith.truncf %74 : vector<64x8xf32> to vector<64x8xbf16>
    %c0_85 = arith.constant 0 : index
    %c80 = arith.constant 80 : index
    %76 = vector.load %arg17[%c0_85, %c80] : memref<128x512xbf16, #tpu.memory_space<vmem>>, vector<64x8xbf16>
    tpu.vector_store %arg17[%c0_85, %c80], %75 {strides = array<i32>} : memref<128x512xbf16, #tpu.memory_space<vmem>>, vector<64x8xbf16>,
    %c64_86 = arith.constant 64 : index
    %c72_87 = arith.constant 72 : index
    %77 = vector.load %arg17[%c64_86, %c72_87] : memref<128x512xbf16, #tpu.memory_space<vmem>>, vector<64x8xbf16>
    tpu.vector_store %arg17[%c64_86, %c72_87], %75 {strides = array<i32>} : memref<128x512xbf16, #tpu.memory_space<vmem>>, vector<64x8xbf16>,
    %c0_88 = arith.constant 0 : index
    %c12 = arith.constant 12 : index
    %c0_89 = arith.constant 0 : index
    %78 = tpu.strided_load %arg14[%c0_88, %c12, %c0_89] {strides = array<i32: 1, 2, 1>} : memref<2x80x8xf32, #tpu.memory_space<vmem>>, vector<2x32x8xf32>
    %79 = vector.shape_cast %78 : vector<2x32x8xf32> to vector<64x8xf32>
    %80 = arith.truncf %79 : vector<64x8xf32> to vector<64x8xbf16>
    %c0_90 = arith.constant 0 : index
    %c88 = arith.constant 88 : index
    %81 = vector.load %arg17[%c0_90, %c88] : memref<128x512xbf16, #tpu.memory_space<vmem>>, vector<64x8xbf16>
    tpu.vector_store %arg17[%c0_90, %c88], %80 {strides = array<i32>} : memref<128x512xbf16, #tpu.memory_space<vmem>>, vector<64x8xbf16>,
    %c64_91 = arith.constant 64 : index
    %c80_92 = arith.constant 80 : index
    %82 = vector.load %arg17[%c64_91, %c80_92] : memref<128x512xbf16, #tpu.memory_space<vmem>>, vector<64x8xbf16>
    tpu.vector_store %arg17[%c64_91, %c80_92], %80 {strides = array<i32>} : memref<128x512xbf16, #tpu.memory_space<vmem>>, vector<64x8xbf16>,
    %c0_93 = arith.constant 0 : index
    %c13 = arith.constant 13 : index
    %c0_94 = arith.constant 0 : index
    %83 = tpu.strided_load %arg14[%c0_93, %c13, %c0_94] {strides = array<i32: 1, 2, 1>} : memref<2x80x8xf32, #tpu.memory_space<vmem>>, vector<2x32x8xf32>
    %84 = vector.shape_cast %83 : vector<2x32x8xf32> to vector<64x8xf32>
    %85 = arith.truncf %84 : vector<64x8xf32> to vector<64x8xbf16>
    %c0_95 = arith.constant 0 : index
    %c96 = arith.constant 96 : index
    %86 = vector.load %arg17[%c0_95, %c96] : memref<128x512xbf16, #tpu.memory_space<vmem>>, vector<64x8xbf16>
    tpu.vector_store %arg17[%c0_95, %c96], %85 {strides = array<i32>} : memref<128x512xbf16, #tpu.memory_space<vmem>>, vector<64x8xbf16>,
    %c64_96 = arith.constant 64 : index
    %c88_97 = arith.constant 88 : index
    %87 = vector.load %arg17[%c64_96, %c88_97] : memref<128x512xbf16, #tpu.memory_space<vmem>>, vector<64x8xbf16>
    tpu.vector_store %arg17[%c64_96, %c88_97], %85 {strides = array<i32>} : memref<128x512xbf16, #tpu.memory_space<vmem>>, vector<64x8xbf16>,
    %c0_98 = arith.constant 0 : index
    %c14 = arith.constant 14 : index
    %c0_99 = arith.constant 0 : index
    %88 = tpu.strided_load %arg14[%c0_98, %c14, %c0_99] {strides = array<i32: 1, 2, 1>} : memref<2x80x8xf32, #tpu.memory_space<vmem>>, vector<2x32x8xf32>
    %89 = vector.shape_cast %88 : vector<2x32x8xf32> to vector<64x8xf32>
    %90 = arith.truncf %89 : vector<64x8xf32> to vector<64x8xbf16>
    %c0_100 = arith.constant 0 : index
    %c104 = arith.constant 104 : index
    %91 = vector.load %arg17[%c0_100, %c104] : memref<128x512xbf16, #tpu.memory_space<vmem>>, vector<64x8xbf16>
    tpu.vector_store %arg17[%c0_100, %c104], %90 {strides = array<i32>} : memref<128x512xbf16, #tpu.memory_space<vmem>>, vector<64x8xbf16>,
    %c64_101 = arith.constant 64 : index
    %c96_102 = arith.constant 96 : index
    %92 = vector.load %arg17[%c64_101, %c96_102] : memref<128x512xbf16, #tpu.memory_space<vmem>>, vector<64x8xbf16>
    tpu.vector_store %arg17[%c64_101, %c96_102], %90 {strides = array<i32>} : memref<128x512xbf16, #tpu.memory_space<vmem>>, vector<64x8xbf16>,
    %c0_103 = arith.constant 0 : index
    %c15 = arith.constant 15 : index
    %c0_104 = arith.constant 0 : index
    %93 = tpu.strided_load %arg14[%c0_103, %c15, %c0_104] {strides = array<i32: 1, 2, 1>} : memref<2x80x8xf32, #tpu.memory_space<vmem>>, vector<2x32x8xf32>
    %94 = vector.shape_cast %93 : vector<2x32x8xf32> to vector<64x8xf32>
    %95 = arith.truncf %94 : vector<64x8xf32> to vector<64x8xbf16>
    %c0_105 = arith.constant 0 : index
    %c112 = arith.constant 112 : index
    %96 = vector.load %arg17[%c0_105, %c112] : memref<128x512xbf16, #tpu.memory_space<vmem>>, vector<64x8xbf16>
    tpu.vector_store %arg17[%c0_105, %c112], %95 {strides = array<i32>} : memref<128x512xbf16, #tpu.memory_space<vmem>>, vector<64x8xbf16>,
    %c64_106 = arith.constant 64 : index
    %c104_107 = arith.constant 104 : index
    %97 = vector.load %arg17[%c64_106, %c104_107] : memref<128x512xbf16, #tpu.memory_space<vmem>>, vector<64x8xbf16>
    tpu.vector_store %arg17[%c64_106, %c104_107], %95 {strides = array<i32>} : memref<128x512xbf16, #tpu.memory_space<vmem>>, vector<64x8xbf16>,
    %c0_108 = arith.constant 0 : index
    %c16_109 = arith.constant 16 : index
    %c0_110 = arith.constant 0 : index
    %98 = tpu.strided_load %arg14[%c0_108, %c16_109, %c0_110] {strides = array<i32: 1, 2, 1>} : memref<2x80x8xf32, #tpu.memory_space<vmem>>, vector<2x32x8xf32>
    %99 = vector.shape_cast %98 : vector<2x32x8xf32> to vector<64x8xf32>
    %100 = arith.truncf %99 : vector<64x8xf32> to vector<64x8xbf16>
    %c64_111 = arith.constant 64 : index
    %c112_112 = arith.constant 112 : index
    %101 = vector.load %arg17[%c64_111, %c112_112] : memref<128x512xbf16, #tpu.memory_space<vmem>>, vector<64x8xbf16>
    tpu.vector_store %arg17[%c64_111, %c112_112], %100 {strides = array<i32>} : memref<128x512xbf16, #tpu.memory_space<vmem>>, vector<64x8xbf16>,
    %c0_113 = arith.constant 0 : index
    %c0_114 = arith.constant 0 : index
    %102 = vector.load %arg17[%c0_113, %c0_114] : memref<128x512xbf16, #tpu.memory_space<vmem>>, vector<128x128xbf16>
    %c0_115 = arith.constant 0 : index
    %c0_116 = arith.constant 0 : index
    %103 = vector.load %arg3[%c0_115, %c0_116] : memref<128x16xbf16, #tpu.memory_space<vmem>>, vector<128x16xbf16>
    %cst_117 = arith.constant dense<0.000000e+00> : vector<128x16xf32>
    %104 = tpu.matmul %102, %103, %cst_117 {dimension_numbers = #tpu.dot_dimension_numbers<[1], [0], [0], [1], [0, 0, 1, 1], [], []>} : vector<128x128xbf16>, vector<128x16xbf16>, vector<128x16xf32> -> vector<128x16xf32>
    %c0_118 = arith.constant 0 : index
    %c0_119 = arith.constant 0 : index
    %105 = vector.load %arg4[%c0_118, %c0_119] : memref<1x16xf32, #tpu.memory_space<vmem>>, vector<1x16xf32>
    %106 = vector.broadcast %105 : vector<1x16xf32> to vector<128x16xf32>
    %107 = arith.addf %104, %106 : vector<128x16xf32>
    %cst_120 = arith.constant 0.000000e+00 : f32
    %108 = vector.broadcast %cst_120 : f32 to vector<128x16xf32>
    %109 = arith.maximumf %107, %108 : vector<128x16xf32>
    %110 = vector.extract_strided_slice %109 {offsets = [0, 0], sizes = [64, 16], strides = [1, 1]} : vector<128x16xf32> to vector<64x16xf32>
    %111 = vector.extract_strided_slice %109 {offsets = [64, 0], sizes = [64, 16], strides = [1, 1]} : vector<128x16xf32> to vector<64x16xf32>
    %112 = arith.maximumf %110, %111 : vector<64x16xf32>
    %113 = vector.shape_cast %112 : vector<64x16xf32> to vector<2x32x16xf32>
    %c0_121 = arith.constant 0 : index
    %c8_122 = arith.constant 8 : index
    %c0_123 = arith.constant 0 : index
    %114 = vector.load %arg15[%c0_121, %c8_122, %c0_123] : memref<2x48x16xf32, #tpu.memory_space<vmem>>, vector<2x32x16xf32>
    tpu.vector_store %arg15[%c0_121, %c8_122, %c0_123], %113 {strides = array<i32>} : memref<2x48x16xf32, #tpu.memory_space<vmem>>, vector<2x32x16xf32>,
    %c0_124 = arith.constant 0 : index
    %c1_125 = arith.constant 1 : index
    %c0_126 = arith.constant 0 : index
    %115 = tpu.strided_load %arg15[%c0_124, %c1_125, %c0_126] {strides = array<i32: 1, 2, 1>} : memref<2x48x16xf32, #tpu.memory_space<vmem>>, vector<2x16x16xf32>
    %116 = vector.shape_cast %115 : vector<2x16x16xf32> to vector<32x16xf32>
    %117 = arith.truncf %116 : vector<32x16xf32> to vector<32x16xbf16>
    %c0_127 = arith.constant 0 : index
    %c0_128 = arith.constant 0 : index
    %118 = vector.load %arg17[%c0_127, %c0_128] : memref<128x512xbf16, #tpu.memory_space<vmem>>, vector<32x16xbf16>
    tpu.vector_store %arg17[%c0_127, %c0_128], %117 {strides = array<i32>} : memref<128x512xbf16, #tpu.memory_space<vmem>>, vector<32x16xbf16>,
    %c0_129 = arith.constant 0 : index
    %c2_130 = arith.constant 2 : index
    %c0_131 = arith.constant 0 : index
    %119 = tpu.strided_load %arg15[%c0_129, %c2_130, %c0_131] {strides = array<i32: 1, 2, 1>} : memref<2x48x16xf32, #tpu.memory_space<vmem>>, vector<2x16x16xf32>
    %120 = vector.shape_cast %119 : vector<2x16x16xf32> to vector<32x16xf32>
    %121 = arith.truncf %120 : vector<32x16xf32> to vector<32x16xbf16>
    %c0_132 = arith.constant 0 : index
    %c16_133 = arith.constant 16 : index
    %122 = vector.load %arg17[%c0_132, %c16_133] : memref<128x512xbf16, #tpu.memory_space<vmem>>, vector<32x16xbf16>
    tpu.vector_store %arg17[%c0_132, %c16_133], %121 {strides = array<i32>} : memref<128x512xbf16, #tpu.memory_space<vmem>>, vector<32x16xbf16>,
    %c32_134 = arith.constant 32 : index
    %c0_135 = arith.constant 0 : index
    %123 = vector.load %arg17[%c32_134, %c0_135] : memref<128x512xbf16, #tpu.memory_space<vmem>>, vector<32x16xbf16>
    tpu.vector_store %arg17[%c32_134, %c0_135], %121 {strides = array<i32>} : memref<128x512xbf16, #tpu.memory_space<vmem>>, vector<32x16xbf16>,
    %c0_136 = arith.constant 0 : index
    %c3_137 = arith.constant 3 : index
    %c0_138 = arith.constant 0 : index
    %124 = tpu.strided_load %arg15[%c0_136, %c3_137, %c0_138] {strides = array<i32: 1, 2, 1>} : memref<2x48x16xf32, #tpu.memory_space<vmem>>, vector<2x16x16xf32>
    %125 = vector.shape_cast %124 : vector<2x16x16xf32> to vector<32x16xf32>
    %126 = arith.truncf %125 : vector<32x16xf32> to vector<32x16xbf16>
    %c0_139 = arith.constant 0 : index
    %c32_140 = arith.constant 32 : index
    %127 = vector.load %arg17[%c0_139, %c32_140] : memref<128x512xbf16, #tpu.memory_space<vmem>>, vector<32x16xbf16>
    tpu.vector_store %arg17[%c0_139, %c32_140], %126 {strides = array<i32>} : memref<128x512xbf16, #tpu.memory_space<vmem>>, vector<32x16xbf16>,
    %c32_141 = arith.constant 32 : index
    %c16_142 = arith.constant 16 : index
    %128 = vector.load %arg17[%c32_141, %c16_142] : memref<128x512xbf16, #tpu.memory_space<vmem>>, vector<32x16xbf16>
    tpu.vector_store %arg17[%c32_141, %c16_142], %126 {strides = array<i32>} : memref<128x512xbf16, #tpu.memory_space<vmem>>, vector<32x16xbf16>,
    %c0_143 = arith.constant 0 : index
    %c4_144 = arith.constant 4 : index
    %c0_145 = arith.constant 0 : index
    %129 = tpu.strided_load %arg15[%c0_143, %c4_144, %c0_145] {strides = array<i32: 1, 2, 1>} : memref<2x48x16xf32, #tpu.memory_space<vmem>>, vector<2x16x16xf32>
    %130 = vector.shape_cast %129 : vector<2x16x16xf32> to vector<32x16xf32>
    %131 = arith.truncf %130 : vector<32x16xf32> to vector<32x16xbf16>
    %c0_146 = arith.constant 0 : index
    %c48_147 = arith.constant 48 : index
    %132 = vector.load %arg17[%c0_146, %c48_147] : memref<128x512xbf16, #tpu.memory_space<vmem>>, vector<32x16xbf16>
    tpu.vector_store %arg17[%c0_146, %c48_147], %131 {strides = array<i32>} : memref<128x512xbf16, #tpu.memory_space<vmem>>, vector<32x16xbf16>,
    %c32_148 = arith.constant 32 : index
    %c32_149 = arith.constant 32 : index
    %133 = vector.load %arg17[%c32_148, %c32_149] : memref<128x512xbf16, #tpu.memory_space<vmem>>, vector<32x16xbf16>
    tpu.vector_store %arg17[%c32_148, %c32_149], %131 {strides = array<i32>} : memref<128x512xbf16, #tpu.memory_space<vmem>>, vector<32x16xbf16>,
    %c0_150 = arith.constant 0 : index
    %c5_151 = arith.constant 5 : index
    %c0_152 = arith.constant 0 : index
    %134 = tpu.strided_load %arg15[%c0_150, %c5_151, %c0_152] {strides = array<i32: 1, 2, 1>} : memref<2x48x16xf32, #tpu.memory_space<vmem>>, vector<2x16x16xf32>
    %135 = vector.shape_cast %134 : vector<2x16x16xf32> to vector<32x16xf32>
    %136 = arith.truncf %135 : vector<32x16xf32> to vector<32x16xbf16>
    %c0_153 = arith.constant 0 : index
    %c64_154 = arith.constant 64 : index
    %137 = vector.load %arg17[%c0_153, %c64_154] : memref<128x512xbf16, #tpu.memory_space<vmem>>, vector<32x16xbf16>
    tpu.vector_store %arg17[%c0_153, %c64_154], %136 {strides = array<i32>} : memref<128x512xbf16, #tpu.memory_space<vmem>>, vector<32x16xbf16>,
    %c32_155 = arith.constant 32 : index
    %c48_156 = arith.constant 48 : index
    %138 = vector.load %arg17[%c32_155, %c48_156] : memref<128x512xbf16, #tpu.memory_space<vmem>>, vector<32x16xbf16>
    tpu.vector_store %arg17[%c32_155, %c48_156], %136 {strides = array<i32>} : memref<128x512xbf16, #tpu.memory_space<vmem>>, vector<32x16xbf16>,
    %c0_157 = arith.constant 0 : index
    %c6_158 = arith.constant 6 : index
    %c0_159 = arith.constant 0 : index
    %139 = tpu.strided_load %arg15[%c0_157, %c6_158, %c0_159] {strides = array<i32: 1, 2, 1>} : memref<2x48x16xf32, #tpu.memory_space<vmem>>, vector<2x16x16xf32>
    %140 = vector.shape_cast %139 : vector<2x16x16xf32> to vector<32x16xf32>
    %141 = arith.truncf %140 : vector<32x16xf32> to vector<32x16xbf16>
    %c0_160 = arith.constant 0 : index
    %c80_161 = arith.constant 80 : index
    %142 = vector.load %arg17[%c0_160, %c80_161] : memref<128x512xbf16, #tpu.memory_space<vmem>>, vector<32x16xbf16>
    tpu.vector_store %arg17[%c0_160, %c80_161], %141 {strides = array<i32>} : memref<128x512xbf16, #tpu.memory_space<vmem>>, vector<32x16xbf16>,
    %c32_162 = arith.constant 32 : index
    %c64_163 = arith.constant 64 : index
    %143 = vector.load %arg17[%c32_162, %c64_163] : memref<128x512xbf16, #tpu.memory_space<vmem>>, vector<32x16xbf16>
    tpu.vector_store %arg17[%c32_162, %c64_163], %141 {strides = array<i32>} : memref<128x512xbf16, #tpu.memory_space<vmem>>, vector<32x16xbf16>,
    %c0_164 = arith.constant 0 : index
    %c7_165 = arith.constant 7 : index
    %c0_166 = arith.constant 0 : index
    %144 = tpu.strided_load %arg15[%c0_164, %c7_165, %c0_166] {strides = array<i32: 1, 2, 1>} : memref<2x48x16xf32, #tpu.memory_space<vmem>>, vector<2x16x16xf32>
    %145 = vector.shape_cast %144 : vector<2x16x16xf32> to vector<32x16xf32>
    %146 = arith.truncf %145 : vector<32x16xf32> to vector<32x16xbf16>
    %c0_167 = arith.constant 0 : index
    %c96_168 = arith.constant 96 : index
    %147 = vector.load %arg17[%c0_167, %c96_168] : memref<128x512xbf16, #tpu.memory_space<vmem>>, vector<32x16xbf16>
    tpu.vector_store %arg17[%c0_167, %c96_168], %146 {strides = array<i32>} : memref<128x512xbf16, #tpu.memory_space<vmem>>, vector<32x16xbf16>,
    %c32_169 = arith.constant 32 : index
    %c80_170 = arith.constant 80 : index
    %148 = vector.load %arg17[%c32_169, %c80_170] : memref<128x512xbf16, #tpu.memory_space<vmem>>, vector<32x16xbf16>
    tpu.vector_store %arg17[%c32_169, %c80_170], %146 {strides = array<i32>} : memref<128x512xbf16, #tpu.memory_space<vmem>>, vector<32x16xbf16>,
    %c0_171 = arith.constant 0 : index
    %c8_172 = arith.constant 8 : index
    %c0_173 = arith.constant 0 : index
    %149 = tpu.strided_load %arg15[%c0_171, %c8_172, %c0_173] {strides = array<i32: 1, 2, 1>} : memref<2x48x16xf32, #tpu.memory_space<vmem>>, vector<2x16x16xf32>
    %150 = vector.shape_cast %149 : vector<2x16x16xf32> to vector<32x16xf32>
    %151 = arith.truncf %150 : vector<32x16xf32> to vector<32x16xbf16>
    %c0_174 = arith.constant 0 : index
    %c112_175 = arith.constant 112 : index
    %152 = vector.load %arg17[%c0_174, %c112_175] : memref<128x512xbf16, #tpu.memory_space<vmem>>, vector<32x16xbf16>
    tpu.vector_store %arg17[%c0_174, %c112_175], %151 {strides = array<i32>} : memref<128x512xbf16, #tpu.memory_space<vmem>>, vector<32x16xbf16>,
    %c32_176 = arith.constant 32 : index
    %c96_177 = arith.constant 96 : index
    %153 = vector.load %arg17[%c32_176, %c96_177] : memref<128x512xbf16, #tpu.memory_space<vmem>>, vector<32x16xbf16>
    tpu.vector_store %arg17[%c32_176, %c96_177], %151 {strides = array<i32>} : memref<128x512xbf16, #tpu.memory_space<vmem>>, vector<32x16xbf16>,
    %c0_178 = arith.constant 0 : index
    %c9_179 = arith.constant 9 : index
    %c0_180 = arith.constant 0 : index
    %154 = tpu.strided_load %arg15[%c0_178, %c9_179, %c0_180] {strides = array<i32: 1, 2, 1>} : memref<2x48x16xf32, #tpu.memory_space<vmem>>, vector<2x16x16xf32>
    %155 = vector.shape_cast %154 : vector<2x16x16xf32> to vector<32x16xf32>
    %156 = arith.truncf %155 : vector<32x16xf32> to vector<32x16xbf16>
    %c0_181 = arith.constant 0 : index
    %c128 = arith.constant 128 : index
    %157 = vector.load %arg17[%c0_181, %c128] : memref<128x512xbf16, #tpu.memory_space<vmem>>, vector<32x16xbf16>
    tpu.vector_store %arg17[%c0_181, %c128], %156 {strides = array<i32>} : memref<128x512xbf16, #tpu.memory_space<vmem>>, vector<32x16xbf16>,
    %c32_182 = arith.constant 32 : index
    %c112_183 = arith.constant 112 : index
    %158 = vector.load %arg17[%c32_182, %c112_183] : memref<128x512xbf16, #tpu.memory_space<vmem>>, vector<32x16xbf16>
    tpu.vector_store %arg17[%c32_182, %c112_183], %156 {strides = array<i32>} : memref<128x512xbf16, #tpu.memory_space<vmem>>, vector<32x16xbf16>,
    %c0_184 = arith.constant 0 : index
    %c10_185 = arith.constant 10 : index
    %c0_186 = arith.constant 0 : index
    %159 = tpu.strided_load %arg15[%c0_184, %c10_185, %c0_186] {strides = array<i32: 1, 2, 1>} : memref<2x48x16xf32, #tpu.memory_space<vmem>>, vector<2x16x16xf32>
    %160 = vector.shape_cast %159 : vector<2x16x16xf32> to vector<32x16xf32>
    %161 = arith.truncf %160 : vector<32x16xf32> to vector<32x16xbf16>
    %c0_187 = arith.constant 0 : index
    %c144 = arith.constant 144 : index
    %162 = vector.load %arg17[%c0_187, %c144] : memref<128x512xbf16, #tpu.memory_space<vmem>>, vector<32x16xbf16>
    tpu.vector_store %arg17[%c0_187, %c144], %161 {strides = array<i32>} : memref<128x512xbf16, #tpu.memory_space<vmem>>, vector<32x16xbf16>,
    %c32_188 = arith.constant 32 : index
    %c128_189 = arith.constant 128 : index
    %163 = vector.load %arg17[%c32_188, %c128_189] : memref<128x512xbf16, #tpu.memory_space<vmem>>, vector<32x16xbf16>
    tpu.vector_store %arg17[%c32_188, %c128_189], %161 {strides = array<i32>} : memref<128x512xbf16, #tpu.memory_space<vmem>>, vector<32x16xbf16>,
    %c0_190 = arith.constant 0 : index
    %c11_191 = arith.constant 11 : index
    %c0_192 = arith.constant 0 : index
    %164 = tpu.strided_load %arg15[%c0_190, %c11_191, %c0_192] {strides = array<i32: 1, 2, 1>} : memref<2x48x16xf32, #tpu.memory_space<vmem>>, vector<2x16x16xf32>
    %165 = vector.shape_cast %164 : vector<2x16x16xf32> to vector<32x16xf32>
    %166 = arith.truncf %165 : vector<32x16xf32> to vector<32x16xbf16>
    %c0_193 = arith.constant 0 : index
    %c160 = arith.constant 160 : index
    %167 = vector.load %arg17[%c0_193, %c160] : memref<128x512xbf16, #tpu.memory_space<vmem>>, vector<32x16xbf16>
    tpu.vector_store %arg17[%c0_193, %c160], %166 {strides = array<i32>} : memref<128x512xbf16, #tpu.memory_space<vmem>>, vector<32x16xbf16>,
    %c32_194 = arith.constant 32 : index
    %c144_195 = arith.constant 144 : index
    %168 = vector.load %arg17[%c32_194, %c144_195] : memref<128x512xbf16, #tpu.memory_space<vmem>>, vector<32x16xbf16>
    tpu.vector_store %arg17[%c32_194, %c144_195], %166 {strides = array<i32>} : memref<128x512xbf16, #tpu.memory_space<vmem>>, vector<32x16xbf16>,
    %c0_196 = arith.constant 0 : index
    %c12_197 = arith.constant 12 : index
    %c0_198 = arith.constant 0 : index
    %169 = tpu.strided_load %arg15[%c0_196, %c12_197, %c0_198] {strides = array<i32: 1, 2, 1>} : memref<2x48x16xf32, #tpu.memory_space<vmem>>, vector<2x16x16xf32>
    %170 = vector.shape_cast %169 : vector<2x16x16xf32> to vector<32x16xf32>
    %171 = arith.truncf %170 : vector<32x16xf32> to vector<32x16xbf16>
    %c0_199 = arith.constant 0 : index
    %c176 = arith.constant 176 : index
    %172 = vector.load %arg17[%c0_199, %c176] : memref<128x512xbf16, #tpu.memory_space<vmem>>, vector<32x16xbf16>
    tpu.vector_store %arg17[%c0_199, %c176], %171 {strides = array<i32>} : memref<128x512xbf16, #tpu.memory_space<vmem>>, vector<32x16xbf16>,
    %c32_200 = arith.constant 32 : index
    %c160_201 = arith.constant 160 : index
    %173 = vector.load %arg17[%c32_200, %c160_201] : memref<128x512xbf16, #tpu.memory_space<vmem>>, vector<32x16xbf16>
    tpu.vector_store %arg17[%c32_200, %c160_201], %171 {strides = array<i32>} : memref<128x512xbf16, #tpu.memory_space<vmem>>, vector<32x16xbf16>,
    %c0_202 = arith.constant 0 : index
    %c13_203 = arith.constant 13 : index
    %c0_204 = arith.constant 0 : index
    %174 = tpu.strided_load %arg15[%c0_202, %c13_203, %c0_204] {strides = array<i32: 1, 2, 1>} : memref<2x48x16xf32, #tpu.memory_space<vmem>>, vector<2x16x16xf32>
    %175 = vector.shape_cast %174 : vector<2x16x16xf32> to vector<32x16xf32>
    %176 = arith.truncf %175 : vector<32x16xf32> to vector<32x16xbf16>
    %c0_205 = arith.constant 0 : index
    %c192 = arith.constant 192 : index
    %177 = vector.load %arg17[%c0_205, %c192] : memref<128x512xbf16, #tpu.memory_space<vmem>>, vector<32x16xbf16>
    tpu.vector_store %arg17[%c0_205, %c192], %176 {strides = array<i32>} : memref<128x512xbf16, #tpu.memory_space<vmem>>, vector<32x16xbf16>,
    %c32_206 = arith.constant 32 : index
    %c176_207 = arith.constant 176 : index
    %178 = vector.load %arg17[%c32_206, %c176_207] : memref<128x512xbf16, #tpu.memory_space<vmem>>, vector<32x16xbf16>
    tpu.vector_store %arg17[%c32_206, %c176_207], %176 {strides = array<i32>} : memref<128x512xbf16, #tpu.memory_space<vmem>>, vector<32x16xbf16>,
    %c0_208 = arith.constant 0 : index
    %c14_209 = arith.constant 14 : index
    %c0_210 = arith.constant 0 : index
    %179 = tpu.strided_load %arg15[%c0_208, %c14_209, %c0_210] {strides = array<i32: 1, 2, 1>} : memref<2x48x16xf32, #tpu.memory_space<vmem>>, vector<2x16x16xf32>
    %180 = vector.shape_cast %179 : vector<2x16x16xf32> to vector<32x16xf32>
    %181 = arith.truncf %180 : vector<32x16xf32> to vector<32x16xbf16>
    %c0_211 = arith.constant 0 : index
    %c208 = arith.constant 208 : index
    %182 = vector.load %arg17[%c0_211, %c208] : memref<128x512xbf16, #tpu.memory_space<vmem>>, vector<32x16xbf16>
    tpu.vector_store %arg17[%c0_211, %c208], %181 {strides = array<i32>} : memref<128x512xbf16, #tpu.memory_space<vmem>>, vector<32x16xbf16>,
    %c32_212 = arith.constant 32 : index
    %c192_213 = arith.constant 192 : index
    %183 = vector.load %arg17[%c32_212, %c192_213] : memref<128x512xbf16, #tpu.memory_space<vmem>>, vector<32x16xbf16>
    tpu.vector_store %arg17[%c32_212, %c192_213], %181 {strides = array<i32>} : memref<128x512xbf16, #tpu.memory_space<vmem>>, vector<32x16xbf16>,
    %c0_214 = arith.constant 0 : index
    %c15_215 = arith.constant 15 : index
    %c0_216 = arith.constant 0 : index
    %184 = tpu.strided_load %arg15[%c0_214, %c15_215, %c0_216] {strides = array<i32: 1, 2, 1>} : memref<2x48x16xf32, #tpu.memory_space<vmem>>, vector<2x16x16xf32>
    %185 = vector.shape_cast %184 : vector<2x16x16xf32> to vector<32x16xf32>
    %186 = arith.truncf %185 : vector<32x16xf32> to vector<32x16xbf16>
    %c0_217 = arith.constant 0 : index
    %c224 = arith.constant 224 : index
    %187 = vector.load %arg17[%c0_217, %c224] : memref<128x512xbf16, #tpu.memory_space<vmem>>, vector<32x16xbf16>
    tpu.vector_store %arg17[%c0_217, %c224], %186 {strides = array<i32>} : memref<128x512xbf16, #tpu.memory_space<vmem>>, vector<32x16xbf16>,
    %c32_218 = arith.constant 32 : index
    %c208_219 = arith.constant 208 : index
    %188 = vector.load %arg17[%c32_218, %c208_219] : memref<128x512xbf16, #tpu.memory_space<vmem>>, vector<32x16xbf16>
    tpu.vector_store %arg17[%c32_218, %c208_219], %186 {strides = array<i32>} : memref<128x512xbf16, #tpu.memory_space<vmem>>, vector<32x16xbf16>,
    %c0_220 = arith.constant 0 : index
    %c16_221 = arith.constant 16 : index
    %c0_222 = arith.constant 0 : index
    %189 = tpu.strided_load %arg15[%c0_220, %c16_221, %c0_222] {strides = array<i32: 1, 2, 1>} : memref<2x48x16xf32, #tpu.memory_space<vmem>>, vector<2x16x16xf32>
    %190 = vector.shape_cast %189 : vector<2x16x16xf32> to vector<32x16xf32>
    %191 = arith.truncf %190 : vector<32x16xf32> to vector<32x16xbf16>
    %c32_223 = arith.constant 32 : index
    %c224_224 = arith.constant 224 : index
    %192 = vector.load %arg17[%c32_223, %c224_224] : memref<128x512xbf16, #tpu.memory_space<vmem>>, vector<32x16xbf16>
    tpu.vector_store %arg17[%c32_223, %c224_224], %191 {strides = array<i32>} : memref<128x512xbf16, #tpu.memory_space<vmem>>, vector<32x16xbf16>,
    %c0_225 = arith.constant 0 : index
    %c0_226 = arith.constant 0 : index
    %193 = vector.load %arg17[%c0_225, %c0_226] : memref<128x512xbf16, #tpu.memory_space<vmem>>, vector<64x256xbf16>
    %c0_227 = arith.constant 0 : index
    %c0_228 = arith.constant 0 : index
    %194 = vector.load %arg5[%c0_227, %c0_228] : memref<256x32xbf16, #tpu.memory_space<vmem>>, vector<256x32xbf16>
    %cst_229 = arith.constant dense<0.000000e+00> : vector<64x32xf32>
    %195 = tpu.matmul %193, %194, %cst_229 {dimension_numbers = #tpu.dot_dimension_numbers<[1], [0], [0], [1], [0, 0, 1, 1], [], []>} : vector<64x256xbf16>, vector<256x32xbf16>, vector<64x32xf32> -> vector<64x32xf32>
    %c0_230 = arith.constant 0 : index
    %c0_231 = arith.constant 0 : index
    %196 = vector.load %arg6[%c0_230, %c0_231] : memref<1x32xf32, #tpu.memory_space<vmem>>, vector<1x32xf32>
    %197 = vector.broadcast %196 : vector<1x32xf32> to vector<64x32xf32>
    %198 = arith.addf %195, %197 : vector<64x32xf32>
    %cst_232 = arith.constant 0.000000e+00 : f32
    %199 = vector.broadcast %cst_232 : f32 to vector<64x32xf32>
    %200 = arith.maximumf %198, %199 : vector<64x32xf32>
    %201 = vector.extract_strided_slice %200 {offsets = [0, 0], sizes = [32, 32], strides = [1, 1]} : vector<64x32xf32> to vector<32x32xf32>
    %202 = vector.extract_strided_slice %200 {offsets = [32, 0], sizes = [32, 32], strides = [1, 1]} : vector<64x32xf32> to vector<32x32xf32>
    %203 = arith.maximumf %201, %202 : vector<32x32xf32>
    %204 = vector.shape_cast %203 : vector<32x32xf32> to vector<2x16x32xf32>
    %c0_233 = arith.constant 0 : index
    %c8_234 = arith.constant 8 : index
    %c0_235 = arith.constant 0 : index
    %205 = vector.load %arg16[%c0_233, %c8_234, %c0_235] : memref<2x32x32xf32, #tpu.memory_space<vmem>>, vector<2x16x32xf32>
    tpu.vector_store %arg16[%c0_233, %c8_234, %c0_235], %204 {strides = array<i32>} : memref<2x32x32xf32, #tpu.memory_space<vmem>>, vector<2x16x32xf32>,
    %c0_236 = arith.constant 0 : index
    %c1_237 = arith.constant 1 : index
    %c0_238 = arith.constant 0 : index
    %206 = tpu.strided_load %arg16[%c0_236, %c1_237, %c0_238] {strides = array<i32: 1, 2, 1>} : memref<2x32x32xf32, #tpu.memory_space<vmem>>, vector<2x8x32xf32>
    %207 = vector.shape_cast %206 : vector<2x8x32xf32> to vector<16x32xf32>
    %208 = arith.truncf %207 : vector<16x32xf32> to vector<16x32xbf16>
    %c0_239 = arith.constant 0 : index
    %c0_240 = arith.constant 0 : index
    %209 = vector.load %arg17[%c0_239, %c0_240] : memref<128x512xbf16, #tpu.memory_space<vmem>>, vector<16x32xbf16>
    tpu.vector_store %arg17[%c0_239, %c0_240], %208 {strides = array<i32>} : memref<128x512xbf16, #tpu.memory_space<vmem>>, vector<16x32xbf16>,
    %c0_241 = arith.constant 0 : index
    %c2_242 = arith.constant 2 : index
    %c0_243 = arith.constant 0 : index
    %210 = tpu.strided_load %arg16[%c0_241, %c2_242, %c0_243] {strides = array<i32: 1, 2, 1>} : memref<2x32x32xf32, #tpu.memory_space<vmem>>, vector<2x8x32xf32>
    %211 = vector.shape_cast %210 : vector<2x8x32xf32> to vector<16x32xf32>
    %212 = arith.truncf %211 : vector<16x32xf32> to vector<16x32xbf16>
    %c0_244 = arith.constant 0 : index
    %c32_245 = arith.constant 32 : index
    %213 = vector.load %arg17[%c0_244, %c32_245] : memref<128x512xbf16, #tpu.memory_space<vmem>>, vector<16x32xbf16>
    tpu.vector_store %arg17[%c0_244, %c32_245], %212 {strides = array<i32>} : memref<128x512xbf16, #tpu.memory_space<vmem>>, vector<16x32xbf16>,
    %c16_246 = arith.constant 16 : index
    %c0_247 = arith.constant 0 : index
    %214 = vector.load %arg17[%c16_246, %c0_247] : memref<128x512xbf16, #tpu.memory_space<vmem>>, vector<16x32xbf16>
    tpu.vector_store %arg17[%c16_246, %c0_247], %212 {strides = array<i32>} : memref<128x512xbf16, #tpu.memory_space<vmem>>, vector<16x32xbf16>,
    %c0_248 = arith.constant 0 : index
    %c3_249 = arith.constant 3 : index
    %c0_250 = arith.constant 0 : index
    %215 = tpu.strided_load %arg16[%c0_248, %c3_249, %c0_250] {strides = array<i32: 1, 2, 1>} : memref<2x32x32xf32, #tpu.memory_space<vmem>>, vector<2x8x32xf32>
    %216 = vector.shape_cast %215 : vector<2x8x32xf32> to vector<16x32xf32>
    %217 = arith.truncf %216 : vector<16x32xf32> to vector<16x32xbf16>
    %c0_251 = arith.constant 0 : index
    %c64_252 = arith.constant 64 : index
    %218 = vector.load %arg17[%c0_251, %c64_252] : memref<128x512xbf16, #tpu.memory_space<vmem>>, vector<16x32xbf16>
    tpu.vector_store %arg17[%c0_251, %c64_252], %217 {strides = array<i32>} : memref<128x512xbf16, #tpu.memory_space<vmem>>, vector<16x32xbf16>,
    %c16_253 = arith.constant 16 : index
    %c32_254 = arith.constant 32 : index
    %219 = vector.load %arg17[%c16_253, %c32_254] : memref<128x512xbf16, #tpu.memory_space<vmem>>, vector<16x32xbf16>
    tpu.vector_store %arg17[%c16_253, %c32_254], %217 {strides = array<i32>} : memref<128x512xbf16, #tpu.memory_space<vmem>>, vector<16x32xbf16>,
    %c0_255 = arith.constant 0 : index
    %c4_256 = arith.constant 4 : index
    %c0_257 = arith.constant 0 : index
    %220 = tpu.strided_load %arg16[%c0_255, %c4_256, %c0_257] {strides = array<i32: 1, 2, 1>} : memref<2x32x32xf32, #tpu.memory_space<vmem>>, vector<2x8x32xf32>
    %221 = vector.shape_cast %220 : vector<2x8x32xf32> to vector<16x32xf32>
    %222 = arith.truncf %221 : vector<16x32xf32> to vector<16x32xbf16>
    %c0_258 = arith.constant 0 : index
    %c96_259 = arith.constant 96 : index
    %223 = vector.load %arg17[%c0_258, %c96_259] : memref<128x512xbf16, #tpu.memory_space<vmem>>, vector<16x32xbf16>
    tpu.vector_store %arg17[%c0_258, %c96_259], %222 {strides = array<i32>} : memref<128x512xbf16, #tpu.memory_space<vmem>>, vector<16x32xbf16>,
    %c16_260 = arith.constant 16 : index
    %c64_261 = arith.constant 64 : index
    %224 = vector.load %arg17[%c16_260, %c64_261] : memref<128x512xbf16, #tpu.memory_space<vmem>>, vector<16x32xbf16>
    tpu.vector_store %arg17[%c16_260, %c64_261], %222 {strides = array<i32>} : memref<128x512xbf16, #tpu.memory_space<vmem>>, vector<16x32xbf16>,
    %c0_262 = arith.constant 0 : index
    %c5_263 = arith.constant 5 : index
    %c0_264 = arith.constant 0 : index
    %225 = tpu.strided_load %arg16[%c0_262, %c5_263, %c0_264] {strides = array<i32: 1, 2, 1>} : memref<2x32x32xf32, #tpu.memory_space<vmem>>, vector<2x8x32xf32>
    %226 = vector.shape_cast %225 : vector<2x8x32xf32> to vector<16x32xf32>
    %227 = arith.truncf %226 : vector<16x32xf32> to vector<16x32xbf16>
    %c0_265 = arith.constant 0 : index
    %c128_266 = arith.constant 128 : index
    %228 = vector.load %arg17[%c0_265, %c128_266] : memref<128x512xbf16, #tpu.memory_space<vmem>>, vector<16x32xbf16>
    tpu.vector_store %arg17[%c0_265, %c128_266], %227 {strides = array<i32>} : memref<128x512xbf16, #tpu.memory_space<vmem>>, vector<16x32xbf16>,
    %c16_267 = arith.constant 16 : index
    %c96_268 = arith.constant 96 : index
    %229 = vector.load %arg17[%c16_267, %c96_268] : memref<128x512xbf16, #tpu.memory_space<vmem>>, vector<16x32xbf16>
    tpu.vector_store %arg17[%c16_267, %c96_268], %227 {strides = array<i32>} : memref<128x512xbf16, #tpu.memory_space<vmem>>, vector<16x32xbf16>,
    %c0_269 = arith.constant 0 : index
    %c6_270 = arith.constant 6 : index
    %c0_271 = arith.constant 0 : index
    %230 = tpu.strided_load %arg16[%c0_269, %c6_270, %c0_271] {strides = array<i32: 1, 2, 1>} : memref<2x32x32xf32, #tpu.memory_space<vmem>>, vector<2x8x32xf32>
    %231 = vector.shape_cast %230 : vector<2x8x32xf32> to vector<16x32xf32>
    %232 = arith.truncf %231 : vector<16x32xf32> to vector<16x32xbf16>
    %c0_272 = arith.constant 0 : index
    %c160_273 = arith.constant 160 : index
    %233 = vector.load %arg17[%c0_272, %c160_273] : memref<128x512xbf16, #tpu.memory_space<vmem>>, vector<16x32xbf16>
    tpu.vector_store %arg17[%c0_272, %c160_273], %232 {strides = array<i32>} : memref<128x512xbf16, #tpu.memory_space<vmem>>, vector<16x32xbf16>,
    %c16_274 = arith.constant 16 : index
    %c128_275 = arith.constant 128 : index
    %234 = vector.load %arg17[%c16_274, %c128_275] : memref<128x512xbf16, #tpu.memory_space<vmem>>, vector<16x32xbf16>
    tpu.vector_store %arg17[%c16_274, %c128_275], %232 {strides = array<i32>} : memref<128x512xbf16, #tpu.memory_space<vmem>>, vector<16x32xbf16>,
    %c0_276 = arith.constant 0 : index
    %c7_277 = arith.constant 7 : index
    %c0_278 = arith.constant 0 : index
    %235 = tpu.strided_load %arg16[%c0_276, %c7_277, %c0_278] {strides = array<i32: 1, 2, 1>} : memref<2x32x32xf32, #tpu.memory_space<vmem>>, vector<2x8x32xf32>
    %236 = vector.shape_cast %235 : vector<2x8x32xf32> to vector<16x32xf32>
    %237 = arith.truncf %236 : vector<16x32xf32> to vector<16x32xbf16>
    %c0_279 = arith.constant 0 : index
    %c192_280 = arith.constant 192 : index
    %238 = vector.load %arg17[%c0_279, %c192_280] : memref<128x512xbf16, #tpu.memory_space<vmem>>, vector<16x32xbf16>
    tpu.vector_store %arg17[%c0_279, %c192_280], %237 {strides = array<i32>} : memref<128x512xbf16, #tpu.memory_space<vmem>>, vector<16x32xbf16>,
    %c16_281 = arith.constant 16 : index
    %c160_282 = arith.constant 160 : index
    %239 = vector.load %arg17[%c16_281, %c160_282] : memref<128x512xbf16, #tpu.memory_space<vmem>>, vector<16x32xbf16>
    tpu.vector_store %arg17[%c16_281, %c160_282], %237 {strides = array<i32>} : memref<128x512xbf16, #tpu.memory_space<vmem>>, vector<16x32xbf16>,
    %c0_283 = arith.constant 0 : index
    %c8_284 = arith.constant 8 : index
    %c0_285 = arith.constant 0 : index
    %240 = tpu.strided_load %arg16[%c0_283, %c8_284, %c0_285] {strides = array<i32: 1, 2, 1>} : memref<2x32x32xf32, #tpu.memory_space<vmem>>, vector<2x8x32xf32>
    %241 = vector.shape_cast %240 : vector<2x8x32xf32> to vector<16x32xf32>
    %242 = arith.truncf %241 : vector<16x32xf32> to vector<16x32xbf16>
    %c0_286 = arith.constant 0 : index
    %c224_287 = arith.constant 224 : index
    %243 = vector.load %arg17[%c0_286, %c224_287] : memref<128x512xbf16, #tpu.memory_space<vmem>>, vector<16x32xbf16>
    tpu.vector_store %arg17[%c0_286, %c224_287], %242 {strides = array<i32>} : memref<128x512xbf16, #tpu.memory_space<vmem>>, vector<16x32xbf16>,
    %c16_288 = arith.constant 16 : index
    %c192_289 = arith.constant 192 : index
    %244 = vector.load %arg17[%c16_288, %c192_289] : memref<128x512xbf16, #tpu.memory_space<vmem>>, vector<16x32xbf16>
    tpu.vector_store %arg17[%c16_288, %c192_289], %242 {strides = array<i32>} : memref<128x512xbf16, #tpu.memory_space<vmem>>, vector<16x32xbf16>,
    %c0_290 = arith.constant 0 : index
    %c9_291 = arith.constant 9 : index
    %c0_292 = arith.constant 0 : index
    %245 = tpu.strided_load %arg16[%c0_290, %c9_291, %c0_292] {strides = array<i32: 1, 2, 1>} : memref<2x32x32xf32, #tpu.memory_space<vmem>>, vector<2x8x32xf32>
    %246 = vector.shape_cast %245 : vector<2x8x32xf32> to vector<16x32xf32>
    %247 = arith.truncf %246 : vector<16x32xf32> to vector<16x32xbf16>
    %c0_293 = arith.constant 0 : index
    %c256 = arith.constant 256 : index
    %248 = vector.load %arg17[%c0_293, %c256] : memref<128x512xbf16, #tpu.memory_space<vmem>>, vector<16x32xbf16>
    tpu.vector_store %arg17[%c0_293, %c256], %247 {strides = array<i32>} : memref<128x512xbf16, #tpu.memory_space<vmem>>, vector<16x32xbf16>,
    %c16_294 = arith.constant 16 : index
    %c224_295 = arith.constant 224 : index
    %249 = vector.load %arg17[%c16_294, %c224_295] : memref<128x512xbf16, #tpu.memory_space<vmem>>, vector<16x32xbf16>
    tpu.vector_store %arg17[%c16_294, %c224_295], %247 {strides = array<i32>} : memref<128x512xbf16, #tpu.memory_space<vmem>>, vector<16x32xbf16>,
    %c0_296 = arith.constant 0 : index
    %c10_297 = arith.constant 10 : index
    %c0_298 = arith.constant 0 : index
    %250 = tpu.strided_load %arg16[%c0_296, %c10_297, %c0_298] {strides = array<i32: 1, 2, 1>} : memref<2x32x32xf32, #tpu.memory_space<vmem>>, vector<2x8x32xf32>
    %251 = vector.shape_cast %250 : vector<2x8x32xf32> to vector<16x32xf32>
    %252 = arith.truncf %251 : vector<16x32xf32> to vector<16x32xbf16>
    %c0_299 = arith.constant 0 : index
    %c288 = arith.constant 288 : index
    %253 = vector.load %arg17[%c0_299, %c288] : memref<128x512xbf16, #tpu.memory_space<vmem>>, vector<16x32xbf16>
    tpu.vector_store %arg17[%c0_299, %c288], %252 {strides = array<i32>} : memref<128x512xbf16, #tpu.memory_space<vmem>>, vector<16x32xbf16>,
    %c16_300 = arith.constant 16 : index
    %c256_301 = arith.constant 256 : index
    %254 = vector.load %arg17[%c16_300, %c256_301] : memref<128x512xbf16, #tpu.memory_space<vmem>>, vector<16x32xbf16>
    tpu.vector_store %arg17[%c16_300, %c256_301], %252 {strides = array<i32>} : memref<128x512xbf16, #tpu.memory_space<vmem>>, vector<16x32xbf16>,
    %c0_302 = arith.constant 0 : index
    %c11_303 = arith.constant 11 : index
    %c0_304 = arith.constant 0 : index
    %255 = tpu.strided_load %arg16[%c0_302, %c11_303, %c0_304] {strides = array<i32: 1, 2, 1>} : memref<2x32x32xf32, #tpu.memory_space<vmem>>, vector<2x8x32xf32>
    %256 = vector.shape_cast %255 : vector<2x8x32xf32> to vector<16x32xf32>
    %257 = arith.truncf %256 : vector<16x32xf32> to vector<16x32xbf16>
    %c0_305 = arith.constant 0 : index
    %c320 = arith.constant 320 : index
    %258 = vector.load %arg17[%c0_305, %c320] : memref<128x512xbf16, #tpu.memory_space<vmem>>, vector<16x32xbf16>
    tpu.vector_store %arg17[%c0_305, %c320], %257 {strides = array<i32>} : memref<128x512xbf16, #tpu.memory_space<vmem>>, vector<16x32xbf16>,
    %c16_306 = arith.constant 16 : index
    %c288_307 = arith.constant 288 : index
    %259 = vector.load %arg17[%c16_306, %c288_307] : memref<128x512xbf16, #tpu.memory_space<vmem>>, vector<16x32xbf16>
    tpu.vector_store %arg17[%c16_306, %c288_307], %257 {strides = array<i32>} : memref<128x512xbf16, #tpu.memory_space<vmem>>, vector<16x32xbf16>,
    %c0_308 = arith.constant 0 : index
    %c12_309 = arith.constant 12 : index
    %c0_310 = arith.constant 0 : index
    %260 = tpu.strided_load %arg16[%c0_308, %c12_309, %c0_310] {strides = array<i32: 1, 2, 1>} : memref<2x32x32xf32, #tpu.memory_space<vmem>>, vector<2x8x32xf32>
    %261 = vector.shape_cast %260 : vector<2x8x32xf32> to vector<16x32xf32>
    %262 = arith.truncf %261 : vector<16x32xf32> to vector<16x32xbf16>
    %c0_311 = arith.constant 0 : index
    %c352 = arith.constant 352 : index
    %263 = vector.load %arg17[%c0_311, %c352] : memref<128x512xbf16, #tpu.memory_space<vmem>>, vector<16x32xbf16>
    tpu.vector_store %arg17[%c0_311, %c352], %262 {strides = array<i32>} : memref<128x512xbf16, #tpu.memory_space<vmem>>, vector<16x32xbf16>,
    %c16_312 = arith.constant 16 : index
    %c320_313 = arith.constant 320 : index
    %264 = vector.load %arg17[%c16_312, %c320_313] : memref<128x512xbf16, #tpu.memory_space<vmem>>, vector<16x32xbf16>
    tpu.vector_store %arg17[%c16_312, %c320_313], %262 {strides = array<i32>} : memref<128x512xbf16, #tpu.memory_space<vmem>>, vector<16x32xbf16>,
    %c0_314 = arith.constant 0 : index
    %c13_315 = arith.constant 13 : index
    %c0_316 = arith.constant 0 : index
    %265 = tpu.strided_load %arg16[%c0_314, %c13_315, %c0_316] {strides = array<i32: 1, 2, 1>} : memref<2x32x32xf32, #tpu.memory_space<vmem>>, vector<2x8x32xf32>
    %266 = vector.shape_cast %265 : vector<2x8x32xf32> to vector<16x32xf32>
    %267 = arith.truncf %266 : vector<16x32xf32> to vector<16x32xbf16>
    %c0_317 = arith.constant 0 : index
    %c384 = arith.constant 384 : index
    %268 = vector.load %arg17[%c0_317, %c384] : memref<128x512xbf16, #tpu.memory_space<vmem>>, vector<16x32xbf16>
    tpu.vector_store %arg17[%c0_317, %c384], %267 {strides = array<i32>} : memref<128x512xbf16, #tpu.memory_space<vmem>>, vector<16x32xbf16>,
    %c16_318 = arith.constant 16 : index
    %c352_319 = arith.constant 352 : index
    %269 = vector.load %arg17[%c16_318, %c352_319] : memref<128x512xbf16, #tpu.memory_space<vmem>>, vector<16x32xbf16>
    tpu.vector_store %arg17[%c16_318, %c352_319], %267 {strides = array<i32>} : memref<128x512xbf16, #tpu.memory_space<vmem>>, vector<16x32xbf16>,
    %c0_320 = arith.constant 0 : index
    %c14_321 = arith.constant 14 : index
    %c0_322 = arith.constant 0 : index
    %270 = tpu.strided_load %arg16[%c0_320, %c14_321, %c0_322] {strides = array<i32: 1, 2, 1>} : memref<2x32x32xf32, #tpu.memory_space<vmem>>, vector<2x8x32xf32>
    %271 = vector.shape_cast %270 : vector<2x8x32xf32> to vector<16x32xf32>
    %272 = arith.truncf %271 : vector<16x32xf32> to vector<16x32xbf16>
    %c0_323 = arith.constant 0 : index
    %c416 = arith.constant 416 : index
    %273 = vector.load %arg17[%c0_323, %c416] : memref<128x512xbf16, #tpu.memory_space<vmem>>, vector<16x32xbf16>
    tpu.vector_store %arg17[%c0_323, %c416], %272 {strides = array<i32>} : memref<128x512xbf16, #tpu.memory_space<vmem>>, vector<16x32xbf16>,
    %c16_324 = arith.constant 16 : index
    %c384_325 = arith.constant 384 : index
    %274 = vector.load %arg17[%c16_324, %c384_325] : memref<128x512xbf16, #tpu.memory_space<vmem>>, vector<16x32xbf16>
    tpu.vector_store %arg17[%c16_324, %c384_325], %272 {strides = array<i32>} : memref<128x512xbf16, #tpu.memory_space<vmem>>, vector<16x32xbf16>,
    %c0_326 = arith.constant 0 : index
    %c15_327 = arith.constant 15 : index
    %c0_328 = arith.constant 0 : index
    %275 = tpu.strided_load %arg16[%c0_326, %c15_327, %c0_328] {strides = array<i32: 1, 2, 1>} : memref<2x32x32xf32, #tpu.memory_space<vmem>>, vector<2x8x32xf32>
    %276 = vector.shape_cast %275 : vector<2x8x32xf32> to vector<16x32xf32>
    %277 = arith.truncf %276 : vector<16x32xf32> to vector<16x32xbf16>
    %c0_329 = arith.constant 0 : index
    %c448 = arith.constant 448 : index
    %278 = vector.load %arg17[%c0_329, %c448] : memref<128x512xbf16, #tpu.memory_space<vmem>>, vector<16x32xbf16>
    tpu.vector_store %arg17[%c0_329, %c448], %277 {strides = array<i32>} : memref<128x512xbf16, #tpu.memory_space<vmem>>, vector<16x32xbf16>,
    %c16_330 = arith.constant 16 : index
    %c416_331 = arith.constant 416 : index
    %279 = vector.load %arg17[%c16_330, %c416_331] : memref<128x512xbf16, #tpu.memory_space<vmem>>, vector<16x32xbf16>
    tpu.vector_store %arg17[%c16_330, %c416_331], %277 {strides = array<i32>} : memref<128x512xbf16, #tpu.memory_space<vmem>>, vector<16x32xbf16>,
    %c0_332 = arith.constant 0 : index
    %c16_333 = arith.constant 16 : index
    %c0_334 = arith.constant 0 : index
    %280 = tpu.strided_load %arg16[%c0_332, %c16_333, %c0_334] {strides = array<i32: 1, 2, 1>} : memref<2x32x32xf32, #tpu.memory_space<vmem>>, vector<2x8x32xf32>
    %281 = vector.shape_cast %280 : vector<2x8x32xf32> to vector<16x32xf32>
    %282 = arith.truncf %281 : vector<16x32xf32> to vector<16x32xbf16>
    %c16_335 = arith.constant 16 : index
    %c448_336 = arith.constant 448 : index
    %283 = vector.load %arg17[%c16_335, %c448_336] : memref<128x512xbf16, #tpu.memory_space<vmem>>, vector<16x32xbf16>
    tpu.vector_store %arg17[%c16_335, %c448_336], %282 {strides = array<i32>} : memref<128x512xbf16, #tpu.memory_space<vmem>>, vector<16x32xbf16>,
    %c0_337 = arith.constant 0 : index
    %c0_338 = arith.constant 0 : index
    %284 = vector.load %arg17[%c0_337, %c0_338] : memref<128x512xbf16, #tpu.memory_space<vmem>>, vector<32x512xbf16>
    %c0_339 = arith.constant 0 : index
    %c0_340 = arith.constant 0 : index
    %285 = vector.load %arg7[%c0_339, %c0_340] : memref<512x32xbf16, #tpu.memory_space<vmem>>, vector<512x32xbf16>
    %cst_341 = arith.constant dense<0.000000e+00> : vector<32x32xf32>
    %286 = tpu.matmul %284, %285, %cst_341 {dimension_numbers = #tpu.dot_dimension_numbers<[1], [0], [0], [1], [0, 0, 1, 1], [], []>} : vector<32x512xbf16>, vector<512x32xbf16>, vector<32x32xf32> -> vector<32x32xf32>
    %c0_342 = arith.constant 0 : index
    %c0_343 = arith.constant 0 : index
    %287 = vector.load %arg8[%c0_342, %c0_343] : memref<1x32xf32, #tpu.memory_space<vmem>>, vector<1x32xf32>
    %288 = vector.broadcast %287 : vector<1x32xf32> to vector<32x32xf32>
    %289 = arith.addf %286, %288 : vector<32x32xf32>
    %cst_344 = arith.constant 0.000000e+00 : f32
    %290 = vector.broadcast %cst_344 : f32 to vector<32x32xf32>
    %291 = arith.maximumf %289, %290 : vector<32x32xf32>
    %292 = vector.extract_strided_slice %291 {offsets = [0, 0], sizes = [16, 32], strides = [1, 1]} : vector<32x32xf32> to vector<16x32xf32>
    %293 = vector.extract_strided_slice %291 {offsets = [16, 0], sizes = [16, 32], strides = [1, 1]} : vector<32x32xf32> to vector<16x32xf32>
    %294 = arith.maximumf %292, %293 : vector<16x32xf32>
    %295 = vector.shape_cast %294 : vector<16x32xf32> to vector<2x8x32xf32>
    %296 = vector.extract_strided_slice %295 {offsets = [0, 0, 0], sizes = [2, 1, 32], strides = [1, 1, 1]} : vector<2x8x32xf32> to vector<2x1x32xf32>
    %297 = vector.shape_cast %296 : vector<2x1x32xf32> to vector<2x32xf32>
    %298 = vector.extract_strided_slice %295 {offsets = [0, 1, 0], sizes = [2, 1, 32], strides = [1, 1, 1]} : vector<2x8x32xf32> to vector<2x1x32xf32>
    %299 = vector.shape_cast %298 : vector<2x1x32xf32> to vector<2x32xf32>
    %300 = vector.extract_strided_slice %295 {offsets = [0, 2, 0], sizes = [2, 1, 32], strides = [1, 1, 1]} : vector<2x8x32xf32> to vector<2x1x32xf32>
    %301 = vector.shape_cast %300 : vector<2x1x32xf32> to vector<2x32xf32>
    %302 = vector.extract_strided_slice %295 {offsets = [0, 3, 0], sizes = [2, 1, 32], strides = [1, 1, 1]} : vector<2x8x32xf32> to vector<2x1x32xf32>
    %303 = vector.shape_cast %302 : vector<2x1x32xf32> to vector<2x32xf32>
    %304 = vector.extract_strided_slice %295 {offsets = [0, 4, 0], sizes = [2, 1, 32], strides = [1, 1, 1]} : vector<2x8x32xf32> to vector<2x1x32xf32>
    %305 = vector.shape_cast %304 : vector<2x1x32xf32> to vector<2x32xf32>
    %306 = vector.extract_strided_slice %295 {offsets = [0, 5, 0], sizes = [2, 1, 32], strides = [1, 1, 1]} : vector<2x8x32xf32> to vector<2x1x32xf32>
    %307 = vector.shape_cast %306 : vector<2x1x32xf32> to vector<2x32xf32>
    %308 = vector.extract_strided_slice %295 {offsets = [0, 6, 0], sizes = [2, 1, 32], strides = [1, 1, 1]} : vector<2x8x32xf32> to vector<2x1x32xf32>
    %309 = vector.shape_cast %308 : vector<2x1x32xf32> to vector<2x32xf32>
    %310 = vector.extract_strided_slice %295 {offsets = [0, 7, 0], sizes = [2, 1, 32], strides = [1, 1, 1]} : vector<2x8x32xf32> to vector<2x1x32xf32>
    %311 = vector.shape_cast %310 : vector<2x1x32xf32> to vector<2x32xf32>
    %312 = tpu.concatenate %297, %299, %301, %303, %305, %307, %309, %311 in 1 : vector<2x32xf32>, vector<2x32xf32>, vector<2x32xf32>, vector<2x32xf32>, vector<2x32xf32>, vector<2x32xf32>, vector<2x32xf32>, vector<2x32xf32> -> vector<2x256xf32>
    %313 = arith.truncf %312 : vector<2x256xf32> to vector<2x256xbf16>
    %c0_345 = arith.constant 0 : index
    %c0_346 = arith.constant 0 : index
    %314 = vector.load %arg9[%c0_345, %c0_346] : memref<256x32xbf16, #tpu.memory_space<vmem>>, vector<256x32xbf16>
    %cst_347 = arith.constant dense<0.000000e+00> : vector<2x32xf32>
    %315 = tpu.matmul %313, %314, %cst_347 {dimension_numbers = #tpu.dot_dimension_numbers<[1], [0], [0], [1], [0, 0, 1, 1], [], []>} : vector<2x256xbf16>, vector<256x32xbf16>, vector<2x32xf32> -> vector<2x32xf32>
    %c0_348 = arith.constant 0 : index
    %c0_349 = arith.constant 0 : index
    %316 = vector.load %arg10[%c0_348, %c0_349] : memref<1x32xf32, #tpu.memory_space<vmem>>, vector<1x32xf32>
    %317 = vector.broadcast %316 : vector<1x32xf32> to vector<2x32xf32>
    %318 = arith.addf %315, %317 : vector<2x32xf32>
    %cst_350 = arith.constant 0.000000e+00 : f32
    %319 = vector.broadcast %cst_350 : f32 to vector<2x32xf32>
    %320 = arith.maximumf %318, %319 : vector<2x32xf32>
    %c0_351 = arith.constant 0 : index
    %c0_352 = arith.constant 0 : index
    %321 = vector.load %arg11[%c0_351, %c0_352] : memref<1x32xf32, #tpu.memory_space<vmem>>, vector<1x32xf32>
    %322 = vector.broadcast %321 : vector<1x32xf32> to vector<2x32xf32>
    %323 = arith.mulf %320, %322 : vector<2x32xf32>
    %cst_353 = arith.constant dense<0.000000e+00> : vector<2xf32>
    %324 = vector.multi_reduction <add>, %323, %cst_353 [1] : vector<2x32xf32> to vector<2xf32>
    %325 = vector.shape_cast %324 : vector<2xf32> to vector<2x1xf32>
    %c0_354 = arith.constant 0 : index
    %c0_355 = arith.constant 0 : index
    %326 = vector.load %arg12[%c0_354, %c0_355] : memref<1x1xf32, #tpu.memory_space<vmem>>, vector<1x1xf32>
    %327 = vector.broadcast %326 : vector<1x1xf32> to vector<2x1xf32>
    %328 = arith.addf %325, %327 : vector<2x1xf32>
    %c0_356 = arith.constant 0 : index
    %c0_357 = arith.constant 0 : index
    %329 = vector.load %arg13[%c0_356, %c0_357] : memref<2x1xf32, #tpu.memory_space<vmem>>, vector<2x1xf32>
    tpu.vector_store %arg13[%c0_356, %c0_357], %328 {strides = array<i32>} : memref<2x1xf32, #tpu.memory_space<vmem>>, vector<2x1xf32>,
    return
  }
}

</mosaic_0001>

<bundles_post_ra>
// kernel: _lambda_.1
= control target key start
LH: loop header
LB: loop body
LE: loop exit
PB: predicated region body
PF: predicated region fallthrough
CT: control target
= control target key end

     0   :  { %s4598_s0 = inlined_call_operand.vmem [shape: bf16[256,15], index: 0, kind: input, shape index: {}]   ;;  %s4599_s1 = inlined_call_operand.vmem [shape: bf16[15,8], index: 1, kind: input, shape index: {}]   ;;  %s4600_s2 = inlined_call_operand.vmem [shape: f32[1,8], index: 2, kind: input, shape index: {}]   ;;  %s4601_s3 = inlined_call_operand.hbm [shape: bf16[128,16], index: 3, kind: input, shape index: {}]   ;;  %s4602_s4 = inlined_call_operand.vmem [shape: f32[1,16], index: 4, kind: input, shape index: {}]   ;;  %s4603_s5 = inlined_call_operand.vmem [shape: bf16[256,32], index: 5, kind: input, shape index: {}]   ;;  %s4604_s6 = inlined_call_operand.vmem [shape: f32[1,32], index: 6, kind: input, shape index: {}]   ;;  %s4605_s7 = inlined_call_operand.vmem [shape: bf16[512,32], index: 7, kind: input, shape index: {}]   ;;  %s4606_s8 = inlined_call_operand.vmem [shape: f32[1,32], index: 8, kind: input, shape index: {}]   ;;  %s4607_s9 = inlined_call_operand.hbm [shape: bf16[256,32], index: 9, kind: input, shape index: {}]   ;;  %s4608_s10 = inlined_call_operand.vmem [shape: f32[1,32], index: 10, kind: input, shape index: {}]   ;;  %s4609_s11 = inlined_call_operand.vmem [shape: f32[1,32], index: 11, kind: input, shape index: {}]   ;;  %s4610_s12 = inlined_call_operand.<no memory space> [shape: f32[1,1], index: 12, kind: input, shape index: {}]   ;;  %s4611_s13 = inlined_call_operand.vmem [shape: f32[2,1], index: 13, kind: output, shape index: {}]  }
   0x1   :  { %v18_v0 = vstv %s4610_s12 }
   0x2   :  { %19 = vst [vmem:[#allocation6] sm:$0x1] %v18_v0 }
   0x3   :  { %20 = vsyncpa [#allocation8], 0 }
   0x4   :  { %21 = vsyncpa [#allocation10], 0  ;;  %s3553_s27 = smov [#allocation7]   ;;  %s3505_s14 = scalar_lea.hbm %s4601_s3, 1024 }
   0x5   :  { %s33_s28 = sshll.u32 %s3553_s27, 4  ;;  %p3506_p0 = scmp.ne.s32.totalorder %s4601_s3, %s3505_s14  ;;  %s34_s28 = int_to_ptr.vmem [resolvable:$true] %s33_s28 }
   0x6   :  { %p3509_p1 = scmp.lt.u32.totalorder %s3505_s14, %s4601_s3 }
   0x8   :  { %p3511_p2 = pnand %p3509_p1, %p3506_p0 }
   0xa   :  { %3514 = shalt.err (!%p3511_p2)
}
   0xb   :  { %s3515_s12 = scalar_lea.vmem %s34_s28, 1024  ;;  %p3520_p4 = scmp.lt.s32.totalorder %s34_s28, %s34_s28 }
   0xc   :  { %p3516_p3 = scmp.ne.s32.totalorder %s34_s28, %s3515_s12  ;;  %p3521_p5 = scmp.lt.s32.totalorder %s3515_s12, %s3515_s12 }
   0xe   :  { %p3522_p6 = por %p3521_p5, %p3520_p4 }
  0x10   :  { %p3523_p7 = pnand %p3522_p6, %p3516_p3 }
  0x12   :  { %3526 = shalt.err (!%p3523_p7)
}
  0x13   :  { %s3554_s19 = smov 64   ;;  %s3555_s20 = smov 4  }
  0x14   :  { %39 = dma.hbm_to_vmem [thread:$0]  %s4601_s3, 1024, %s34_s28, [#allocation8], %s3554_s19, %s3554_s19, %s3555_s20  }
  0x15   :  { %s3556_s23 = smov [#allocation9]   ;;  %s3527_s27 = scalar_lea.hbm %s4607_s9, 2048 }
  0x16   :  { %s55_s24 = sshll.u32 %s3556_s23, 4  ;;  %p3528_p8 = scmp.ne.s32.totalorder %s4607_s9, %s3527_s27  ;;  %s56_s24 = int_to_ptr.vmem [resolvable:$true] %s55_s24 }
  0x17   :  { %p3531_p9 = scmp.lt.u32.totalorder %s3527_s27, %s4607_s9 }
  0x19   :  { %p3533_p10 = pnand %p3531_p9, %p3528_p8 }
  0x1b   :  { %3536 = shalt.err (!%p3533_p10)
}
  0x1c   :  { %s3537_s16 = scalar_lea.vmem %s56_s24, 2048  ;;  %p3542_p12 = scmp.lt.s32.totalorder %s56_s24, %s56_s24 }
  0x1d   :  { %p3538_p11 = scmp.ne.s32.totalorder %s56_s24, %s3537_s16  ;;  %p3543_p13 = scmp.lt.s32.totalorder %s3537_s16, %s3537_s16 }
  0x1f   :  { %p3544_p0 = por %p3543_p13, %p3542_p12 }
  0x21   :  { %p3545_p1 = pnand %p3544_p0, %p3538_p11 }
  0x23   :  { %3548 = shalt.err (!%p3545_p1)
}
  0x24   :  { %61 = dma.hbm_to_vmem [thread:$0]  %s4607_s9, 2048, %s56_s24, [#allocation10], %s3554_s19, %s3554_s19, %s3555_s20  }
  0x25   :  { %3549 = dma.done.wait [#allocation8], 1024  }
  0x26   :  { %3550 = vsyncadd [#allocation8], 4294966272 }
  0x27   :  { %3551 = dma.done.wait [#allocation10], 2048  }
  0x28   :  { %3552 = vsyncadd [#allocation10], 4294965248  ;;  %vm297_vm0 = vcmask 1046528   ;;  %v3557_v1 = vmov 0   ;;  %vm298_vm1 = vcmask 1047552   ;;  %v3558_v2 = vmov 65535  }
  0x29   :  { %75 = vst [vmem:[#allocation5] sm:$0xff] %v3557_v1  ;;  %76 = vst [vmem:[#allocation5 + $0x8] sm:$0xff] %v3557_v1  ;;  %v299_v3 = vsel %vm297_vm0, 4294967295, %v3558_v2  ;;  %v3416_v5 = vld [vmem:[%s4599_s1] sm:$0xff]   ;;  %vm248_vm2 = vcmask 121856   ;;  %v3418_v8 = vld [vmem:[%s4598_s0 + $0x8] sm:$0xff]  }
  0x2a   :  { %77 = vst [vmem:[#allocation5 + $0x10] sm:$0xff] %v3557_v1  ;;  %78 = vst [vmem:[#allocation5 + $0x18] sm:$0xff] %v3557_v1  ;;  %v300_v4 = vsel %vm298_vm1, %v299_v3, 0  ;;  %v3417_v6 = vld [vmem:[%s4598_s0] sm:$0xff]   ;;  %v3419_v9 = vld [vmem:[%s4598_s0 + $0x10] sm:$0xff]   ;;  %vm107_vm3 = vcmask 64512  }
  0x2b   :  { %79 = vst [vmem:[#allocation5 + $0x20] sm:$0xff] %v3557_v1  ;;  %80 = vst [vmem:[#allocation5 + $0x28] sm:$0xff] %v3557_v1  ;;  %v302_v7 = vand.u32 %v3416_v5, %v300_v4  ;;  %3317 = vmatprep.mubr.msk.bf16.mxu0 %vm248_vm2, %v3417_v6  ;;  %v3420_v10 = vld [vmem:[%s4598_s0 + $0x18] sm:$0xff]   ;;  %v3421_v11 = vld [vmem:[%s4598_s0 + $0x20] sm:$0xff]   ;;  %v3559_v23 = vmov 0.0   ;;  %s3561_s14 = smov 8  }
  0x2c   :  { %81 = vst [vmem:[#allocation5 + $0x30] sm:$0xff] %v3557_v1  ;;  %82 = vst [vmem:[#allocation5 + $0x38] sm:$0xff] %v3557_v1  ;;  %v3422_v12 = vld [vmem:[%s4598_s0 + $0x28] sm:$0xff]   ;;  %v3423_v13 = vld [vmem:[%s4598_s0 + $0x30] sm:$0xff]   ;;  %s3562_s15 = smov 24   ;;  %s3563_s16 = smov 32  }
  0x2d   :  { %83 = vst [vmem:[#allocation5 + $0x40] sm:$0xff] %v3557_v1  ;;  %84 = vst [vmem:[#allocation5 + $0x48] sm:$0xff] %v3557_v1  ;;  %3315 = vmatprep.subr.bf16.mxu0 %v302_v7  ;;  %v3424_v14 = vld [vmem:[%s4598_s0 + $0x38] sm:$0xff]   ;;  %v3425_v15 = vld [vmem:[%s4598_s0 + $0x40] sm:$0xff]   ;;  %s3564_s3 = smov 40   ;;  %s3565_s28 = smov 48  }
  0x2e   :  { %87 = vst [vmem:[#allocation5 + $0x60] sm:$0xff] %v3557_v1  ;;  %88 = vst [vmem:[#allocation5 + $0x68] sm:$0xff] %v3557_v1  ;;  %3316 = vmatpush3.bf16.msra.mxu0 %v302_v7  ;;  %v3426_v16 = vld [vmem:[%s4598_s0 + $0x48] sm:$0xff]   ;;  %v3427_v17 = vld [vmem:[%s4598_s0 + $0x50] sm:$0xff]   ;;  %s3566_s9 = smov 56   ;;  %s3567_s17 = smov 72  }
  0x2f   :  { %91 = vst [vmem:[#allocation5 + $0x80] sm:$0xff] %v3557_v1  ;;  %95 = vst [vmem:[#allocation5 + $0xa0] sm:$0xff] %v3557_v1  ;;  %v3428_v18 = vld [vmem:[%s4598_s0 + $0x58] sm:$0xff]   ;;  %v3429_v19 = vld [vmem:[%s4598_s0 + $0x60] sm:$0xff]   ;;  %s3568_s18 = smov 80   ;;  %s3569_s12 = smov 88  }
  0x30   :  { %99 = vst [vmem:[#allocation5 + $0xc0] sm:$0xff] %v3557_v1  ;;  %103 = vst [vmem:[#allocation5 + $0xe0] sm:$0xff] %v3557_v1  ;;  %v3430_v20 = vld [vmem:[%s4598_s0 + $0x68] sm:$0xff]   ;;  %v3431_v21 = vld [vmem:[%s4598_s0 + $0x70] sm:$0xff]   ;;  %s3570_s20 = smov 96   ;;  %s3571_s21 = smov 104  }
  0x31   :  { %3318 = vmatmul.mubr.msk.bf16.vlgmr.msra.gmra.mrb[0].mxu0 %vm248_vm2, %v3418_v8  ;;  %v3432_v22 = vld [vmem:[%s4598_s0 + $0x78] sm:$0xff]   ;;  %108 = vst.msk [vmem:[#allocation2] sm:$0xff] %vm107_vm3, %v3559_v23  ;;  %109 = vst.msk [vmem:[#allocation2 + $0x50] sm:$0xff] %vm107_vm3, %v3559_v23  ;;  %v3765_v40 = vld [vmem:[%s4600_s2] ss:$0 sm:$0xff]  ;;  %s3560_s2 = smov 16  }
  0x32   :  { %3321 = vmatprep.mubr.msk.bf16.mxu0 %vm248_vm2, %v3419_v9  ;;  %110 = vst.msk [vmem:[#allocation2 + $0x48] sm:$0xff] %vm107_vm3, %v3559_v23  ;;  %111 = vst.msk [vmem:[#allocation2 + $0x98] sm:$0xff] %vm107_vm3, %v3559_v23  ;;  %s3572_s22 = smov 112   ;;  %vm589_vm4 = vcmask 130112   ;;  %vm634_vm5 = vcmask 195712   ;;  %vm691_vm6 = vcmask 261312  }
  0x33   :  { %vm748_vm7 = vcmask 326912   ;;  %vm805_vm8 = vcmask 392512   ;;  %vm862_vm9 = vcmask 458112   ;;  %vm919_vm10 = vcmask 523712  }
  0x34   :  { %vm976_vm11 = vcmask 589312   ;;  %vm1033_vm12 = vcmask 654912   ;;  %vm1090_vm13 = vcmask 720512   ;;  %vm1147_vm14 = vcmask 786112  }
  0x35   :  { %vm1204_vm15 = vcmask 851712   ;;  %vm1261_vm0 = vcmask 917312   ;;  %vm1318_vm1 = vcmask 982912  }
  0x39   :  { %3322 = vmatmul.mubr.msk.bf16.gmra.mrb[4].mxu0 %vm248_vm2, %v3420_v10 }
  0x3a   :  { %3325 = vmatprep.mubr.msk.bf16.mxu0 %vm248_vm2, %v3421_v11 }
  0x41   :  { %3326 = vmatmul.mubr.msk.bf16.gmra.mrb[8].mxu0 %vm248_vm2, %v3422_v12 }
  0x42   :  { %3329 = vmatprep.mubr.msk.bf16.mxu0 %vm248_vm2, %v3423_v13 }
  0x49   :  { %3330 = vmatmul.mubr.msk.bf16.gmra.mrb[12].mxu0 %vm248_vm2, %v3424_v14 }
  0x4a   :  { %3333 = vmatprep.mubr.msk.bf16.mxu0 %vm248_vm2, %v3425_v15 }
  0x51   :  { %3334 = vmatmul.mubr.msk.bf16.gmra.mrb[16].mxu0 %vm248_vm2, %v3426_v16 }
  0x52   :  { %3337 = vmatprep.mubr.msk.bf16.mxu0 %vm248_vm2, %v3427_v17 }
  0x59   :  { %3338 = vmatmul.mubr.msk.bf16.gmra.mrb[20].mxu0 %vm248_vm2, %v3428_v18 }
  0x5a   :  { %3341 = vmatprep.mubr.msk.bf16.mxu0 %vm248_vm2, %v3429_v19 }
  0x61   :  { %3342 = vmatmul.mubr.msk.bf16.gmra.mrb[24].mxu0 %vm248_vm2, %v3430_v20 }
  0x62   :  { %3345 = vmatprep.mubr.msk.bf16.mxu0 %vm248_vm2, %v3431_v21 }
  0x69   :  { %3346 = vmatmul.mubr.msk.bf16.gmra.mrb[28].mxu0 %vm248_vm2, %v3432_v22  ;;  %vm112_vm2 = vcmask 130048  }
  0x6a   :  { %113 = vst.msk [vmem:[#allocation3] sm:$0xff] %vm112_vm2, %v3559_v23  ;;  %114 = vst.msk [vmem:[#allocation3 + $0x30] sm:$0xff] %vm112_vm2, %v3559_v23 }
  0x6b   :  { %115 = vst.msk [vmem:[#allocation3 + $0x28] sm:$0xff] %vm112_vm2, %v3559_v23  ;;  %116 = vst.msk [vmem:[#allocation3 + $0x58] sm:$0xff] %vm112_vm2, %v3559_v23 }
 0x104   :  { %v3319_v24 = vpop.f32.mrb[0].mxu0 }
 0x105   :  { %v338_v25 = vpop.f32.mrb[1].mxu0  ;;  %v347_v41 = vadd.f32 %v3319_v24, %v3765_v40 }
 0x106   :  { %v3320_v26 = vpop.f32.mrb[2].mxu0  ;;  %v339_v42 = vadd.f32 %v3765_v40, %v338_v25 }
 0x107   :  { %v341_v27 = vpop.f32.mrb[3].mxu0  ;;  %v350_v44 = vadd.f32 %v3320_v26, %v3765_v40  ;;  %v467_v50 = vmax.f32 %v347_v41, 0.0 }
 0x108   :  { %v342_v47 = vadd.f32 %v3765_v40, %v341_v27  ;;  %v465_v54 = vmax.f32 %v339_v42, 0.0 }
 0x109   :  { %v468_v57 = vmax.f32 %v350_v44, 0.0 }
 0x10a   :  { %v466_v60 = vmax.f32 %v342_v47, 0.0 }
 0x10c   :  { %v3323_v28 = vpop.f32.mrb[4].mxu0 }
 0x10d   :  { %v354_v29 = vpop.f32.mrb[5].mxu0  ;;  %v363_v63 = vadd.f32 %v3323_v28, %v3765_v40 }
 0x10e   :  { %v3324_v30 = vpop.f32.mrb[6].mxu0  ;;  %v355_v1 = vadd.f32 %v3765_v40, %v354_v29 }
 0x10f   :  { %v357_v31 = vpop.f32.mrb[7].mxu0  ;;  %v366_v4 = vadd.f32 %v3324_v30, %v3765_v40  ;;  %v471_v10 = vmax.f32 %v363_v63, 0.0 }
 0x110   :  { %v358_v7 = vadd.f32 %v3765_v40, %v357_v31  ;;  %v469_v14 = vmax.f32 %v355_v1, 0.0 }
 0x111   :  { %v472_v17 = vmax.f32 %v366_v4, 0.0 }
 0x112   :  { %v470_v20 = vmax.f32 %v358_v7, 0.0 }
 0x114   :  { %v3327_v32 = vpop.f32.mrb[8].mxu0 }
 0x115   :  { %v370_v33 = vpop.f32.mrb[9].mxu0  ;;  %v379_v24 = vadd.f32 %v3327_v32, %v3765_v40 }
 0x116   :  { %v3750_v34 = vpop.f32.mrb[10].mxu0  ;;  %v371_v26 = vadd.f32 %v3765_v40, %v370_v33 }
 0x117   :  { %v3752_v35 = vpop.f32.mrb[11].mxu0  ;;  %v382_v29 = vadd.f32 %v3750_v34, %v3765_v40  ;;  %v475_v47 = vmax.f32 %v379_v24, 0.0 }
 0x118   :  { %v374_v32 = vadd.f32 %v3765_v40, %v3752_v35 }
 0x11c   :  { %v3754_v36 = vpop.f32.mrb[12].mxu0 }
 0x11d   :  { %v3756_v37 = vpop.f32.mrb[13].mxu0 }
 0x11e   :  { %v3758_v38 = vpop.f32.mrb[14].mxu0 }
 0x11f   :  { %v3760_v39 = vpop.f32.mrb[15].mxu0 }
 0x124   :  { %v3335_v43 = vpop.f32.mrb[16].mxu0 }
 0x125   :  { %v411_v45 = vadd.f32 %v3335_v43, %v3765_v40  ;;  %v402_v46 = vpop.f32.mrb[17].mxu0 }
 0x126   :  { %v403_v48 = vadd.f32 %v3765_v40, %v402_v46  ;;  %v3336_v49 = vpop.f32.mrb[18].mxu0 }
 0x127   :  { %v483_v51 = vmax.f32 %v411_v45, 0.0  ;;  %v414_v52 = vadd.f32 %v3336_v49, %v3765_v40  ;;  %v405_v53 = vpop.f32.mrb[19].mxu0 }
 0x128   :  { %v481_v55 = vmax.f32 %v403_v48, 0.0  ;;  %v406_v56 = vadd.f32 %v3765_v40, %v405_v53 }
 0x129   :  { %v499_v58 = vmax.f32 %v467_v50, %v483_v51  ;;  %v484_v59 = vmax.f32 %v414_v52, 0.0  ;;  %v473_v51 = vmax.f32 %v371_v26, 0.0 }
 0x12a   :  { %v497_v61 = vmax.f32 %v465_v54, %v481_v55  ;;  %v482_v62 = vmax.f32 %v406_v56, 0.0  ;;  %v476_v55 = vmax.f32 %v382_v29, 0.0 }
 0x12b   :  { %515 = vst.msk [vmem:[#allocation2 + $0x18] sm:$0xff] %vm107_vm3, %v499_v58  ;;  %v500_v0 = vmax.f32 %v468_v57, %v484_v59  ;;  %v474_v58 = vmax.f32 %v374_v32, 0.0 }
 0x12c   :  { %513 = vst.msk [vmem:[#allocation2 + $0x8] sm:$0xff] %vm107_vm3, %v497_v61  ;;  %v498_v2 = vmax.f32 %v466_v60, %v482_v62  ;;  %v3339_v3 = vpop.f32.mrb[20].mxu0  ;;  %v395_v61 = vadd.f32 %v3754_v36, %v3765_v40 }
 0x12d   :  { %516 = vst.msk [vmem:[#allocation2 + $0x20] sm:$0xff] %vm107_vm3, %v500_v0  ;;  %v427_v5 = vadd.f32 %v3339_v3, %v3765_v40  ;;  %v418_v6 = vpop.f32.mrb[21].mxu0  ;;  %v387_v0 = vadd.f32 %v3765_v40, %v3756_v37 }
 0x12e   :  { %514 = vst.msk [vmem:[#allocation2 + $0x10] sm:$0xff] %vm107_vm3, %v498_v2  ;;  %v419_v8 = vadd.f32 %v3765_v40, %v418_v6  ;;  %v3340_v9 = vpop.f32.mrb[22].mxu0 }
 0x12f   :  { %v487_v11 = vmax.f32 %v427_v5, 0.0  ;;  %v430_v12 = vadd.f32 %v3340_v9, %v3765_v40  ;;  %v421_v13 = vpop.f32.mrb[23].mxu0  ;;  %v398_v5 = vadd.f32 %v3758_v38, %v3765_v40  ;;  %v479_v38 = vmax.f32 %v395_v61, 0.0 }
 0x130   :  { %v485_v15 = vmax.f32 %v419_v8, 0.0  ;;  %v422_v16 = vadd.f32 %v3765_v40, %v421_v13  ;;  %v390_v8 = vadd.f32 %v3765_v40, %v3760_v39 }
 0x131   :  { %v503_v18 = vmax.f32 %v471_v10, %v487_v11  ;;  %v488_v19 = vmax.f32 %v430_v12, 0.0 }
 0x132   :  { %v501_v21 = vmax.f32 %v469_v14, %v485_v15  ;;  %v486_v22 = vmax.f32 %v422_v16, 0.0  ;;  %v477_v16 = vmax.f32 %v387_v0, 0.0  ;;  %v478_v24 = vmax.f32 %v390_v8, 0.0 }
 0x133   :  { %519 = vst.msk [vmem:[#allocation2 + $0x38] sm:$0xff] %vm107_vm3, %v503_v18  ;;  %v504_v25 = vmax.f32 %v472_v17, %v488_v19 }
 0x134   :  { %517 = vst.msk [vmem:[#allocation2 + $0x28] sm:$0xff] %vm107_vm3, %v501_v21  ;;  %v502_v27 = vmax.f32 %v470_v20, %v486_v22  ;;  %v3343_v28 = vpop.f32.mrb[24].mxu0  ;;  %v480_v20 = vmax.f32 %v398_v5, 0.0 }
 0x135   :  { %520 = vst.msk [vmem:[#allocation2 + $0x40] sm:$0xff] %vm107_vm3, %v504_v25  ;;  %v443_v30 = vadd.f32 %v3343_v28, %v3765_v40  ;;  %v434_v31 = vpop.f32.mrb[25].mxu0  ;;  %v599_v41 = vld [vmem:[#allocation2 + $0x3] ss:$2 sm:$0xff]  ;;  %v601_v42 = vld [vmem:[#allocation2 + $0x13] ss:$2 sm:$0xff] }
 0x136   :  { %518 = vst.msk [vmem:[#allocation2 + $0x30] sm:$0xff] %vm107_vm3, %v502_v27  ;;  %v435_v33 = vadd.f32 %v3765_v40, %v434_v31  ;;  %v3344_v43 = vpop.f32.mrb[26].mxu0  ;;  %v614_v44 = vpack.c.bf16 %v601_v42, %v599_v41  ;;  %v554_v45 = vld [vmem:[#allocation2 + $0x2] ss:$2 sm:$0xff]  ;;  %v556_v46 = vld [vmem:[#allocation2 + $0x12] ss:$2 sm:$0xff] }
 0x137   :  { %v491_v34 = vmax.f32 %v443_v30, 0.0  ;;  %v446_v48 = vadd.f32 %v3344_v43, %v3765_v40  ;;  %v437_v49 = vpop.f32.mrb[27].mxu0  ;;  %v569_v50 = vpack.c.bf16 %v556_v46, %v554_v45  ;;  %v656_v35 = vld [vmem:[#allocation2 + $0x4] ss:$2 sm:$0xff]  ;;  %v658_v54 = vld [vmem:[#allocation2 + $0x14] ss:$2 sm:$0xff] }
 0x138   :  { %v489_v52 = vmax.f32 %v435_v33, 0.0  ;;  %v438_v53 = vadd.f32 %v3765_v40, %v437_v49  ;;  %622 = vrot.lane.b32.xlu1 %v614_v44, %s3560_s2  ;;  %v671_v63 = vpack.c.bf16 %v658_v54, %v656_v35  ;;  %v713_v3 = vld [vmem:[#allocation2 + $0x5] ss:$2 sm:$0xff]  ;;  %v715_v4 = vld [vmem:[#allocation2 + $0x15] ss:$2 sm:$0xff] }
 0x139   :  { %v507_v56 = vmax.f32 %v475_v47, %v491_v34  ;;  %v492_v57 = vmax.f32 %v446_v48, 0.0  ;;  %577 = vrot.lane.b32.xlu0 %v569_v50, %s3561_s14  ;;  %594 = vst.msk [vmem:[#allocation5 + $0x80] sm:$0xff] %vm107_vm3, %v569_v50  ;;  %v728_v15 = vpack.c.bf16 %v715_v4, %v713_v3  ;;  %v770_v39 = vld [vmem:[#allocation2 + $0x6] ss:$2 sm:$0xff]  ;;  %v772_v19 = vld [vmem:[#allocation2 + $0x16] ss:$2 sm:$0xff] }
 0x13a   :  { %v505_v59 = vmax.f32 %v473_v51, %v489_v52  ;;  %v490_v60 = vmax.f32 %v438_v53, 0.0  ;;  %v827_v29 = vld [vmem:[#allocation2 + $0x7] ss:$2 sm:$0xff]  ;;  %v829_v30 = vld [vmem:[#allocation2 + $0x17] ss:$2 sm:$0xff] }
 0x13b   :  { %523 = vst.msk [vmem:[#allocation2 + $0x68] sm:$0xff] %vm107_vm3, %v507_v56  ;;  %v508_v62 = vmax.f32 %v476_v55, %v492_v57  ;;  %v842_v31 = vpack.c.bf16 %v829_v30, %v827_v29  ;;  %v884_v41 = vld [vmem:[#allocation2 + $0x8] ss:$2 sm:$0xff]  ;;  %v886_v42 = vld [vmem:[#allocation2 + $0x18] ss:$2 sm:$0xff] }
 0x13c   :  { %521 = vst.msk [vmem:[#allocation2 + $0x58] sm:$0xff] %vm107_vm3, %v505_v59  ;;  %v506_v1 = vmax.f32 %v474_v58, %v490_v60  ;;  %v3347_v2 = vpop.f32.mrb[28].mxu0  ;;  %639 = vrot.lane.b32.xlu1 %v614_v44, %s3561_s14  ;;  %v899_v32 = vpack.c.bf16 %v886_v42, %v884_v41  ;;  %v943_v33 = vld [vmem:[#allocation2 + $0x19] ss:$2 sm:$0xff]  ;;  %v941_v43 = vld [vmem:[#allocation2 + $0x9] ss:$2 sm:$0xff] }
 0x13d   :  { %524 = vst.msk [vmem:[#allocation2 + $0x70] sm:$0xff] %vm107_vm3, %v508_v62  ;;  %v459_v36 = vadd.f32 %v3347_v2, %v3765_v40  ;;  %679 = vrot.lane.b32.xlu0 %v671_v63, %s3562_s15  ;;  %v450_v6 = vpop.f32.mrb[29].mxu0  ;;  %v558_v37 = vld [vmem:[#allocation2 + $0x22] ss:$2 sm:$0xff]  ;;  %v560_v7 = vld [vmem:[#allocation2 + $0x32] ss:$2 sm:$0xff]  ;;  %v956_v48 = vpack.c.bf16 %v943_v33, %v941_v43 }
 0x13e   :  { %522 = vst.msk [vmem:[#allocation2 + $0x60] sm:$0xff] %vm107_vm3, %v506_v1  ;;  %v451_v9 = vadd.f32 %v3765_v40, %v450_v6  ;;  %v3348_v10 = vpop.f32.mrb[30].mxu0  ;;  %v3820_v11 = vpack.c.bf16 %v560_v7, %v558_v37  ;;  %v532_v47 = vld [vmem:[#allocation2 + $0x11] ss:$2 sm:$0xff]  ;;  %v530_v34 = vld [vmem:[#allocation2 + $0x1] ss:$2 sm:$0xff] }
 0x13f   :  { %v495_v12 = vmax.f32 %v459_v36, 0.0  ;;  %v462_v13 = vadd.f32 %v3348_v10, %v3765_v40  ;;  %v453_v14 = vpop.f32.mrb[31].mxu0  ;;  %v545_v49 = vpack.c.bf16 %v532_v47, %v530_v34  ;;  %v1000_v50 = vld [vmem:[#allocation2 + $0x1a] ss:$2 sm:$0xff]  ;;  %v998_v51 = vld [vmem:[#allocation2 + $0xa] ss:$2 sm:$0xff] }
 0x140   :  { %v493_v17 = vmax.f32 %v451_v9, 0.0  ;;  %v454_v18 = vadd.f32 %v3765_v40, %v453_v14  ;;  %696 = vrot.lane.b32.xlu1 %v671_v63, %s3560_s2  ;;  %595 = vst.msk [vmem:[#allocation5 + $0xa0] sm:$0xff] %vm107_vm3, %v3820_v11  ;;  %v785_v40 = vpack.c.bf16 %v772_v19, %v770_v39  ;;  %v1013_v52 = vpack.c.bf16 %v1000_v50, %v998_v51  ;;  %v1057_v54 = vld [vmem:[#allocation2 + $0x1b] ss:$2 sm:$0xff]  ;;  %v1055_v61 = vld [vmem:[#allocation2 + $0xb] ss:$2 sm:$0xff] }
 0x141   :  { %v511_v21 = vmax.f32 %v479_v38, %v495_v12  ;;  %v496_v22 = vmax.f32 %v462_v13, 0.0  ;;  %736 = vrot.lane.b32.xlu0 %v728_v15, %s3563_s16  ;;  %549 = vst.msk [vmem:[#allocation5] sm:$0xff] %vm107_vm3, %v545_v49  ;;  %v534_v56 = vld [vmem:[#allocation2 + $0x21] ss:$2 sm:$0xff]  ;;  %v536_v57 = vld [vmem:[#allocation2 + $0x31] ss:$2 sm:$0xff]  ;;  %v1070_v62 = vpack.c.bf16 %v1057_v54, %v1055_v61 }
 0x142   :  { %v509_v25 = vmax.f32 %v477_v16, %v493_v17  ;;  %v494_v26 = vmax.f32 %v454_v18, 0.0  ;;  %v945_v58 = vld [vmem:[#allocation2 + $0x29] ss:$2 sm:$0xff]  ;;  %v947_v59 = vld [vmem:[#allocation2 + $0x39] ss:$2 sm:$0xff]  ;;  %v546_v60 = vpack.c.bf16 %v536_v57, %v534_v56 }
 0x143   :  { %527 = vst.msk [vmem:[#allocation2 + $0x88] sm:$0xff] %vm107_vm3, %v511_v21  ;;  %v512_v27 = vmax.f32 %v480_v20, %v496_v22  ;;  %v3855_v63 = vpack.c.bf16 %v947_v59, %v945_v58  ;;  %v1114_v0 = vld [vmem:[#allocation2 + $0x1c] ss:$2 sm:$0xff]  ;;  %v1112_v3 = vld [vmem:[#allocation2 + $0xc] ss:$2 sm:$0xff] }
 0x144   :  { %525 = vst.msk [vmem:[#allocation2 + $0x78] sm:$0xff] %vm107_vm3, %v509_v25  ;;  %v510_v28 = vmax.f32 %v478_v24, %v494_v26  ;;  %753 = vrot.lane.b32.xlu1 %v728_v15, %s3562_s15  ;;  %550 = vst.msk [vmem:[#allocation5 + $0x20] sm:$0xff] %vm107_vm3, %v546_v60  ;;  %v1002_v1 = vld [vmem:[#allocation2 + $0x2a] ss:$2 sm:$0xff]  ;;  %v1004_v2 = vld [vmem:[#allocation2 + $0x3a] ss:$2 sm:$0xff]  ;;  %v1127_v4 = vpack.c.bf16 %v1114_v0, %v1112_v3 }
 0x145   :  { %528 = vst.msk [vmem:[#allocation2 + $0x90] sm:$0xff] %vm107_vm3, %v512_v27  ;;  %793 = vrot.lane.b32.xlu0 %v785_v40, %s3564_s3  ;;  %v562_v44 = vld [vmem:[#allocation2 + $0x52] ss:$2 sm:$0xff]  ;;  %v564_v45 = vld [vmem:[#allocation2 + $0x62] ss:$2 sm:$0xff]  ;;  %v3860_v5 = vpack.c.bf16 %v1004_v2, %v1002_v1 }
 0x146   :  { %526 = vst.msk [vmem:[#allocation2 + $0x80] sm:$0xff] %vm107_vm3, %v510_v28  ;;  %v3838_v46 = vpack.c.bf16 %v564_v45, %v562_v44  ;;  %v1171_v36 = vld [vmem:[#allocation2 + $0x1d] ss:$2 sm:$0xff]  ;;  %v1169_v7 = vld [vmem:[#allocation2 + $0xd] ss:$2 sm:$0xff] }
 0x147   :  { %v1059_v6 = vld [vmem:[#allocation2 + $0x2b] ss:$2 sm:$0xff]  ;;  %v1061_v37 = vld [vmem:[#allocation2 + $0x3b] ss:$2 sm:$0xff]  ;;  %v1184_v8 = vpack.c.bf16 %v1171_v36, %v1169_v7  ;;  %v1228_v9 = vld [vmem:[#allocation2 + $0x1e] ss:$2 sm:$0xff] }
 0x148   :  { %810 = vrot.lane.b32.xlu1 %v785_v40, %s3563_s16  ;;  %596 = vst.msk [vmem:[#allocation5 + $0xc0] sm:$0xff] %vm107_vm3, %v3838_v46  ;;  %v3865_v10 = vpack.c.bf16 %v1061_v37, %v1059_v6  ;;  %v538_v38 = vld [vmem:[#allocation2 + $0x51] ss:$2 sm:$0xff]  ;;  %v540_v12 = vld [vmem:[#allocation2 + $0x61] ss:$2 sm:$0xff] }
 0x149   :  { %850 = vrot.lane.b32.xlu0 %v842_v31, %s3565_s28  ;;  %v1118_v13 = vld [vmem:[#allocation2 + $0x3c] ss:$2 sm:$0xff]  ;;  %v547_v14 = vpack.c.bf16 %v540_v12, %v538_v38  ;;  %v1285_v20 = vld [vmem:[#allocation2 + $0x1f] ss:$2 sm:$0xff]  ;;  %v1283_v24 = vld [vmem:[#allocation2 + $0xf] ss:$2 sm:$0xff] }
 0x14a   :  { %v1226_v17 = vld [vmem:[#allocation2 + $0xe] ss:$2 sm:$0xff]  ;;  %v1173_v21 = vld [vmem:[#allocation2 + $0x2d] ss:$2 sm:$0xff]  ;;  %v1175_v22 = vld [vmem:[#allocation2 + $0x3d] ss:$2 sm:$0xff]  ;;  %v1298_v25 = vpack.c.bf16 %v1285_v20, %v1283_v24 }
 0x14b   :  { %v542_v15 = vld [vmem:[#allocation2 + $0x71] ss:$2 sm:$0xff]  ;;  %v1241_v39 = vpack.c.bf16 %v1228_v9, %v1226_v17  ;;  %551 = vst.msk [vmem:[#allocation5 + $0x40] sm:$0xff] %vm107_vm3, %v547_v14  ;;  %v3877_v26 = vpack.c.bf16 %v1175_v22, %v1173_v21  ;;  %v1230_v27 = vld [vmem:[#allocation2 + $0x2e] ss:$2 sm:$0xff]  ;;  %v3433_v34 = vld [vmem:[#allocation7] sm:$0xff]  }
 0x14c   :  { %867 = vrot.lane.b32.xlu1 %v842_v31, %s3564_s3  ;;  %v1232_v40 = vld [vmem:[#allocation2 + $0x3e] ss:$2 sm:$0xff]  ;;  %v1287_v29 = vld [vmem:[#allocation2 + $0x2f] ss:$2 sm:$0xff]  ;;  %v1289_v30 = vld [vmem:[#allocation2 + $0x3f] ss:$2 sm:$0xff]  ;;  %3349 = vmatprep.subr.bf16.mxu1 %v3433_v34 }
 0x14d   :  { %907 = vrot.lane.b32.xlu0 %v899_v32, %s3566_s9  ;;  %v566_v53 = vld [vmem:[#allocation2 + $0x72] ss:$2 sm:$0xff]  ;;  %v568_v35 = vld [vmem:[#allocation2 + $0x82] ss:$2 sm:$0xff]  ;;  %v544_v16 = vld [vmem:[#allocation2 + $0x81] ss:$2 sm:$0xff]  ;;  %v3882_v28 = vpack.c.bf16 %v1232_v40, %v1230_v27  ;;  %v3887_v31 = vpack.c.bf16 %v1289_v30, %v1287_v29  ;;  %3350 = vmatpush3.bf16.msra.mxu1 %v3433_v34 }
 0x14e   :  { %v3847_v55 = vpack.c.bf16 %v568_v35, %v566_v53  ;;  %v548_v18 = vpack.c.bf16 %v544_v16, %v542_v15  ;;  %v603_v41 = vld [vmem:[#allocation2 + $0x23] ss:$2 sm:$0xff]  ;;  %v605_v42 = vld [vmem:[#allocation2 + $0x33] ss:$2 sm:$0xff]  ;;  %v660_v33 = vld [vmem:[#allocation2 + $0x24] ss:$2 sm:$0xff] }
 0x14f   :  { %v662_v43 = vld [vmem:[#allocation2 + $0x34] ss:$2 sm:$0xff]  ;;  %v717_v45 = vld [vmem:[#allocation2 + $0x25] ss:$2 sm:$0xff]  ;;  %v719_v47 = vld [vmem:[#allocation2 + $0x35] ss:$2 sm:$0xff] }
 0x150   :  { %924 = vrot.lane.b32.xlu1 %v899_v32, %s3565_s28  ;;  %597 = vst.msk [vmem:[#allocation5 + $0xe0] sm:$0xff] %vm107_vm3, %v3847_v55  ;;  %552 = vst.msk [vmem:[#allocation5 + $0x60] sm:$0xff] %vm107_vm3, %v548_v18  ;;  %v615_v32 = vpack.c.bf16 %v605_v42, %v603_v41  ;;  %v672_v44 = vpack.c.bf16 %v662_v43, %v660_v33  ;;  %v1342_v49 = vld [vmem:[#allocation2 + $0x20] ss:$2 sm:$0xff]  ;;  %v831_v56 = vld [vmem:[#allocation2 + $0x27] ss:$2 sm:$0xff] }
 0x151   :  { %964 = vrot.lane.b32.xlu0 %v956_v48, %s3554_s19  ;;  %v774_v50 = vld [vmem:[#allocation2 + $0x26] ss:$2 sm:$0xff]  ;;  %v776_v51 = vld [vmem:[#allocation2 + $0x36] ss:$2 sm:$0xff]  ;;  %v833_v57 = vld [vmem:[#allocation2 + $0x37] ss:$2 sm:$0xff] }
 0x152   :  { %v3434_v53 = vld [vmem:[#allocation7 + $0x8] sm:$0xff]   ;;  %v786_v54 = vpack.c.bf16 %v776_v51, %v774_v50  ;;  %v3435_v58 = vld [vmem:[#allocation7 + $0x10] sm:$0xff]   ;;  %v843_v59 = vpack.c.bf16 %v833_v57, %v831_v56  ;;  %v3437_v1 = vld [vmem:[#allocation7 + $0x20] sm:$0xff]   ;;  %vm1617_vm3 = vcmask 261248  }
 0x153   :  { %3351 = vmatprep.subr.bf16.mxu1 %v3434_v53  ;;  %v888_v60 = vld [vmem:[#allocation2 + $0x28] ss:$2 sm:$0xff]  ;;  %v890_v61 = vld [vmem:[#allocation2 + $0x38] ss:$2 sm:$0xff]  ;;  %v609_v36 = vld [vmem:[#allocation2 + $0x63] ss:$2 sm:$0xff] }
 0x154   :  { %981 = vrot.lane.b32.xlu1 %v956_v48, %s3566_s9  ;;  %v729_v48 = vpack.c.bf16 %v719_v47, %v717_v45  ;;  %3352 = vmatpush3.bf16.msra.mxu1 %v3434_v53  ;;  %v900_v0 = vpack.c.bf16 %v890_v61, %v888_v60  ;;  %v3438_v2 = vld [vmem:[#allocation7 + $0x28] sm:$0xff]   ;;  %v3439_v3 = vld [vmem:[#allocation7 + $0x30] sm:$0xff]  }
 0x155   :  { %1038 = vrot.lane.b32.xlu0 %v1013_v52, %s3554_s19  ;;  %3353 = vmatprep.subr.bf16.mxu1 %v3435_v58  ;;  %v1344_v6 = vld [vmem:[#allocation2 + $0x30] ss:$2 sm:$0xff]  ;;  %v1346_v37 = vld [vmem:[#allocation2 + $0x40] ss:$2 sm:$0xff]  ;;  %v721_v14 = vld [vmem:[#allocation2 + $0x55] ss:$2 sm:$0xff] }
 0x156   :  { %v664_v9 = vld [vmem:[#allocation2 + $0x54] ss:$2 sm:$0xff]  ;;  %v723_v15 = vld [vmem:[#allocation2 + $0x65] ss:$2 sm:$0xff] }
 0x157   :  { %v1008_v16 = vld [vmem:[#allocation2 + $0x6a] ss:$2 sm:$0xff]  ;;  %v3939_v18 = vpack.c.bf16 %v723_v15, %v721_v14  ;;  %v1065_v24 = vld [vmem:[#allocation2 + $0x6b] ss:$2 sm:$0xff]  ;;  %v1063_v27 = vld [vmem:[#allocation2 + $0x5b] ss:$2 sm:$0xff] }
 0x158   :  { %1021 = vrot.lane.b32.xlu1 %v1013_v52, %s3567_s17  ;;  %v1340_v52 = vld [vmem:[#allocation2 + $0x10] ss:$2 sm:$0xff]  ;;  %3354 = vmatpush3.bf16.msra.mxu1 %v3435_v58  ;;  %v835_v29 = vld [vmem:[#allocation2 + $0x57] ss:$2 sm:$0xff]  ;;  %v837_v30 = vld [vmem:[#allocation2 + $0x67] ss:$2 sm:$0xff] }
 0x159   :  { %579 = vrot.lane.b32.xlu0 %v3820_v11, %s3561_s14  ;;  %v1116_v11 = vld [vmem:[#allocation2 + $0x2c] ss:$2 sm:$0xff]  ;;  %v1355_v35 = vpack.c.bf16 %v1342_v49, %v1340_v52  ;;  %v3959_v42 = vpack.c.bf16 %v837_v30, %v835_v29  ;;  %v1179_v47 = vld [vmem:[#allocation2 + $0x6d] ss:$2 sm:$0xff]  ;;  %v1177_v49 = vld [vmem:[#allocation2 + $0x5d] ss:$2 sm:$0xff] }
 0x15a   :  { %v3871_v19 = vpack.c.bf16 %v1118_v13, %v1116_v11  ;;  %v951_v11 = vld [vmem:[#allocation2 + $0x69] ss:$2 sm:$0xff]  ;;  %v778_v21 = vld [vmem:[#allocation2 + $0x56] ss:$2 sm:$0xff]  ;;  %v780_v22 = vld [vmem:[#allocation2 + $0x66] ss:$2 sm:$0xff]  ;;  %v3970_v51 = vpack.c.bf16 %v1179_v47, %v1177_v49 }
 0x15b   :  { %v894_v45 = vld [vmem:[#allocation2 + $0x68] ss:$2 sm:$0xff]  ;;  %v613_v60 = vld [vmem:[#allocation2 + $0x83] ss:$2 sm:$0xff] }
 0x15c   :  { %1078 = vrot.lane.b32.xlu1 %v1070_v62, %s3568_s18  ;;  %v1236_v52 = vld [vmem:[#allocation2 + $0x6e] ss:$2 sm:$0xff] }
 0x15d   :  { %966 = vrot.lane.b32.xlu0 %v3855_v63, %s3554_s19  ;;  %v1124_v30 = vld [vmem:[#allocation2 + $0x7c] ss:$2 sm:$0xff] }
 0x15e   :  { %v1240_v49 = vld [vmem:[#allocation2 + $0x8e] ss:$2 sm:$0xff] }
 0x160   :  { %1135 = vrot.lane.b32.xlu1 %v1127_v4, %s3569_s12 }
 0x161   :  { %1023 = vrot.lane.b32.xlu0 %v3860_v5, %s3567_s17 }
 0x164   :  { %1192 = vrot.lane.b32.xlu1 %v1184_v8, %s3570_s20 }
 0x165   :  { %1080 = vrot.lane.b32.xlu0 %v3865_v10, %s3568_s18 }
 0x168   :  { %1249 = vrot.lane.b32.xlu1 %v1241_v39, %s3571_s21 }
 0x169   :  { %1137 = vrot.lane.b32.xlu0 %v3871_v19, %s3569_s12 }
 0x16c   :  { %1306 = vrot.lane.b32.xlu1 %v1298_v25, %s3572_s22 }
 0x16d   :  { %1194 = vrot.lane.b32.xlu0 %v3877_v26, %s3570_s20 }
 0x170   :  { %1095 = vrot.lane.b32.xlu1 %v1070_v62, %s3567_s17  ;;  %v3436_v62 = vld [vmem:[#allocation7 + $0x18] sm:$0xff]  }
 0x171   :  { %1251 = vrot.lane.b32.xlu0 %v3882_v28, %s3571_s21  ;;  %3355 = vmatprep.subr.bf16.mxu1 %v3436_v62 }
 0x172   :  { %3356 = vmatpush3.bf16.msra.mxu1 %v3436_v62 }
 0x173   :  { %3357 = vmatprep.subr.bf16.mxu1 %v3437_v1 }
 0x174   :  { %1152 = vrot.lane.b32.xlu1 %v1127_v4, %s3568_s18  ;;  %v3440_v4 = vld [vmem:[#allocation7 + $0x38] sm:$0xff]  }
 0x175   :  { %1308 = vrot.lane.b32.xlu0 %v3887_v31, %s3572_s22 }
 0x176   :  { %3358 = vmatpush3.bf16.msra.mxu1 %v3437_v1  ;;  %v668_v1 = vld [vmem:[#allocation2 + $0x74] ss:$2 sm:$0xff] }
 0x177   :  { %3359 = vmatprep.subr.bf16.mxu1 %v3438_v2 }
 0x178   :  { %1209 = vrot.lane.b32.xlu1 %v1184_v8, %s3569_s12  ;;  %v1356_v8 = vpack.c.bf16 %v1346_v37, %v1344_v6 }
 0x179   :  { %641 = vrot.lane.b32.xlu0 %v615_v32, %s3561_s14 }
 0x17a   :  { %3360 = vmatpush3.bf16.msra.mxu1 %v3438_v2  ;;  %v670_v2 = vld [vmem:[#allocation2 + $0x84] ss:$2 sm:$0xff] }
 0x17b   :  { %3361 = vmatprep.subr.bf16.mxu1 %v3439_v3 }
 0x17c   :  { %1266 = vrot.lane.b32.xlu1 %v1241_v39, %s3570_s20  ;;  %v1006_v39 = vld [vmem:[#allocation2 + $0x5a] ss:$2 sm:$0xff] }
 0x17d   :  { %698 = vrot.lane.b32.xlu0 %v672_v44, %s3560_s2  ;;  %v3942_v20 = vpack.c.bf16 %v1008_v16, %v1006_v39  ;;  %v953_v16 = vld [vmem:[#allocation2 + $0x79] ss:$2 sm:$0xff] }
 0x17e   :  { %3362 = vmatpush3.bf16.msra.mxu1 %v3439_v3 }
 0x17f   :  { %3363 = vmatprep.subr.bf16.mxu1 %v3440_v4 }
 0x180   :  { %1323 = vrot.lane.b32.xlu1 %v1298_v25, %s3571_s21 }
 0x181   :  { %755 = vrot.lane.b32.xlu0 %v729_v48, %s3562_s15 }
 0x182   :  { %3364 = vmatpush3.bf16.msra.mxu1 %v3440_v4  ;;  %v3999_v4 = vpack.c.bf16 %v670_v2, %v668_v1 }
 0x184   :  { %1363 = vrot.lane.b32.xlu1 %v1355_v35, %s3572_s22  ;;  %v1234_v35 = vld [vmem:[#allocation2 + $0x5e] ss:$2 sm:$0xff] }
 0x185   :  { %812 = vrot.lane.b32.xlu0 %v786_v54, %s3563_s16  ;;  %v3977_v56 = vpack.c.bf16 %v1236_v52, %v1234_v35 }
 0x188   :  { %624 = vrot.lane.b32.xlu1 %v615_v32, %s3560_s2  ;;  %v1120_v32 = vld [vmem:[#allocation2 + $0x5c] ss:$2 sm:$0xff] }
 0x189   :  { %869 = vrot.lane.b32.xlu0 %v843_v59, %s3564_s3 }
 0x18c   :  { %681 = vrot.lane.b32.xlu1 %v672_v44, %s3562_s15  ;;  %v892_v44 = vld [vmem:[#allocation2 + $0x58] ss:$2 sm:$0xff] }
 0x18d   :  { %926 = vrot.lane.b32.xlu0 %v900_v0, %s3565_s28 }
 0x190   :  { %738 = vrot.lane.b32.xlu1 %v729_v48, %s3563_s16  ;;  %v901_v48 = vpack.c.bf16 %v894_v45, %v892_v44  ;;  %v1183_v44 = vld [vmem:[#allocation2 + $0x8d] ss:$2 sm:$0xff] }
 0x191   :  { %1040 = vrot.lane.b32.xlu0 %v3860_v5, %s3554_s19  ;;  %v607_v5 = vld [vmem:[#allocation2 + $0x53] ss:$2 sm:$0xff] }
 0x192   :  { %v3924_v7 = vpack.c.bf16 %v609_v36, %v607_v5  ;;  %v725_v5 = vld [vmem:[#allocation2 + $0x75] ss:$2 sm:$0xff]  ;;  %v727_v36 = vld [vmem:[#allocation2 + $0x85] ss:$2 sm:$0xff] }
 0x194   :  { %795 = vrot.lane.b32.xlu1 %v786_v54, %s3564_s3 }
 0x195   :  { %1097 = vrot.lane.b32.xlu0 %v3865_v10, %s3567_s17  ;;  %v666_v10 = vld [vmem:[#allocation2 + $0x64] ss:$2 sm:$0xff] }
 0x198   :  { %852 = vrot.lane.b32.xlu1 %v843_v59, %s3565_s28  ;;  %v611_v59 = vld [vmem:[#allocation2 + $0x73] ss:$2 sm:$0xff] }
 0x199   :  { %1154 = vrot.lane.b32.xlu0 %v3871_v19, %s3568_s18 }
 0x19c   :  { %909 = vrot.lane.b32.xlu1 %v900_v0, %s3566_s9  ;;  %v3991_v0 = vpack.c.bf16 %v613_v60, %v611_v59  ;;  %v1297_v59 = vld [vmem:[#allocation2 + $0x8f] ss:$2 sm:$0xff] }
 0x19d   :  { %1211 = vrot.lane.b32.xlu0 %v3877_v26, %s3569_s12  ;;  %v3949_v26 = vpack.c.bf16 %v780_v22, %v778_v21  ;;  %v1010_v21 = vld [vmem:[#allocation2 + $0x7a] ss:$2 sm:$0xff]  ;;  %v1012_v22 = vld [vmem:[#allocation2 + $0x8a] ss:$2 sm:$0xff] }
 0x1a0   :  { %983 = vrot.lane.b32.xlu1 %v3855_v63, %s3566_s9  ;;  %v949_v63 = vld [vmem:[#allocation2 + $0x59] ss:$2 sm:$0xff] }
 0x1a1   :  { %1268 = vrot.lane.b32.xlu0 %v3882_v28, %s3570_s20  ;;  %v3931_v13 = vpack.c.bf16 %v951_v11, %v949_v63  ;;  %v3952_v28 = vpack.c.bf16 %v1065_v24, %v1063_v27  ;;  %v1069_v27 = vld [vmem:[#allocation2 + $0x8b] ss:$2 sm:$0xff] }
 0x1a4   :  { %581 = vrot.lane.b32.xlu1 %v3838_v46, %s3561_s14  ;;  %v3929_v46 = vpack.c.bf16 %v666_v10, %v664_v9  ;;  %v784_v9 = vld [vmem:[#allocation2 + $0x86] ss:$2 sm:$0xff] }
 0x1a5   :  { %1325 = vrot.lane.b32.xlu0 %v3887_v31, %s3571_s21  ;;  %v1122_v31 = vld [vmem:[#allocation2 + $0x6c] ss:$2 sm:$0xff] }
 0x1a6   :  { %v3962_v43 = vpack.c.bf16 %v1122_v31, %v1120_v32  ;;  %v1126_v31 = vld [vmem:[#allocation2 + $0x8c] ss:$2 sm:$0xff] }
 0x1a7   :  { %v1130_v32 = vpack.c.bf16 %v1126_v31, %v1124_v30 }
 0x1a8   :  { %626 = vrot.lane.b32.xlu1 %v3924_v7, %s3560_s2 }
 0x1a9   :  { %1365 = vrot.lane.b32.xlu0 %v1356_v8, %s3572_s22  ;;  %v782_v8 = vld [vmem:[#allocation2 + $0x76] ss:$2 sm:$0xff] }
 0x1aa   :  { %v623_v38 = vpop.permute.xlu1 %622  ;;  %v4018_v11 = vpack.c.bf16 %v784_v9, %v782_v8 }
 0x1ab   :  { %v578_v12 = vpop.permute.xlu0 %577 }
 0x1ac   :  { %590 = vst.msk [vmem:[#allocation5] sm:$0xff] %vm589_vm4, %v578_v12  ;;  %683 = vrot.lane.b32.xlu1 %v3929_v46, %s3562_s15 }
 0x1ad   :  { %968 = vrot.lane.b32.xlu0 %v3931_v13, %s3554_s19  ;;  %635 = vst.msk [vmem:[#allocation5] sm:$0xff] %vm634_vm5, %v623_v38  ;;  %v839_v38 = vld [vmem:[#allocation2 + $0x77] ss:$2 sm:$0xff] }
 0x1ae   :  { %v640_v17 = vpop.permute.xlu1 %639 }
 0x1af   :  { %651 = vst.msk [vmem:[#allocation5 + $0x80] sm:$0xff] %vm589_vm4, %v640_v17  ;;  %v680_v19 = vpop.permute.xlu0 %679  ;;  %v955_v17 = vld [vmem:[#allocation2 + $0x89] ss:$2 sm:$0xff] }
 0x1b0   :  { %692 = vst.msk [vmem:[#allocation5] sm:$0xff] %vm691_vm6, %v680_v19  ;;  %740 = vrot.lane.b32.xlu1 %v3939_v18, %s3563_s16  ;;  %v4035_v19 = vpack.c.bf16 %v955_v17, %v953_v16  ;;  %v1348_v17 = vld [vmem:[#allocation2 + $0x60] ss:$2 sm:$0xff] }
 0x1b1   :  { %1042 = vrot.lane.b32.xlu0 %v3942_v20, %s3554_s19 }
 0x1b2   :  { %v697_v25 = vpop.permute.xlu1 %696 }
 0x1b3   :  { %708 = vst.msk [vmem:[#allocation5 + $0x80] sm:$0xff] %vm634_vm5, %v697_v25  ;;  %v737_v40 = vpop.permute.xlu0 %736  ;;  %v4044_v25 = vpack.c.bf16 %v1012_v22, %v1010_v21 }
 0x1b4   :  { %749 = vst.msk [vmem:[#allocation5] sm:$0xff] %vm748_vm7, %v737_v40  ;;  %797 = vrot.lane.b32.xlu1 %v3949_v26, %s3564_s3 }
 0x1b5   :  { %1099 = vrot.lane.b32.xlu0 %v3952_v28, %s3567_s17 }
 0x1b6   :  { %v754_v41 = vpop.permute.xlu1 %753 }
 0x1b7   :  { %765 = vst.msk [vmem:[#allocation5 + $0x80] sm:$0xff] %vm691_vm6, %v754_v41  ;;  %v794_v33 = vpop.permute.xlu0 %793 }
 0x1b8   :  { %806 = vst.msk [vmem:[#allocation5] sm:$0xff] %vm805_vm8, %v794_v33  ;;  %854 = vrot.lane.b32.xlu1 %v3959_v42, %s3565_s28  ;;  %v1181_v33 = vld [vmem:[#allocation2 + $0x7d] ss:$2 sm:$0xff] }
 0x1b9   :  { %1156 = vrot.lane.b32.xlu0 %v3962_v43, %s3568_s18  ;;  %v1187_v47 = vpack.c.bf16 %v1183_v44, %v1181_v33 }
 0x1ba   :  { %v811_v34 = vpop.permute.xlu1 %810 }
 0x1bb   :  { %822 = vst.msk [vmem:[#allocation5 + $0x80] sm:$0xff] %vm748_vm7, %v811_v34  ;;  %v851_v50 = vpop.permute.xlu0 %850  ;;  %v1293_v34 = vld [vmem:[#allocation2 + $0x6f] ss:$2 sm:$0xff] }
 0x1bc   :  { %863 = vst.msk [vmem:[#allocation5] sm:$0xff] %vm862_vm9, %v851_v50  ;;  %911 = vrot.lane.b32.xlu1 %v901_v48, %s3566_s9  ;;  %v1291_v50 = vld [vmem:[#allocation2 + $0x5f] ss:$2 sm:$0xff] }
 0x1bd   :  { %1213 = vrot.lane.b32.xlu0 %v3970_v51, %s3569_s12  ;;  %v1300_v52 = vpack.c.bf16 %v1293_v34, %v1291_v50 }
 0x1be   :  { %v868_v53 = vpop.permute.xlu1 %867 }
 0x1bf   :  { %879 = vst.msk [vmem:[#allocation5 + $0x80] sm:$0xff] %vm805_vm8, %v868_v53  ;;  %v908_v54 = vpop.permute.xlu0 %907 }
 0x1c0   :  { %920 = vst.msk [vmem:[#allocation5] sm:$0xff] %vm919_vm10, %v908_v54  ;;  %643 = vrot.lane.b32.xlu1 %v3924_v7, %s3561_s14  ;;  %v4009_v7 = vpack.c.bf16 %v727_v36, %v725_v5  ;;  %v896_v54 = vld [vmem:[#allocation2 + $0x78] ss:$2 sm:$0xff] }
 0x1c1   :  { %1270 = vrot.lane.b32.xlu0 %v3977_v56, %s3570_s20 }
 0x1c2   :  { %v925_v57 = vpop.permute.xlu1 %924 }
 0x1c3   :  { %936 = vst.msk [vmem:[#allocation5 + $0x80] sm:$0xff] %vm862_vm9, %v925_v57  ;;  %v965_v58 = vpop.permute.xlu0 %964  ;;  %v898_v57 = vld [vmem:[#allocation2 + $0x88] ss:$2 sm:$0xff] }
 0x1c4   :  { %977 = vst.msk [vmem:[#allocation5] sm:$0xff] %vm976_vm11, %v965_v58  ;;  %700 = vrot.lane.b32.xlu1 %v3929_v46, %s3560_s2  ;;  %v841_v46 = vld [vmem:[#allocation2 + $0x87] ss:$2 sm:$0xff]  ;;  %v902_v60 = vpack.c.bf16 %v898_v57, %v896_v54 }
 0x1c5   :  { %583 = vrot.lane.b32.xlu0 %v3847_v55, %s3561_s14  ;;  %v4026_v15 = vpack.c.bf16 %v841_v46, %v839_v38  ;;  %v1295_v58 = vld [vmem:[#allocation2 + $0x7f] ss:$2 sm:$0xff]  ;;  %v1352_v38 = vld [vmem:[#allocation2 + $0x80] ss:$2 sm:$0xff]  ;;  %v1354_v46 = vld [vmem:[#allocation2 + $0x90] ss:$2 sm:$0xff] }
 0x1c6   :  { %v982_v61 = vpop.permute.xlu1 %981  ;;  %v1358_v16 = vpack.c.bf16 %v1354_v46, %v1352_v38 }
 0x1c7   :  { %993 = vst.msk [vmem:[#allocation5 + $0x80] sm:$0xff] %vm919_vm10, %v982_v61  ;;  %v1039_v62 = vpop.permute.xlu0 %1038 }
 0x1c8   :  { %1050 = vst.msk [vmem:[#allocation5 + $0x80] sm:$0xff] %vm976_vm11, %v1039_v62  ;;  %757 = vrot.lane.b32.xlu1 %v3939_v18, %s3562_s15  ;;  %v1301_v62 = vpack.c.bf16 %v1297_v59, %v1295_v58 }
 0x1c9   :  { %628 = vrot.lane.b32.xlu0 %v3991_v0, %s3560_s2 }
 0x1ca   :  { %v1022_v3 = vpop.permute.xlu1 %1021 }
 0x1cb   :  { %1034 = vst.msk [vmem:[#allocation5] sm:$0xff] %vm1033_vm12, %v1022_v3  ;;  %v580_v55 = vpop.permute.xlu0 %579 }
 0x1cc   :  { %591 = vst.msk [vmem:[#allocation5 + $0x20] sm:$0xff] %vm589_vm4, %v580_v55  ;;  %814 = vrot.lane.b32.xlu1 %v3949_v26, %s3563_s16  ;;  %v1067_v26 = vld [vmem:[#allocation2 + $0x7b] ss:$2 sm:$0xff] }
 0x1cd   :  { %685 = vrot.lane.b32.xlu0 %v3999_v4, %s3562_s15  ;;  %v1073_v29 = vpack.c.bf16 %v1069_v27, %v1067_v26 }
 0x1ce   :  { %v1079_v6 = vpop.permute.xlu1 %1078 }
 0x1cf   :  { %1091 = vst.msk [vmem:[#allocation5] sm:$0xff] %vm1090_vm13, %v1079_v6  ;;  %v4007_v37 = vpop.permute.xlu0 %966 }
 0x1d0   :  { %871 = vrot.lane.b32.xlu1 %v3959_v42, %s3564_s3 }
 0x1d1   :  { %742 = vrot.lane.b32.xlu0 %v4009_v7, %s3563_s16 }
 0x1d2   :  { %v1136_v10 = vpop.permute.xlu1 %1135 }
 0x1d3   :  { %1148 = vst.msk [vmem:[#allocation5] sm:$0xff] %vm1147_vm14, %v1136_v10  ;;  %v4016_v63 = vpop.permute.xlu0 %1023 }
 0x1d4   :  { %928 = vrot.lane.b32.xlu1 %v901_v48, %s3565_s28  ;;  %v1238_v48 = vld [vmem:[#allocation2 + $0x7e] ss:$2 sm:$0xff] }
 0x1d5   :  { %799 = vrot.lane.b32.xlu0 %v4018_v11, %s3564_s3  ;;  %v1244_v35 = vpack.c.bf16 %v1240_v49, %v1238_v48 }
 0x1d6   :  { %v1193_v12 = vpop.permute.xlu1 %1192 }
 0x1d7   :  { %1205 = vst.msk [vmem:[#allocation5] sm:$0xff] %vm1204_vm15, %v1193_v12  ;;  %v4024_v14 = vpop.permute.xlu0 %1080  ;;  %v1350_v12 = vld [vmem:[#allocation2 + $0x70] ss:$2 sm:$0xff] }
 0x1d8   :  { %985 = vrot.lane.b32.xlu1 %v3931_v13, %s3566_s9 }
 0x1d9   :  { %856 = vrot.lane.b32.xlu0 %v4026_v15, %s3565_s28 }
 0x1da   :  { %v1250_v18 = vpop.permute.xlu1 %1249 }
 0x1db   :  { %1262 = vst.msk [vmem:[#allocation5] sm:$0xff] %vm1261_vm0, %v1250_v18  ;;  %v4033_v39 = vpop.permute.xlu0 %1137  ;;  %v1357_v18 = vpack.c.bf16 %v1350_v12, %v1348_v17 }
 0x1dc   :  { %1025 = vrot.lane.b32.xlu1 %v3942_v20, %s3567_s17 }
 0x1dd   :  { %970 = vrot.lane.b32.xlu0 %v4035_v19, %s3554_s19 }
 0x1de   :  { %v1307_v13 = vpop.permute.xlu1 %1306 }
 0x1df   :  { %1319 = vst.msk [vmem:[#allocation5] sm:$0xff] %vm1318_vm1, %v1307_v13  ;;  %v4042_v24 = vpop.permute.xlu0 %1194 }
 0x1e0   :  { %1082 = vrot.lane.b32.xlu1 %v3952_v28, %s3568_s18 }
 0x1e1   :  { %1027 = vrot.lane.b32.xlu0 %v4044_v25, %s3567_s17 }
 0x1e2   :  { %v1096_v20 = vpop.permute.xlu1 %1095 }
 0x1e3   :  { %1107 = vst.msk [vmem:[#allocation5 + $0x80] sm:$0xff] %vm1033_vm12, %v1096_v20  ;;  %v4051_v40 = vpop.permute.xlu0 %1251 }
 0x1e4   :  { %1139 = vrot.lane.b32.xlu1 %v3962_v43, %s3569_s12 }
 0x1e5   :  { %1084 = vrot.lane.b32.xlu0 %v1073_v29, %s3568_s18 }
 0x1e6   :  { %v1153_v41 = vpop.permute.xlu1 %1152  ;;  %v1379_v28 = vld [vmem:[#allocation5] sm:$0xff] }
 0x1e7   :  { %1164 = vst.msk [vmem:[#allocation5 + $0x80] sm:$0xff] %vm1090_vm13, %v1153_v41  ;;  %v4057_v42 = vpop.permute.xlu0 %1308  ;;  %3365 = vmatprep.mubr.bf16.mxu1 %v1379_v28 }
 0x1e8   :  { %1196 = vrot.lane.b32.xlu1 %v3970_v51, %s3570_s20 }
 0x1e9   :  { %1141 = vrot.lane.b32.xlu0 %v1130_v32, %s3569_s12 }
 0x1ea   :  { %v1210_v43 = vpop.permute.xlu1 %1209 }
 0x1eb   :  { %1221 = vst.msk [vmem:[#allocation5 + $0x80] sm:$0xff] %vm1147_vm14, %v1210_v43  ;;  %v642_v45 = vpop.permute.xlu0 %641 }
 0x1ec   :  { %652 = vst.msk [vmem:[#allocation5 + $0xa0] sm:$0xff] %vm589_vm4, %v642_v45  ;;  %1253 = vrot.lane.b32.xlu1 %v3977_v56, %s3571_s21 }
 0x1ed   :  { %1198 = vrot.lane.b32.xlu0 %v1187_v47, %s3570_s20 }
 0x1ee   :  { %v1267_v51 = vpop.permute.xlu1 %1266 }
 0x1ef   :  { %1278 = vst.msk [vmem:[#allocation5 + $0x80] sm:$0xff] %vm1204_vm15, %v1267_v51  ;;  %v699_v53 = vpop.permute.xlu0 %698 }
 0x1f0   :  { %709 = vst.msk [vmem:[#allocation5 + $0xa0] sm:$0xff] %vm634_vm5, %v699_v53  ;;  %1310 = vrot.lane.b32.xlu1 %v1300_v52, %s3572_s22 }
 0x1f1   :  { %1255 = vrot.lane.b32.xlu0 %v1244_v35, %s3571_s21 }
 0x1f2   :  { %v1324_v56 = vpop.permute.xlu1 %1323 }
 0x1f3   :  { %1335 = vst.msk [vmem:[#allocation5 + $0x80] sm:$0xff] %vm1261_vm0, %v1324_v56  ;;  %v756_v61 = vpop.permute.xlu0 %755 }
 0x1f4   :  { %766 = vst.msk [vmem:[#allocation5 + $0xa0] sm:$0xff] %vm691_vm6, %v756_v61  ;;  %913 = vrot.lane.b32.xlu1 %v902_v60, %s3566_s9 }
 0x1f5   :  { %1312 = vrot.lane.b32.xlu0 %v1301_v62, %s3572_s22 }
 0x1f6   :  { %v1364_v1 = vpop.permute.xlu1 %1363 }
 0x1f7   :  { %1375 = vst.msk [vmem:[#allocation5 + $0x80] sm:$0xff] %vm1318_vm1, %v1364_v1  ;;  %v813_v2 = vpop.permute.xlu0 %812 }
 0x1f8   :  { %823 = vst.msk [vmem:[#allocation5 + $0xa0] sm:$0xff] %vm748_vm7, %v813_v2  ;;  %987 = vrot.lane.b32.xlu1 %v4035_v19, %s3566_s9 }
 0x1f9   :  { %645 = vrot.lane.b32.xlu0 %v3991_v0, %s3561_s14 }
 0x1fa   :  { %v625_v3 = vpop.permute.xlu1 %624 }
 0x1fb   :  { %636 = vst.msk [vmem:[#allocation5 + $0x20] sm:$0xff] %vm634_vm5, %v625_v3  ;;  %v870_v55 = vpop.permute.xlu0 %869 }
 0x1fc   :  { %880 = vst.msk [vmem:[#allocation5 + $0xa0] sm:$0xff] %vm805_vm8, %v870_v55  ;;  %1044 = vrot.lane.b32.xlu1 %v4044_v25, %s3554_s19 }
 0x1fd   :  { %702 = vrot.lane.b32.xlu0 %v3999_v4, %s3560_s2 }
 0x1fe   :  { %v682_v5 = vpop.permute.xlu1 %681 }
 0x1ff   :  { %693 = vst.msk [vmem:[#allocation5 + $0x20] sm:$0xff] %vm691_vm6, %v682_v5  ;;  %v927_v36 = vpop.permute.xlu0 %926 }
 0x200   :  { %937 = vst.msk [vmem:[#allocation5 + $0xa0] sm:$0xff] %vm862_vm9, %v927_v36  ;;  %1101 = vrot.lane.b32.xlu1 %v1073_v29, %s3567_s17 }
 0x201   :  { %759 = vrot.lane.b32.xlu0 %v4009_v7, %s3562_s15 }
 0x202   :  { %v739_v0 = vpop.permute.xlu1 %738 }
 0x203   :  { %750 = vst.msk [vmem:[#allocation5 + $0x20] sm:$0xff] %vm748_vm7, %v739_v0  ;;  %v1041_v6 = vpop.permute.xlu0 %1040 }
 0x204   :  { %1158 = vrot.lane.b32.xlu1 %v1130_v32, %s3568_s18 }
 0x205   :  { %816 = vrot.lane.b32.xlu0 %v4018_v11, %s3563_s16 }
 0x206   :  { %v796_v4 = vpop.permute.xlu1 %795 }
 0x207   :  { %807 = vst.msk [vmem:[#allocation5 + $0x20] sm:$0xff] %vm805_vm8, %v796_v4  ;;  %v1098_v8 = vpop.permute.xlu0 %1097 }
 0x208   :  { %1215 = vrot.lane.b32.xlu1 %v1187_v47, %s3569_s12 }
 0x209   :  { %873 = vrot.lane.b32.xlu0 %v4026_v15, %s3564_s3 }
 0x20a   :  { %v853_v9 = vpop.permute.xlu1 %852 }
 0x20b   :  { %864 = vst.msk [vmem:[#allocation5 + $0x20] sm:$0xff] %vm862_vm9, %v853_v9  ;;  %v1155_v7 = vpop.permute.xlu0 %1154 }
 0x20c   :  { %1272 = vrot.lane.b32.xlu1 %v1244_v35, %s3570_s20 }
 0x20d   :  { %930 = vrot.lane.b32.xlu0 %v902_v60, %s3565_s28 }
 0x20e   :  { %v910_v10 = vpop.permute.xlu1 %909 }
 0x20f   :  { %921 = vst.msk [vmem:[#allocation5 + $0x20] sm:$0xff] %vm919_vm10, %v910_v10  ;;  %v1212_v11 = vpop.permute.xlu0 %1211 }
 0x210   :  { %978 = vst.msk [vmem:[#allocation5 + $0x20] sm:$0xff] %vm976_vm11, %v4007_v37  ;;  %1329 = vrot.lane.b32.xlu1 %v1301_v62, %s3571_s21 }
 0x211   :  { %1035 = vst.msk [vmem:[#allocation5 + $0x20] sm:$0xff] %vm1033_vm12, %v4016_v63  ;;  %1327 = vrot.lane.b32.xlu0 %v1300_v52, %s3571_s21 }
 0x212   :  { %1092 = vst.msk [vmem:[#allocation5 + $0x20] sm:$0xff] %vm1090_vm13, %v4024_v14  ;;  %v984_v15 = vpop.permute.xlu1 %983 }
 0x213   :  { %1149 = vst.msk [vmem:[#allocation5 + $0x20] sm:$0xff] %vm1147_vm14, %v4033_v39  ;;  %v1269_v37 = vpop.permute.xlu0 %1268 }
 0x214   :  { %994 = vst.msk [vmem:[#allocation5 + $0xa0] sm:$0xff] %vm919_vm10, %v984_v15  ;;  %1369 = vrot.lane.b32.xlu1 %v1358_v16, %s3572_s22 }
 0x215   :  { %1206 = vst.msk [vmem:[#allocation5 + $0x20] sm:$0xff] %vm1204_vm15, %v4042_v24  ;;  %1367 = vrot.lane.b32.xlu0 %v1357_v18, %s3572_s22 }
 0x216   :  { %1051 = vst.msk [vmem:[#allocation5 + $0xa0] sm:$0xff] %vm976_vm11, %v1041_v6  ;;  %v582_v63 = vpop.permute.xlu1 %581 }
 0x217   :  { %1263 = vst.msk [vmem:[#allocation5 + $0x20] sm:$0xff] %vm1261_vm0, %v4051_v40  ;;  %v1326_v14 = vpop.permute.xlu0 %1325 }
 0x218   :  { %1108 = vst.msk [vmem:[#allocation5 + $0xa0] sm:$0xff] %vm1033_vm12, %v1098_v8 }
 0x219   :  { %1320 = vst.msk [vmem:[#allocation5 + $0x20] sm:$0xff] %vm1318_vm1, %v4057_v42 }
 0x21a   :  { %1165 = vst.msk [vmem:[#allocation5 + $0xa0] sm:$0xff] %vm1090_vm13, %v1155_v7  ;;  %v627_v39 = vpop.permute.xlu1 %626  ;;  %v1383_v7 = vld [vmem:[#allocation5 + $0x80] sm:$0xff] }
 0x21b   :  { %1222 = vst.msk [vmem:[#allocation5 + $0xa0] sm:$0xff] %vm1147_vm14, %v1212_v11  ;;  %v1366_v19 = vpop.permute.xlu0 %1365 }
 0x21c   :  { %592 = vst.msk [vmem:[#allocation5 + $0x40] sm:$0xff] %vm589_vm4, %v582_v63 }
 0x21d   :  { %1279 = vst.msk [vmem:[#allocation5 + $0xa0] sm:$0xff] %vm1204_vm15, %v1269_v37 }
 0x21e   :  { %1336 = vst.msk [vmem:[#allocation5 + $0xa0] sm:$0xff] %vm1261_vm0, %v1326_v14  ;;  %v684_v22 = vpop.permute.xlu1 %683 }
 0x21f   :  { %637 = vst.msk [vmem:[#allocation5 + $0x40] sm:$0xff] %vm634_vm5, %v627_v39  ;;  %v969_v13 = vpop.permute.xlu0 %968 }
 0x220   :  { %1376 = vst.msk [vmem:[#allocation5 + $0xa0] sm:$0xff] %vm1318_vm1, %v1366_v19  ;;  %v1380_v21 = vld [vmem:[#allocation5 + $0x20] sm:$0xff] }
 0x221   :  { %3366 = vmatmul.mubr.bf16.vlgmr.msra.gmra.mrb[0].mxu1 %v1380_v21  ;;  %694 = vst.msk [vmem:[#allocation5 + $0x40] sm:$0xff] %vm691_vm6, %v684_v22 }
 0x222   :  { %v741_v24 = vpop.permute.xlu1 %740 }
 0x223   :  { %751 = vst.msk [vmem:[#allocation5 + $0x40] sm:$0xff] %vm748_vm7, %v741_v24  ;;  %v1043_v25 = vpop.permute.xlu0 %1042 }
 0x226   :  { %v798_v26 = vpop.permute.xlu1 %797 }
 0x227   :  { %808 = vst.msk [vmem:[#allocation5 + $0x40] sm:$0xff] %vm805_vm8, %v798_v26  ;;  %v1100_v27 = vpop.permute.xlu0 %1099  ;;  %v1384_v46 = vld [vmem:[#allocation5 + $0xa0] sm:$0xff] }
 0x22a   :  { %v855_v20 = vpop.permute.xlu1 %854 }
 0x22b   :  { %865 = vst.msk [vmem:[#allocation5 + $0x40] sm:$0xff] %vm862_vm9, %v855_v20  ;;  %v1157_v40 = vpop.permute.xlu0 %1156 }
 0x22e   :  { %v912_v29 = vpop.permute.xlu1 %911 }
 0x22f   :  { %922 = vst.msk [vmem:[#allocation5 + $0x40] sm:$0xff] %vm919_vm10, %v912_v29  ;;  %v1214_v30 = vpop.permute.xlu0 %1213 }
 0x230   :  { %979 = vst.msk [vmem:[#allocation5 + $0x40] sm:$0xff] %vm976_vm11, %v969_v13 }
 0x232   :  { %v644_v31 = vpop.permute.xlu1 %643 }
 0x233   :  { %653 = vst.msk [vmem:[#allocation5 + $0xc0] sm:$0xff] %vm589_vm4, %v644_v31  ;;  %v1271_v41 = vpop.permute.xlu0 %1270 }
 0x236   :  { %v701_v28 = vpop.permute.xlu1 %700 }
 0x237   :  { %710 = vst.msk [vmem:[#allocation5 + $0xc0] sm:$0xff] %vm634_vm5, %v701_v28  ;;  %v584_v42 = vpop.permute.xlu0 %583 }
 0x238   :  { %593 = vst.msk [vmem:[#allocation5 + $0x60] sm:$0xff] %vm589_vm4, %v584_v42 }
 0x23a   :  { %v758_v32 = vpop.permute.xlu1 %757 }
 0x23b   :  { %767 = vst.msk [vmem:[#allocation5 + $0xc0] sm:$0xff] %vm691_vm6, %v758_v32  ;;  %v629_v33 = vpop.permute.xlu0 %628 }
 0x23c   :  { %638 = vst.msk [vmem:[#allocation5 + $0x60] sm:$0xff] %vm634_vm5, %v629_v33 }
 0x23e   :  { %v815_v44 = vpop.permute.xlu1 %814 }
 0x23f   :  { %824 = vst.msk [vmem:[#allocation5 + $0xc0] sm:$0xff] %vm748_vm7, %v815_v44  ;;  %v686_v43 = vpop.permute.xlu0 %685 }
 0x240   :  { %695 = vst.msk [vmem:[#allocation5 + $0x60] sm:$0xff] %vm691_vm6, %v686_v43 }
 0x242   :  { %v872_v45 = vpop.permute.xlu1 %871 }
 0x243   :  { %881 = vst.msk [vmem:[#allocation5 + $0xc0] sm:$0xff] %vm805_vm8, %v872_v45  ;;  %v743_v47 = vpop.permute.xlu0 %742 }
 0x244   :  { %752 = vst.msk [vmem:[#allocation5 + $0x60] sm:$0xff] %vm748_vm7, %v743_v47 }
 0x246   :  { %v929_v34 = vpop.permute.xlu1 %928 }
 0x247   :  { %938 = vst.msk [vmem:[#allocation5 + $0xc0] sm:$0xff] %vm862_vm9, %v929_v34  ;;  %v800_v48 = vpop.permute.xlu0 %799 }
 0x248   :  { %809 = vst.msk [vmem:[#allocation5 + $0x60] sm:$0xff] %vm805_vm8, %v800_v48 }
 0x24a   :  { %v986_v49 = vpop.permute.xlu1 %985 }
 0x24b   :  { %995 = vst.msk [vmem:[#allocation5 + $0xc0] sm:$0xff] %vm919_vm10, %v986_v49  ;;  %v857_v50 = vpop.permute.xlu0 %856 }
 0x24c   :  { %1052 = vst.msk [vmem:[#allocation5 + $0xc0] sm:$0xff] %vm976_vm11, %v1043_v25 }
 0x24d   :  { %866 = vst.msk [vmem:[#allocation5 + $0x60] sm:$0xff] %vm862_vm9, %v857_v50 }
 0x24e   :  { %1109 = vst.msk [vmem:[#allocation5 + $0xc0] sm:$0xff] %vm1033_vm12, %v1100_v27  ;;  %v1026_v51 = vpop.permute.xlu1 %1025  ;;  %v4199_v27 = vld [vmem:[%s4602_s4] ss:$0 sm:$0xff] }
 0x24f   :  { %1166 = vst.msk [vmem:[#allocation5 + $0xc0] sm:$0xff] %vm1090_vm13, %v1157_v40  ;;  %v971_v52 = vpop.permute.xlu0 %970 }
 0x250   :  { %1223 = vst.msk [vmem:[#allocation5 + $0xc0] sm:$0xff] %vm1147_vm14, %v1214_v30 }
 0x251   :  { %1036 = vst.msk [vmem:[#allocation5 + $0x40] sm:$0xff] %vm1033_vm12, %v1026_v51 }
 0x252   :  { %1280 = vst.msk [vmem:[#allocation5 + $0xc0] sm:$0xff] %vm1204_vm15, %v1271_v41  ;;  %v1083_v53 = vpop.permute.xlu1 %1082 }
 0x253   :  { %1093 = vst.msk [vmem:[#allocation5 + $0x40] sm:$0xff] %vm1090_vm13, %v1083_v53  ;;  %v1028_v35 = vpop.permute.xlu0 %1027 }
 0x256   :  { %v1140_v54 = vpop.permute.xlu1 %1139 }
 0x257   :  { %1150 = vst.msk [vmem:[#allocation5 + $0x40] sm:$0xff] %vm1147_vm14, %v1140_v54  ;;  %v1085_v57 = vpop.permute.xlu0 %1084 }
 0x25a   :  { %v1197_v58 = vpop.permute.xlu1 %1196 }
 0x25b   :  { %1207 = vst.msk [vmem:[#allocation5 + $0x40] sm:$0xff] %vm1204_vm15, %v1197_v58  ;;  %v1142_v59 = vpop.permute.xlu0 %1141  ;;  %v3442_v58 = vld [vmem:[%s4603_s5] sm:$0xff]  }
 0x25e   :  { %v1254_v56 = vpop.permute.xlu1 %1253 }
 0x25f   :  { %1264 = vst.msk [vmem:[#allocation5 + $0x40] sm:$0xff] %vm1261_vm0, %v1254_v56  ;;  %v1199_v60 = vpop.permute.xlu0 %1198  ;;  %v3443_v56 = vld [vmem:[%s4603_s5 + $0x48] sm:$0xff]  }
 0x262   :  { %v1311_v61 = vpop.permute.xlu1 %1310 }
 0x263   :  { %1321 = vst.msk [vmem:[#allocation5 + $0x40] sm:$0xff] %vm1318_vm1, %v1311_v61  ;;  %v1256_v62 = vpop.permute.xlu0 %1255  ;;  %v3445_v61 = vld [vmem:[%s4603_s5 + $0x50] sm:$0xff]  }
 0x266   :  { %v914_v1 = vpop.permute.xlu1 %913 }
 0x267   :  { %923 = vst.msk [vmem:[#allocation5 + $0x60] sm:$0xff] %vm919_vm10, %v914_v1  ;;  %v1313_v2 = vpop.permute.xlu0 %1312 }
 0x268   :  { %980 = vst.msk [vmem:[#allocation5 + $0x60] sm:$0xff] %vm976_vm11, %v971_v52 }
 0x269   :  { %1037 = vst.msk [vmem:[#allocation5 + $0x60] sm:$0xff] %vm1033_vm12, %v1028_v35 }
 0x26a   :  { %1094 = vst.msk [vmem:[#allocation5 + $0x60] sm:$0xff] %vm1090_vm13, %v1085_v57  ;;  %v988_v3 = vpop.permute.xlu1 %987  ;;  %v1381_v55 = vld [vmem:[#allocation5 + $0x40] sm:$0xff] }
 0x26b   :  { %1151 = vst.msk [vmem:[#allocation5 + $0x60] sm:$0xff] %vm1147_vm14, %v1142_v59  ;;  %v646_v5 = vpop.permute.xlu0 %645  ;;  %3369 = vmatprep.mubr.bf16.mxu1 %v1381_v55  ;;  %v3441_v57 = vld [vmem:[%s4603_s5 + $0x40] sm:$0xff]  }
 0x26c   :  { %1208 = vst.msk [vmem:[#allocation5 + $0x60] sm:$0xff] %vm1204_vm15, %v1199_v60  ;;  %3197 = vmatprep.subr.bf16.mxu1 %v3441_v57  ;;  %v3444_v60 = vld [vmem:[%s4603_s5 + $0x8] sm:$0xff]  }
 0x26d   :  { %654 = vst.msk [vmem:[#allocation5 + $0xe0] sm:$0xff] %vm589_vm4, %v646_v5  ;;  %3198 = vmatpush3.bf16.msra.mxu1 %v3442_v58  ;;  %v3452_v58 = vld [vmem:[%s4603_s5 + $0x28] sm:$0xff]   ;;  %vm1640_vm4 = vcmask 392448  }
 0x26e   :  { %1265 = vst.msk [vmem:[#allocation5 + $0x60] sm:$0xff] %vm1261_vm0, %v1256_v62  ;;  %v1045_v36 = vpop.permute.xlu1 %1044  ;;  %3199 = vmatprep.subr.bf16.mxu1 %v3443_v56  ;;  %v3446_v62 = vld [vmem:[%s4603_s5 + $0x10] sm:$0xff]  }
 0x26f   :  { %1322 = vst.msk [vmem:[#allocation5 + $0x60] sm:$0xff] %vm1318_vm1, %v1313_v2  ;;  %v703_v0 = vpop.permute.xlu0 %702 }
 0x270   :  { %711 = vst.msk [vmem:[#allocation5 + $0xe0] sm:$0xff] %vm634_vm5, %v703_v0  ;;  %vm1669_vm5 = vcmask 523648  }
 0x271   :  { %3200 = vmatpush3.bf16.msra.mxu1 %v3444_v60 }
 0x272   :  { %v1102_v6 = vpop.permute.xlu1 %1101  ;;  %3201 = vmatprep.subr.bf16.mxu1 %v3445_v61 }
 0x273   :  { %v760_v4 = vpop.permute.xlu0 %759 }
 0x274   :  { %768 = vst.msk [vmem:[#allocation5 + $0xe0] sm:$0xff] %vm691_vm6, %v760_v4  ;;  %vm1698_vm6 = vcmask 654848  }
 0x275   :  { %3202 = vmatpush3.bf16.msra.mxu1 %v3446_v62 }
 0x276   :  { %v1382_v8 = vld [vmem:[#allocation5 + $0x60] sm:$0xff]  ;;  %v1159_v9 = vpop.permute.xlu1 %1158 }
 0x277   :  { %3370 = vmatmul.mubr.bf16.gmra.mrb[4].mxu1 %v1382_v8  ;;  %v817_v10 = vpop.permute.xlu0 %816 }
 0x278   :  { %3373 = vmatprep.mubr.bf16.mxu1 %v1383_v7  ;;  %825 = vst.msk [vmem:[#allocation5 + $0xe0] sm:$0xff] %vm748_vm7, %v817_v10  ;;  %vm1727_vm7 = vcmask 786048  }
 0x27a   :  { %v1216_v11 = vpop.permute.xlu1 %1215 }
 0x27b   :  { %v874_v38 = vpop.permute.xlu0 %873 }
 0x27c   :  { %882 = vst.msk [vmem:[#allocation5 + $0xe0] sm:$0xff] %vm805_vm8, %v874_v38  ;;  %vm1756_vm8 = vcmask 917248  }
 0x27e   :  { %v1273_v12 = vpop.permute.xlu1 %1272 }
 0x27f   :  { %3374 = vmatmul.mubr.bf16.gmra.mrb[8].mxu1 %v1384_v46  ;;  %v931_v15 = vpop.permute.xlu0 %930 }
 0x280   :  { %939 = vst.msk [vmem:[#allocation5 + $0xe0] sm:$0xff] %vm862_vm9, %v931_v15  ;;  %v3448_v15 = vld [vmem:[%s4603_s5 + $0x18] sm:$0xff]   ;;  %vm1785_vm9 = vcmask 1048448  }
 0x281   :  { %996 = vst.msk [vmem:[#allocation5 + $0xe0] sm:$0xff] %vm919_vm10, %v988_v3  ;;  %vm117_vm10 = vcmask 261120  }
 0x282   :  { %1053 = vst.msk [vmem:[#allocation5 + $0xe0] sm:$0xff] %vm976_vm11, %v1045_v36  ;;  %v1330_v16 = vpop.permute.xlu1 %1329  ;;  %vm2239_vm11 = vcmask 523520  }
 0x283   :  { %1110 = vst.msk [vmem:[#allocation5 + $0xe0] sm:$0xff] %vm1033_vm12, %v1102_v6  ;;  %v1328_v17 = vpop.permute.xlu0 %1327  ;;  %vm2251_vm12 = vcmask 785920  }
 0x284   :  { %1167 = vst.msk [vmem:[#allocation5 + $0xe0] sm:$0xff] %vm1090_vm13, %v1159_v9  ;;  %vm2266_vm13 = vcmask 1048320  }
 0x285   :  { %1337 = vst.msk [vmem:[#allocation5 + $0xc0] sm:$0xff] %vm1261_vm0, %v1328_v17 }
 0x286   :  { %1224 = vst.msk [vmem:[#allocation5 + $0xe0] sm:$0xff] %vm1147_vm14, %v1216_v11  ;;  %v1370_v37 = vpop.permute.xlu1 %1369  ;;  %v3447_v11 = vld [vmem:[%s4603_s5 + $0x58] sm:$0xff]   ;;  %vm2796_vm14 = vcmask 1041409  }
 0x287   :  { %1281 = vst.msk [vmem:[#allocation5 + $0xe0] sm:$0xff] %vm1204_vm15, %v1273_v12  ;;  %v1368_v18 = vpop.permute.xlu0 %1367  ;;  %3203 = vmatprep.subr.bf16.mxu1 %v3447_v11  ;;  %vm2839_vm15 = vcmask 523264  }
 0x288   :  { %1338 = vst.msk [vmem:[#allocation5 + $0xe0] sm:$0xff] %vm1261_vm0, %v1330_v16  ;;  %3204 = vmatpush3.bf16.msra.mxu1 %v3448_v15  ;;  %vm2841_vm0 = vcmask 785408  }
 0x289   :  { %1378 = vst.msk [vmem:[#allocation5 + $0xe0] sm:$0xff] %vm1318_vm1, %v1370_v37  ;;  %1377 = vst.msk [vmem:[#allocation5 + $0xc0] sm:$0xff] %vm1318_vm1, %v1368_v18  ;;  %vm3032_vm1 = vcmask 254976  }
 0x28a   :  { %118 = vst.msk [vmem:[#allocation4] sm:$0xff] %vm117_vm10, %v3559_v23  ;;  %119 = vst.msk [vmem:[#allocation4 + $0x20] sm:$0xff] %vm117_vm10, %v3559_v23 }
 0x28b   :  { %120 = vst.msk [vmem:[#allocation4 + $0x18] sm:$0xff] %vm117_vm10, %v3559_v23  ;;  %121 = vst.msk [vmem:[#allocation4 + $0x38] sm:$0xff] %vm117_vm10, %v3559_v23  ;;  %v3463_v23 = vld [vmem:[%s4605_s7 + $0xc0] sm:$0xff]  }
 0x290   :  { %v1385_v63 = vld [vmem:[#allocation5 + $0xc0] sm:$0xff] }
 0x291   :  { %v1386_v14 = vld [vmem:[#allocation5 + $0xe0] sm:$0xff]  ;;  %3377 = vmatprep.mubr.bf16.mxu1 %v1385_v63 }
 0x292   :  { %3378 = vmatmul.mubr.bf16.gmra.mrb[12].mxu1 %v1386_v14 }
 0x2f4   :  { %v3367_v39 = vpop.f32.mrb[0].mxu1 }
 0x2f5   :  { %v1492_v19 = vpop.f32.mrb[1].mxu1  ;;  %v1501_v20 = vadd.f32 %v3367_v39, %v4199_v27 }
 0x2f6   :  { %v3368_v21 = vpop.f32.mrb[2].mxu1  ;;  %v1493_v40 = vadd.f32 %v4199_v27, %v1492_v19 }
 0x2f7   :  { %v1495_v22 = vpop.f32.mrb[3].mxu1  ;;  %v1504_v30 = vadd.f32 %v3368_v21, %v4199_v27  ;;  %v1557_v33 = vmax.f32 %v1501_v20, 0.0 }
 0x2f8   :  { %v1496_v28 = vadd.f32 %v4199_v27, %v1495_v22  ;;  %v1555_v47 = vmax.f32 %v1493_v40, 0.0 }
 0x2f9   :  { %v1558_v49 = vmax.f32 %v1504_v30, 0.0 }
 0x2fa   :  { %v1556_v52 = vmax.f32 %v1496_v28, 0.0  ;;  %v3450_v28 = vld [vmem:[%s4603_s5 + $0x20] sm:$0xff]  }
 0x34a   :  { %v3371_v13 = vpop.f32.mrb[4].mxu1 }
 0x34b   :  { %v1508_v24 = vpop.f32.mrb[5].mxu1  ;;  %v1517_v2 = vadd.f32 %v3371_v13, %v4199_v27 }
 0x34c   :  { %v3372_v25 = vpop.f32.mrb[6].mxu1  ;;  %v1509_v3 = vadd.f32 %v4199_v27, %v1508_v24 }
 0x34d   :  { %v4194_v26 = vpop.f32.mrb[7].mxu1  ;;  %v1520_v38 = vadd.f32 %v3372_v25, %v4199_v27  ;;  %v1561_v16 = vmax.f32 %v1517_v2, 0.0  ;;  %v3453_v2 = vld [vmem:[%s4603_s5 + $0x70] sm:$0xff]  }
 0x34e   :  { %v1559_v17 = vmax.f32 %v1509_v3, 0.0  ;;  %v1512_v37 = vadd.f32 %v4199_v27, %v4194_v26  ;;  %v3454_v3 = vld [vmem:[%s4603_s5 + $0x30] sm:$0xff]  }
 0x34f   :  { %v1562_v30 = vmax.f32 %v1520_v38, 0.0 }
 0x352   :  { %v3375_v29 = vpop.f32.mrb[8].mxu1 }
 0x353   :  { %v1533_v31 = vadd.f32 %v3375_v29, %v4199_v27  ;;  %v1524_v41 = vpop.f32.mrb[9].mxu1  ;;  %v3449_v29 = vld [vmem:[%s4603_s5 + $0x60] sm:$0xff]  }
 0x354   :  { %v1525_v42 = vadd.f32 %v4199_v27, %v1524_v41  ;;  %v3376_v32 = vpop.f32.mrb[10].mxu1  ;;  %3205 = vmatprep.subr.bf16.mxu1 %v3449_v29 }
 0x355   :  { %v1565_v44 = vmax.f32 %v1533_v31, 0.0  ;;  %v1536_v43 = vadd.f32 %v3376_v32, %v4199_v27  ;;  %v1527_v45 = vpop.f32.mrb[11].mxu1  ;;  %3206 = vmatpush3.bf16.msra.mxu1 %v3450_v28 }
 0x356   :  { %v1563_v34 = vmax.f32 %v1525_v42, 0.0  ;;  %v1528_v48 = vadd.f32 %v4199_v27, %v1527_v45 }
 0x357   :  { %v1573_v50 = vmax.f32 %v1557_v33, %v1565_v44  ;;  %v1566_v51 = vmax.f32 %v1536_v43, 0.0 }
 0x358   :  { %v1571_v53 = vmax.f32 %v1555_v47, %v1563_v34  ;;  %v1564_v35 = vmax.f32 %v1528_v48, 0.0 }
 0x359   :  { %1581 = vst.msk [vmem:[#allocation3 + $0x18] sm:$0xff] %vm112_vm2, %v1573_v50  ;;  %v1574_v54 = vmax.f32 %v1558_v49, %v1566_v51 }
 0x35a   :  { %1579 = vst.msk [vmem:[#allocation3 + $0x8] sm:$0xff] %vm112_vm2, %v1571_v53  ;;  %v1572_v59 = vmax.f32 %v1556_v52, %v1564_v35  ;;  %v3451_v35 = vld [vmem:[%s4603_s5 + $0x68] sm:$0xff]  }
 0x35b   :  { %1582 = vst.msk [vmem:[#allocation3 + $0x20] sm:$0xff] %vm112_vm2, %v1574_v54  ;;  %3207 = vmatprep.subr.bf16.mxu1 %v3451_v35 }
 0x35c   :  { %1580 = vst.msk [vmem:[#allocation3 + $0x10] sm:$0xff] %vm112_vm2, %v1572_v59  ;;  %3208 = vmatpush3.bf16.msra.mxu1 %v3452_v58 }
 0x35d   :  { %3209 = vmatprep.subr.bf16.mxu1 %v3453_v2 }
 0x360   :  { %3210 = vmatpush3.bf16.msra.mxu1 %v3454_v3 }
 0x361   :  { %v1588_v34 = vld [vmem:[#allocation3 + $0x1] ss:$2 sm:$0xff] }
 0x362   :  { %v1821_v1 = vld [vmem:[#allocation3 + $0x1a] ss:$2 sm:$0xff]  ;;  %v1843_v8 = vld [vmem:[#allocation3 + $0x1b] ss:$2 sm:$0xff] }
 0x363   :  { %v1819_v55 = vld [vmem:[#allocation3 + $0xa] ss:$2 sm:$0xff]  ;;  %v1841_v4 = vld [vmem:[#allocation3 + $0xb] ss:$2 sm:$0xff] }
 0x364   :  { %v1600_v5 = vld [vmem:[#allocation3 + $0x2] ss:$2 sm:$0xff]  ;;  %v1602_v36 = vld [vmem:[#allocation3 + $0x12] ss:$2 sm:$0xff]  ;;  %v1826_v0 = vpack.c.bf16 %v1821_v1, %v1819_v55  ;;  %v1623_v7 = vld [vmem:[#allocation3 + $0x3] ss:$2 sm:$0xff]  ;;  %v4249_v21 = vpack.c.bf16 %v1843_v8, %v1841_v4 }
 0x365   :  { %v1607_v6 = vpack.c.bf16 %v1602_v36, %v1600_v5  ;;  %v3379_v9 = vpop.f32.mrb[12].mxu1  ;;  %v1625_v10 = vld [vmem:[#allocation3 + $0x13] ss:$2 sm:$0xff]  ;;  %v1869_v13 = vld [vmem:[#allocation3 + $0xc] ss:$2 sm:$0xff] }
 0x366   :  { %v1549_v46 = vadd.f32 %v3379_v9, %v4199_v27  ;;  %v1540_v12 = vpop.f32.mrb[13].mxu1  ;;  %1830 = vrot.lane.b32.xlu1 %v1826_v0, %s3560_s2  ;;  %1838 = vst.msk [vmem:[#allocation5 + $0x48] sm:$0xff] %vm112_vm2, %v1826_v0  ;;  %v4251_v22 = vpack.c.bf16 %v1625_v10, %v1623_v7  ;;  %v1871_v24 = vld [vmem:[#allocation3 + $0x1c] ss:$2 sm:$0xff]  ;;  %v1897_v45 = vld [vmem:[#allocation3 + $0xd] ss:$2 sm:$0xff] }
 0x367   :  { %1611 = vrot.lane.b32.xlu0 %v1607_v6, %s3560_s2  ;;  %1620 = vst.msk [vmem:[#allocation5 + $0x40] sm:$0xff] %vm112_vm2, %v1607_v6  ;;  %v1541_v18 = vadd.f32 %v4199_v27, %v1540_v12  ;;  %v3380_v63 = vpop.f32.mrb[14].mxu1  ;;  %v1652_v40 = vld [vmem:[#allocation3 + $0x4] ss:$2 sm:$0xff]  ;;  %v1654_v26 = vld [vmem:[#allocation3 + $0x14] ss:$2 sm:$0xff]  ;;  %v4265_v44 = vpack.c.bf16 %v1871_v24, %v1869_v13 }
 0x368   :  { %v1569_v14 = vmax.f32 %v1549_v46, 0.0  ;;  %v1552_v39 = vadd.f32 %v3380_v63, %v4199_v27  ;;  %v1543_v19 = vpop.f32.mrb[15].mxu1  ;;  %v4267_v43 = vpack.c.bf16 %v1654_v26, %v1652_v40  ;;  %v1899_v47 = vld [vmem:[#allocation3 + $0x1d] ss:$2 sm:$0xff]  ;;  %v1925_v60 = vld [vmem:[#allocation3 + $0xe] ss:$2 sm:$0xff] }
 0x369   :  { %v1567_v25 = vmax.f32 %v1541_v18, 0.0  ;;  %v1544_v20 = vadd.f32 %v4199_v27, %v1543_v19  ;;  %v1560_v27 = vmax.f32 %v1512_v37, 0.0  ;;  %v1681_v49 = vld [vmem:[#allocation3 + $0x5] ss:$2 sm:$0xff]  ;;  %v1683_v50 = vld [vmem:[#allocation3 + $0x15] ss:$2 sm:$0xff]  ;;  %v1904_v59 = vpack.c.bf16 %v1899_v47, %v1897_v45 }
 0x36a   :  { %v1577_v31 = vmax.f32 %v1561_v16, %v1569_v14  ;;  %v1570_v41 = vmax.f32 %v1552_v39, 0.0  ;;  %1852 = vrot.lane.b32.xlu1 %v4249_v21, %s3563_s16  ;;  %v1797_v51 = vld [vmem:[#allocation3 + $0x9] ss:$2 sm:$0xff]  ;;  %v1799_v52 = vld [vmem:[#allocation3 + $0x19] ss:$2 sm:$0xff]  ;;  %v1688_v56 = vpack.c.bf16 %v1683_v50, %v1681_v49 }
 0x36b   :  { %1634 = vrot.lane.b32.xlu0 %v4251_v22, %s3563_s16  ;;  %v1575_v42 = vmax.f32 %v1559_v17, %v1567_v25  ;;  %v1568_v32 = vmax.f32 %v1544_v20, 0.0  ;;  %v1590_v53 = vld [vmem:[#allocation3 + $0x11] ss:$2 sm:$0xff]  ;;  %v4279_v54 = vpack.c.bf16 %v1799_v52, %v1797_v51  ;;  %v1927_v61 = vld [vmem:[#allocation3 + $0x1e] ss:$2 sm:$0xff] }
 0x36c   :  { %1585 = vst.msk [vmem:[#allocation3 + $0x48] sm:$0xff] %vm112_vm2, %v1577_v31  ;;  %v1578_v33 = vmax.f32 %v1562_v30, %v1570_v41  ;;  %v1595_v57 = vpack.c.bf16 %v1590_v53, %v1588_v34  ;;  %v1710_v62 = vld [vmem:[#allocation3 + $0x6] ss:$2 sm:$0xff]  ;;  %v1712_v1 = vld [vmem:[#allocation3 + $0x16] ss:$2 sm:$0xff]  ;;  %v1932_v55 = vpack.c.bf16 %v1927_v61, %v1925_v60 }
 0x36d   :  { %1583 = vst.msk [vmem:[#allocation3 + $0x38] sm:$0xff] %vm112_vm2, %v1575_v42  ;;  %v1576_v48 = vmax.f32 %v1560_v27, %v1568_v32  ;;  %1806 = vst.msk [vmem:[#allocation5 + $0x8] sm:$0xff] %vm112_vm2, %v4279_v54  ;;  %v1717_v5 = vpack.c.bf16 %v1712_v1, %v1710_v62  ;;  %v1953_v36 = vld [vmem:[#allocation3 + $0xf] ss:$2 sm:$0xff]  ;;  %v1955_v0 = vld [vmem:[#allocation3 + $0x1f] ss:$2 sm:$0xff] }
 0x36e   :  { %1586 = vst.msk [vmem:[#allocation3 + $0x50] sm:$0xff] %vm112_vm2, %v1578_v33  ;;  %1880 = vrot.lane.b32.xlu1 %v4265_v44, %s3565_s28  ;;  %1597 = vst.msk [vmem:[#allocation5] sm:$0xff] %vm112_vm2, %v1595_v57  ;;  %v1739_v6 = vld [vmem:[#allocation3 + $0x7] ss:$2 sm:$0xff]  ;;  %v1741_v4 = vld [vmem:[#allocation3 + $0x17] ss:$2 sm:$0xff]  ;;  %v1960_v11 = vpack.c.bf16 %v1955_v0, %v1953_v36 }
 0x36f   :  { %1663 = vrot.lane.b32.xlu0 %v4267_v43, %s3565_s28  ;;  %1584 = vst.msk [vmem:[#allocation3 + $0x40] sm:$0xff] %vm112_vm2, %v1576_v48  ;;  %v1746_v38 = vpack.c.bf16 %v1741_v4, %v1739_v6  ;;  %v1768_v12 = vld [vmem:[#allocation3 + $0x8] ss:$2 sm:$0xff]  ;;  %v1770_v15 = vld [vmem:[#allocation3 + $0x18] ss:$2 sm:$0xff] }
 0x370   :  { %v1775_v17 = vpack.c.bf16 %v1770_v15, %v1768_v12  ;;  %v3455_v39 = vld [vmem:[%s4603_s5 + $0x78] sm:$0xff]   ;;  %v1983_v25 = vld [vmem:[#allocation3 + $0x20] ss:$2 sm:$0xff] }
 0x371   :  { %v3456_v19 = vld [vmem:[%s4603_s5 + $0x38] sm:$0xff]   ;;  %3211 = vmatprep.subr.bf16.mxu1 %v3455_v39 }
 0x372   :  { %1908 = vrot.lane.b32.xlu1 %v1904_v59, %s3554_s19  ;;  %3212 = vmatpush3.bf16.msra.mxu1 %v3456_v19 }
 0x373   :  { %1692 = vrot.lane.b32.xlu0 %v1688_v56, %s3554_s19  ;;  %3265 = vmatprep.subr.bf16.mxu1 %v3463_v23 }
 0x374   :  { %v1592_v63 = vld [vmem:[#allocation3 + $0x31] ss:$2 sm:$0xff] }
 0x375   :  { %v1825_v7 = vld [vmem:[#allocation3 + $0x4a] ss:$2 sm:$0xff]  ;;  %v1803_v18 = vld [vmem:[#allocation3 + $0x49] ss:$2 sm:$0xff] }
 0x376   :  { %1936 = vrot.lane.b32.xlu1 %v1932_v55, %s3568_s18  ;;  %v1604_v8 = vld [vmem:[#allocation3 + $0x32] ss:$2 sm:$0xff]  ;;  %v1606_v9 = vld [vmem:[#allocation3 + $0x42] ss:$2 sm:$0xff]  ;;  %v1801_v37 = vld [vmem:[#allocation3 + $0x39] ss:$2 sm:$0xff] }
 0x377   :  { %1721 = vrot.lane.b32.xlu0 %v1717_v5, %s3568_s18  ;;  %v1608_v10 = vpack.c.bf16 %v1606_v9, %v1604_v8  ;;  %v1823_v46 = vld [vmem:[#allocation3 + $0x3a] ss:$2 sm:$0xff]  ;;  %v4304_v14 = vpack.c.bf16 %v1803_v18, %v1801_v37  ;;  %v1594_v13 = vld [vmem:[#allocation3 + $0x41] ss:$2 sm:$0xff] }
 0x378   :  { %v1827_v16 = vpack.c.bf16 %v1825_v7, %v1823_v46  ;;  %v1596_v24 = vpack.c.bf16 %v1594_v13, %v1592_v63  ;;  %v1629_v40 = vld [vmem:[#allocation3 + $0x43] ss:$2 sm:$0xff]  ;;  %v1656_v29 = vld [vmem:[#allocation3 + $0x34] ss:$2 sm:$0xff]  ;;  %v1658_v30 = vld [vmem:[#allocation3 + $0x44] ss:$2 sm:$0xff] }
 0x379   :  { %1621 = vst.msk [vmem:[#allocation5 + $0x60] sm:$0xff] %vm112_vm2, %v1608_v10  ;;  %1807 = vst.msk [vmem:[#allocation5 + $0x28] sm:$0xff] %vm112_vm2, %v4304_v14  ;;  %v1660_v31 = vpack.c.bf16 %v1658_v30, %v1656_v29  ;;  %v1847_v41 = vld [vmem:[#allocation3 + $0x4b] ss:$2 sm:$0xff]  ;;  %v1845_v42 = vld [vmem:[#allocation3 + $0x3b] ss:$2 sm:$0xff] }
 0x37a   :  { %1964 = vrot.lane.b32.xlu1 %v1960_v11, %s3570_s20  ;;  %1839 = vst.msk [vmem:[#allocation5 + $0x68] sm:$0xff] %vm112_vm2, %v1827_v16  ;;  %1598 = vst.msk [vmem:[#allocation5 + $0x20] sm:$0xff] %vm112_vm2, %v1596_v24  ;;  %v1685_v28 = vld [vmem:[#allocation3 + $0x35] ss:$2 sm:$0xff]  ;;  %v1687_v27 = vld [vmem:[#allocation3 + $0x45] ss:$2 sm:$0xff]  ;;  %v1849_v33 = vpack.c.bf16 %v1847_v41, %v1845_v42 }
 0x37b   :  { %1750 = vrot.lane.b32.xlu0 %v1746_v38, %s3570_s20  ;;  %v1689_v32 = vpack.c.bf16 %v1687_v27, %v1685_v28  ;;  %v1716_v45 = vld [vmem:[#allocation3 + $0x46] ss:$2 sm:$0xff]  ;;  %v1743_v49 = vld [vmem:[#allocation3 + $0x37] ss:$2 sm:$0xff]  ;;  %v1745_v50 = vld [vmem:[#allocation3 + $0x47] ss:$2 sm:$0xff] }
 0x37c   :  { %v1873_v47 = vld [vmem:[#allocation3 + $0x3c] ss:$2 sm:$0xff]  ;;  %v1901_v51 = vld [vmem:[#allocation3 + $0x3d] ss:$2 sm:$0xff]  ;;  %v1903_v52 = vld [vmem:[#allocation3 + $0x4d] ss:$2 sm:$0xff]  ;;  %v1747_v53 = vpack.c.bf16 %v1745_v50, %v1743_v49 }
 0x37d   :  { %v1905_v35 = vpack.c.bf16 %v1903_v52, %v1901_v51  ;;  %v1774_v57 = vld [vmem:[#allocation3 + $0x48] ss:$2 sm:$0xff]  ;;  %v1957_v61 = vld [vmem:[#allocation3 + $0x3f] ss:$2 sm:$0xff]  ;;  %v1959_v62 = vld [vmem:[#allocation3 + $0x4f] ss:$2 sm:$0xff] }
 0x37e   :  { %1860 = vrot.lane.b32.xlu1 %v4249_v21, %s3560_s2  ;;  %v1981_v21 = vld [vmem:[#allocation3 + $0x10] ss:$2 sm:$0xff]  ;;  %v1961_v1 = vpack.c.bf16 %v1959_v62, %v1957_v61  ;;  %v1985_v2 = vld [vmem:[#allocation3 + $0x40] ss:$2 sm:$0xff]  ;;  %vm3044_vm2 = vcmask 1024  }
 0x37f   :  { %1779 = vrot.lane.b32.xlu0 %v1775_v17, %s3572_s22  ;;  %v1988_v20 = vpack.c.bf16 %v1983_v25, %v1981_v21  ;;  %v1929_v58 = vld [vmem:[#allocation3 + $0x3e] ss:$2 sm:$0xff] }
 0x380   :  { %v1987_v3 = vld [vmem:[#allocation3 + $0x50] ss:$2 sm:$0xff] }
 0x382   :  { %1888 = vrot.lane.b32.xlu1 %v4265_v44, %s3563_s16  ;;  %v1875_v44 = vld [vmem:[#allocation3 + $0x4c] ss:$2 sm:$0xff] }
 0x383   :  { %1643 = vrot.lane.b32.xlu0 %v4251_v22, %s3560_s2  ;;  %v1627_v22 = vld [vmem:[#allocation3 + $0x33] ss:$2 sm:$0xff]  ;;  %v1877_v48 = vpack.c.bf16 %v1875_v44, %v1873_v47 }
 0x384   :  { %v1631_v26 = vpack.c.bf16 %v1629_v40, %v1627_v22 }
 0x386   :  { %1916 = vrot.lane.b32.xlu1 %v1904_v59, %s3565_s28  ;;  %v1931_v59 = vld [vmem:[#allocation3 + $0x4e] ss:$2 sm:$0xff] }
 0x387   :  { %1672 = vrot.lane.b32.xlu0 %v4267_v43, %s3563_s16  ;;  %v1714_v43 = vld [vmem:[#allocation3 + $0x36] ss:$2 sm:$0xff]  ;;  %v1933_v60 = vpack.c.bf16 %v1931_v59, %v1929_v58 }
 0x388   :  { %v1718_v34 = vpack.c.bf16 %v1716_v45, %v1714_v43 }
 0x38a   :  { %1944 = vrot.lane.b32.xlu1 %v1932_v55, %s3554_s19  ;;  %v1989_v55 = vpack.c.bf16 %v1987_v3, %v1985_v2 }
 0x38b   :  { %1701 = vrot.lane.b32.xlu0 %v1688_v56, %s3565_s28 }
 0x38e   :  { %1972 = vrot.lane.b32.xlu1 %v1960_v11, %s3568_s18 }
 0x38f   :  { %1730 = vrot.lane.b32.xlu0 %v1717_v5, %s3554_s19 }
 0x392   :  { %1992 = vrot.lane.b32.xlu1 %v1988_v20, %s3570_s20 }
 0x393   :  { %1759 = vrot.lane.b32.xlu0 %v1746_v38, %s3568_s18 }
 0x396   :  { %1613 = vrot.lane.b32.xlu1 %v1608_v10, %s3560_s2 }
 0x397   :  { %1788 = vrot.lane.b32.xlu0 %v1775_v17, %s3570_s20 }
 0x39a   :  { %1636 = vrot.lane.b32.xlu1 %v1631_v26, %s3563_s16 }
 0x39b   :  { %1810 = vrot.lane.b32.xlu0 %v4279_v54, %s3572_s22  ;;  %v1772_v54 = vld [vmem:[#allocation3 + $0x38] ss:$2 sm:$0xff] }
 0x39c   :  { %v1776_v56 = vpack.c.bf16 %v1774_v57, %v1772_v54 }
 0x39e   :  { %1665 = vrot.lane.b32.xlu1 %v1660_v31, %s3565_s28 }
 0x39f   :  { %1832 = vrot.lane.b32.xlu0 %v1827_v16, %s3560_s2 }
 0x3a2   :  { %1694 = vrot.lane.b32.xlu1 %v1689_v32, %s3554_s19 }
 0x3a3   :  { %1854 = vrot.lane.b32.xlu0 %v1849_v33, %s3563_s16 }
 0x3a6   :  { %1723 = vrot.lane.b32.xlu1 %v1718_v34, %s3568_s18 }
 0x3a7   :  { %1882 = vrot.lane.b32.xlu0 %v1877_v48, %s3565_s28 }
 0x3aa   :  { %1752 = vrot.lane.b32.xlu1 %v1747_v53, %s3570_s20 }
 0x3ab   :  { %1910 = vrot.lane.b32.xlu0 %v1905_v35, %s3554_s19 }
 0x3ae   :  { %1781 = vrot.lane.b32.xlu1 %v1776_v56, %s3572_s22 }
 0x3af   :  { %1938 = vrot.lane.b32.xlu0 %v1933_v60, %s3568_s18 }
 0x3b2   :  { %1645 = vrot.lane.b32.xlu1 %v1631_v26, %s3560_s2 }
 0x3b3   :  { %1966 = vrot.lane.b32.xlu0 %v1961_v1, %s3570_s20 }
 0x3b6   :  { %1674 = vrot.lane.b32.xlu1 %v1660_v31, %s3563_s16 }
 0x3b7   :  { %1862 = vrot.lane.b32.xlu0 %v1849_v33, %s3560_s2 }
 0x3ba   :  { %1703 = vrot.lane.b32.xlu1 %v1689_v32, %s3565_s28 }
 0x3bb   :  { %1890 = vrot.lane.b32.xlu0 %v1877_v48, %s3563_s16 }
 0x3be   :  { %1732 = vrot.lane.b32.xlu1 %v1718_v34, %s3554_s19 }
 0x3bf   :  { %1918 = vrot.lane.b32.xlu0 %v1905_v35, %s3565_s28 }
 0x3c2   :  { %1761 = vrot.lane.b32.xlu1 %v1747_v53, %s3568_s18 }
 0x3c3   :  { %1946 = vrot.lane.b32.xlu0 %v1933_v60, %s3554_s19 }
 0x3c6   :  { %1790 = vrot.lane.b32.xlu1 %v1776_v56, %s3570_s20 }
 0x3c7   :  { %1974 = vrot.lane.b32.xlu0 %v1961_v1, %s3568_s18 }
 0x3ca   :  { %1812 = vrot.lane.b32.xlu1 %v4304_v14, %s3572_s22 }
 0x3cb   :  { %1994 = vrot.lane.b32.xlu0 %v1989_v55, %s3570_s20 }
 0x3d8   :  { %v1831_v5 = vpop.permute.xlu1 %1830 }
 0x3d9   :  { %v1612_v36 = vpop.permute.xlu0 %1611  ;;  %1836 = vst.msk [vmem:[#allocation5 + $0x8] sm:$0xff] %vm1617_vm3, %v1831_v5 }
 0x3da   :  { %1618 = vst.msk [vmem:[#allocation5] sm:$0xff] %vm1617_vm3, %v1612_v36 }
 0x3dc   :  { %v1853_v0 = vpop.permute.xlu1 %1852 }
 0x3dd   :  { %v1635_v6 = vpop.permute.xlu0 %1634  ;;  %1858 = vst.msk [vmem:[#allocation5 + $0x8] sm:$0xff] %vm1640_vm4, %v1853_v0 }
 0x3de   :  { %1641 = vst.msk [vmem:[#allocation5] sm:$0xff] %vm1640_vm4, %v1635_v6  ;;  %v3457_v6 = vld [vmem:[%s4605_s7 + $0x40] sm:$0xff]  }
 0x3df   :  { %3237 = vmatprep.subr.bf16.mxu0 %v3457_v6  ;;  %v3477_v6 = vld [vmem:[%s4605_s7 + $0x98] sm:$0xff]  }
 0x3e0   :  { %v1881_v4 = vpop.permute.xlu1 %1880 }
 0x3e1   :  { %v1664_v8 = vpop.permute.xlu0 %1663  ;;  %1886 = vst.msk [vmem:[#allocation5 + $0x8] sm:$0xff] %vm1669_vm5, %v1881_v4  ;;  %v3458_v4 = vld [vmem:[%s4605_s7] sm:$0xff]  }
 0x3e2   :  { %1670 = vst.msk [vmem:[#allocation5] sm:$0xff] %vm1669_vm5, %v1664_v8  ;;  %v3459_v8 = vld [vmem:[%s4605_s7 + $0x48] sm:$0xff]   ;;  %3238 = vmatpush3.bf16.msra.mxu0 %v3458_v4  ;;  %v3478_v4 = vld [vmem:[%s4605_s7 + $0x30] sm:$0xff]  }
 0x3e3   :  { %3239 = vmatprep.subr.bf16.mxu0 %v3459_v8 }
 0x3e4   :  { %v1909_v9 = vpop.permute.xlu1 %1908 }
 0x3e5   :  { %v1693_v7 = vpop.permute.xlu0 %1692  ;;  %1914 = vst.msk [vmem:[#allocation5 + $0x8] sm:$0xff] %vm1698_vm6, %v1909_v9  ;;  %v3465_v9 = vld [vmem:[%s4605_s7 + $0x80] sm:$0xff]  }
 0x3e6   :  { %1699 = vst.msk [vmem:[#allocation5] sm:$0xff] %vm1698_vm6, %v1693_v7  ;;  %v3460_v7 = vld [vmem:[%s4605_s7 + $0x8] sm:$0xff]  }
 0x3e7   :  { %3240 = vmatpush3.bf16.msra.mxu0 %v3460_v7 }
 0x3e8   :  { %v1937_v10 = vpop.permute.xlu1 %1936 }
 0x3e9   :  { %v1722_v11 = vpop.permute.xlu0 %1721  ;;  %1942 = vst.msk [vmem:[#allocation5 + $0x8] sm:$0xff] %vm1727_vm7, %v1937_v10  ;;  %v3461_v10 = vld [vmem:[%s4605_s7 + $0x50] sm:$0xff]  }
 0x3ea   :  { %1728 = vst.msk [vmem:[#allocation5] sm:$0xff] %vm1727_vm7, %v1722_v11  ;;  %v3462_v11 = vld [vmem:[%s4605_s7 + $0x10] sm:$0xff]   ;;  %3241 = vmatprep.subr.bf16.mxu0 %v3461_v10 }
 0x3eb   :  { %3242 = vmatpush3.bf16.msra.mxu0 %v3462_v11 }
 0x3ec   :  { %v1965_v38 = vpop.permute.xlu1 %1964 }
 0x3ed   :  { %v1751_v46 = vpop.permute.xlu0 %1750  ;;  %1970 = vst.msk [vmem:[#allocation5 + $0x8] sm:$0xff] %vm1756_vm8, %v1965_v38  ;;  %v3464_v38 = vld [vmem:[%s4605_s7 + $0x58] sm:$0xff]  }
 0x3ee   :  { %1757 = vst.msk [vmem:[#allocation5] sm:$0xff] %vm1756_vm8, %v1751_v46  ;;  %v3466_v46 = vld [vmem:[%s4605_s7 + $0x18] sm:$0xff]   ;;  %3243 = vmatprep.subr.bf16.mxu0 %v3464_v38 }
 0x3ef   :  { %3244 = vmatpush3.bf16.msra.mxu0 %v3466_v46 }
 0x3f0   :  { %v1861_v12 = vpop.permute.xlu1 %1860 }
 0x3f1   :  { %v1780_v15 = vpop.permute.xlu0 %1779  ;;  %1866 = vst.msk [vmem:[#allocation5 + $0x48] sm:$0xff] %vm1617_vm3, %v1861_v12 }
 0x3f2   :  { %1786 = vst.msk [vmem:[#allocation5] sm:$0xff] %vm1785_vm9, %v1780_v15 }
 0x3f4   :  { %v1889_v16 = vpop.permute.xlu1 %1888  ;;  %v2001_v37 = vld [vmem:[#allocation5 + $0x8] sm:$0xff] }
 0x3f5   :  { %v1644_v17 = vpop.permute.xlu0 %1643  ;;  %1894 = vst.msk [vmem:[#allocation5 + $0x48] sm:$0xff] %vm1640_vm4, %v1889_v16  ;;  %2175 = vmatprep.mubr.bf16.mxu1 %v2001_v37 }
 0x3f6   :  { %1649 = vst.msk [vmem:[#allocation5 + $0x40] sm:$0xff] %vm1617_vm3, %v1644_v17 }
 0x3f8   :  { %v1917_v18 = vpop.permute.xlu1 %1916 }
 0x3f9   :  { %v1673_v63 = vpop.permute.xlu0 %1672  ;;  %v2000_v14 = vld [vmem:[#allocation5] sm:$0xff]  ;;  %1922 = vst.msk [vmem:[#allocation5 + $0x48] sm:$0xff] %vm1669_vm5, %v1917_v18 }
 0x3fa   :  { %1678 = vst.msk [vmem:[#allocation5 + $0x40] sm:$0xff] %vm1640_vm4, %v1673_v63  ;;  %2176 = vmatmul.mubr.bf16.vlgmr.msra.gmra.mrb[16].mxu1 %v2000_v14  ;;  %v3095_v63 = vld [vmem:[%s4604_s6] ss:$0 sm:$0xff] }
 0x3fb   :  { %3266 = vmatpush3.bf16.msra.mxu1 %v3465_v9 }
 0x3fc   :  { %v1945_v39 = vpop.permute.xlu1 %1944 }
 0x3fd   :  { %v1702_v19 = vpop.permute.xlu0 %1701  ;;  %1950 = vst.msk [vmem:[#allocation5 + $0x48] sm:$0xff] %vm1698_vm6, %v1945_v39 }
 0x3fe   :  { %1707 = vst.msk [vmem:[#allocation5 + $0x40] sm:$0xff] %vm1669_vm5, %v1702_v19 }
 0x400   :  { %v1973_v13 = vpop.permute.xlu1 %1972 }
 0x401   :  { %v1731_v24 = vpop.permute.xlu0 %1730  ;;  %1978 = vst.msk [vmem:[#allocation5 + $0x48] sm:$0xff] %vm1727_vm7, %v1973_v13 }
 0x402   :  { %1736 = vst.msk [vmem:[#allocation5 + $0x40] sm:$0xff] %vm1698_vm6, %v1731_v24 }
 0x404   :  { %v1993_v21 = vpop.permute.xlu1 %1992 }
 0x405   :  { %v1760_v25 = vpop.permute.xlu0 %1759  ;;  %1998 = vst.msk [vmem:[#allocation5 + $0x48] sm:$0xff] %vm1756_vm8, %v1993_v21 }
 0x406   :  { %1765 = vst.msk [vmem:[#allocation5 + $0x40] sm:$0xff] %vm1727_vm7, %v1760_v25 }
 0x408   :  { %v1614_v20 = vpop.permute.xlu1 %1613 }
 0x409   :  { %v1789_v22 = vpop.permute.xlu0 %1788  ;;  %1619 = vst.msk [vmem:[#allocation5 + $0x20] sm:$0xff] %vm1617_vm3, %v1614_v20 }
 0x40a   :  { %1794 = vst.msk [vmem:[#allocation5 + $0x40] sm:$0xff] %vm1756_vm8, %v1789_v22 }
 0x40c   :  { %v1637_v40 = vpop.permute.xlu1 %1636  ;;  %v2005_v52 = vld [vmem:[#allocation5 + $0x48] sm:$0xff] }
 0x40d   :  { %v1811_v26 = vpop.permute.xlu0 %1810  ;;  %1642 = vst.msk [vmem:[#allocation5 + $0x20] sm:$0xff] %vm1640_vm4, %v1637_v40 }
 0x40e   :  { %1816 = vst.msk [vmem:[#allocation5 + $0x40] sm:$0xff] %vm1785_vm9, %v1811_v26 }
 0x410   :  { %v1666_v29 = vpop.permute.xlu1 %1665 }
 0x411   :  { %v1833_v30 = vpop.permute.xlu0 %1832  ;;  %1671 = vst.msk [vmem:[#allocation5 + $0x20] sm:$0xff] %vm1669_vm5, %v1666_v29 }
 0x412   :  { %1837 = vst.msk [vmem:[#allocation5 + $0x28] sm:$0xff] %vm1617_vm3, %v1833_v30 }
 0x414   :  { %v1695_v31 = vpop.permute.xlu1 %1694 }
 0x415   :  { %v1855_v41 = vpop.permute.xlu0 %1854  ;;  %1700 = vst.msk [vmem:[#allocation5 + $0x20] sm:$0xff] %vm1698_vm6, %v1695_v31  ;;  %v2004_v58 = vld [vmem:[#allocation5 + $0x40] sm:$0xff] }
 0x416   :  { %1859 = vst.msk [vmem:[#allocation5 + $0x28] sm:$0xff] %vm1640_vm4, %v1855_v41 }
 0x418   :  { %v1724_v28 = vpop.permute.xlu1 %1723 }
 0x419   :  { %v1883_v27 = vpop.permute.xlu0 %1882  ;;  %1729 = vst.msk [vmem:[#allocation5 + $0x20] sm:$0xff] %vm1727_vm7, %v1724_v28 }
 0x41a   :  { %1887 = vst.msk [vmem:[#allocation5 + $0x28] sm:$0xff] %vm1669_vm5, %v1883_v27 }
 0x41c   :  { %v1753_v42 = vpop.permute.xlu1 %1752 }
 0x41d   :  { %v1911_v32 = vpop.permute.xlu0 %1910  ;;  %1758 = vst.msk [vmem:[#allocation5 + $0x20] sm:$0xff] %vm1756_vm8, %v1753_v42 }
 0x41e   :  { %1915 = vst.msk [vmem:[#allocation5 + $0x28] sm:$0xff] %vm1698_vm6, %v1911_v32 }
 0x420   :  { %v1782_v33 = vpop.permute.xlu1 %1781 }
 0x421   :  { %v1939_v44 = vpop.permute.xlu0 %1938  ;;  %1787 = vst.msk [vmem:[#allocation5 + $0x20] sm:$0xff] %vm1785_vm9, %v1782_v33 }
 0x422   :  { %1943 = vst.msk [vmem:[#allocation5 + $0x28] sm:$0xff] %vm1727_vm7, %v1939_v44 }
 0x424   :  { %v1646_v43 = vpop.permute.xlu1 %1645 }
 0x425   :  { %v1967_v45 = vpop.permute.xlu0 %1966  ;;  %1650 = vst.msk [vmem:[#allocation5 + $0x60] sm:$0xff] %vm1617_vm3, %v1646_v43 }
 0x426   :  { %1971 = vst.msk [vmem:[#allocation5 + $0x28] sm:$0xff] %vm1756_vm8, %v1967_v45 }
 0x428   :  { %v1675_v47 = vpop.permute.xlu1 %1674  ;;  %v2002_v51 = vld [vmem:[#allocation5 + $0x20] sm:$0xff] }
 0x429   :  { %v1863_v34 = vpop.permute.xlu0 %1862  ;;  %1679 = vst.msk [vmem:[#allocation5 + $0x60] sm:$0xff] %vm1640_vm4, %v1675_v47 }
 0x42a   :  { %1867 = vst.msk [vmem:[#allocation5 + $0x68] sm:$0xff] %vm1617_vm3, %v1863_v34 }
 0x42c   :  { %v1704_v48 = vpop.permute.xlu1 %1703 }
 0x42d   :  { %v1891_v49 = vpop.permute.xlu0 %1890  ;;  %v2003_v50 = vld [vmem:[#allocation5 + $0x28] sm:$0xff]  ;;  %1708 = vst.msk [vmem:[#allocation5 + $0x60] sm:$0xff] %vm1669_vm5, %v1704_v48 }
 0x42e   :  { %1895 = vst.msk [vmem:[#allocation5 + $0x68] sm:$0xff] %vm1640_vm4, %v1891_v49  ;;  %2183 = vmatprep.mubr.bf16.mxu1 %v2003_v50 }
 0x42f   :  { %2184 = vmatmul.mubr.bf16.gmra.mrb[20].mxu1 %v2002_v51 }
 0x430   :  { %2191 = vmatprep.mubr.bf16.mxu1 %v2005_v52  ;;  %v1733_v53 = vpop.permute.xlu1 %1732 }
 0x431   :  { %v1919_v35 = vpop.permute.xlu0 %1918  ;;  %1737 = vst.msk [vmem:[#allocation5 + $0x60] sm:$0xff] %vm1698_vm6, %v1733_v53 }
 0x432   :  { %1923 = vst.msk [vmem:[#allocation5 + $0x68] sm:$0xff] %vm1669_vm5, %v1919_v35  ;;  %v3467_v35 = vld [vmem:[%s4605_s7 + $0xc8] sm:$0xff]  }
 0x433   :  { %3267 = vmatprep.subr.bf16.mxu1 %v3467_v35  ;;  %v3488_v35 = vld [vmem:[%s4605_s7 + $0xb8] sm:$0xff]  }
 0x434   :  { %v1762_v54 = vpop.permute.xlu1 %1761 }
 0x435   :  { %v1947_v57 = vpop.permute.xlu0 %1946  ;;  %1766 = vst.msk [vmem:[#allocation5 + $0x60] sm:$0xff] %vm1727_vm7, %v1762_v54  ;;  %v3468_v54 = vld [vmem:[%s4605_s7 + $0x60] sm:$0xff]  }
 0x436   :  { %1951 = vst.msk [vmem:[#allocation5 + $0x68] sm:$0xff] %vm1698_vm6, %v1947_v57  ;;  %v3469_v57 = vld [vmem:[%s4605_s7 + $0x88] sm:$0xff]   ;;  %3245 = vmatprep.subr.bf16.mxu0 %v3468_v54 }
 0x437   :  { %2192 = vmatmul.mubr.bf16.gmra.mrb[24].mxu1 %v2004_v58 }
 0x438   :  { %v1791_v59 = vpop.permute.xlu1 %1790  ;;  %3268 = vmatpush3.bf16.msra.mxu1 %v3469_v57 }
 0x439   :  { %v1975_v56 = vpop.permute.xlu0 %1974  ;;  %1795 = vst.msk [vmem:[#allocation5 + $0x60] sm:$0xff] %vm1756_vm8, %v1791_v59  ;;  %v3470_v59 = vld [vmem:[%s4605_s7 + $0x20] sm:$0xff]  }
 0x43a   :  { %1979 = vst.msk [vmem:[#allocation5 + $0x68] sm:$0xff] %vm1727_vm7, %v1975_v56  ;;  %3246 = vmatpush3.bf16.msra.mxu0 %v3470_v59  ;;  %v3471_v56 = vld [vmem:[%s4605_s7 + $0xd0] sm:$0xff]  }
 0x43b   :  { %3269 = vmatprep.subr.bf16.mxu1 %v3471_v56 }
 0x43c   :  { %v1813_v60 = vpop.permute.xlu1 %1812 }
 0x43d   :  { %v1995_v61 = vpop.permute.xlu0 %1994  ;;  %1817 = vst.msk [vmem:[#allocation5 + $0x60] sm:$0xff] %vm1785_vm9, %v1813_v60  ;;  %v3472_v60 = vld [vmem:[%s4605_s7 + $0x68] sm:$0xff]  }
 0x43e   :  { %1999 = vst.msk [vmem:[#allocation5 + $0x68] sm:$0xff] %vm1756_vm8, %v1995_v61  ;;  %v3473_v61 = vld [vmem:[%s4605_s7 + $0x90] sm:$0xff]   ;;  %3247 = vmatprep.subr.bf16.mxu0 %v3472_v60 }
 0x43f   :  { %3270 = vmatpush3.bf16.msra.mxu1 %v3473_v61 }
 0x444   :  { %v2006_v1 = vld [vmem:[#allocation5 + $0x60] sm:$0xff] }
 0x445   :  { %v2007_v62 = vld [vmem:[#allocation5 + $0x68] sm:$0xff] }
 0x446   :  { %2199 = vmatprep.mubr.bf16.mxu1 %v2007_v62  ;;  %v3474_v62 = vld [vmem:[%s4605_s7 + $0x28] sm:$0xff]  }
 0x447   :  { %2200 = vmatmul.mubr.bf16.gmra.mrb[28].mxu1 %v2006_v1  ;;  %3248 = vmatpush3.bf16.msra.mxu0 %v3474_v62 }
 0x4cd   :  { %v3213_v2 = vpop.f32.mrb[16].mxu1 }
 0x4ce   :  { %v3214_v3 = vpop.f32.mrb[17].mxu1 }
 0x4cf   :  { %v3215_v55 = vadd.f32 %v3214_v3, %v3213_v2  ;;  %v3216_v5 = vpop.f32.mrb[18].mxu1 }
 0x4d0   :  { %v3217_v36 = vpop.f32.mrb[19].mxu1 }
 0x4d1   :  { %v3218_v0 = vadd.f32 %v3217_v36, %v3216_v5  ;;  %v2178_v19 = vadd.f32 %v3215_v55, %v3095_v63  ;;  %v3475_v55 = vld [vmem:[%s4605_s7 + $0xd8] sm:$0xff]   ;;  %v3476_v5 = vld [vmem:[%s4605_s7 + $0x70] sm:$0xff]  }
 0x4d2   :  { %3271 = vmatprep.subr.bf16.mxu1 %v3475_v55  ;;  %3249 = vmatprep.subr.bf16.mxu0 %v3476_v5 }
 0x4d3   :  { %v2181_v25 = vadd.f32 %v3218_v0, %v3095_v63  ;;  %v2208_v40 = vmax.f32 %v2178_v19, 0.0  ;;  %3272 = vmatpush3.bf16.msra.mxu1 %v3477_v6  ;;  %3250 = vmatpush3.bf16.msra.mxu0 %v3478_v4 }
 0x4d5   :  { %v2209_v30 = vmax.f32 %v2181_v25, 0.0 }
 0x502   :  { %v3219_v12 = vpop.f32.mrb[20].mxu1 }
 0x503   :  { %v3220_v15 = vpop.f32.mrb[21].mxu1 }
 0x504   :  { %v3221_v16 = vadd.f32 %v3220_v15, %v3219_v12  ;;  %v3222_v17 = vpop.f32.mrb[22].mxu1 }
 0x505   :  { %v3223_v37 = vpop.f32.mrb[23].mxu1 }
 0x506   :  { %v3224_v18 = vadd.f32 %v3223_v37, %v3222_v17  ;;  %v2186_v32 = vadd.f32 %v3221_v16, %v3095_v63 }
 0x508   :  { %v2189_v45 = vadd.f32 %v3224_v18, %v3095_v63  ;;  %v2210_v48 = vmax.f32 %v2186_v32, 0.0 }
 0x50a   :  { %v3225_v14 = vpop.f32.mrb[24].mxu1  ;;  %v2211_v51 = vmax.f32 %v2189_v45, 0.0  ;;  %v3485_v45 = vld [vmem:[%s4605_s7 + $0xf0] sm:$0xff]  }
 0x50b   :  { %v3226_v39 = vpop.f32.mrb[25].mxu1 }
 0x50c   :  { %v3227_v13 = vadd.f32 %v3226_v39, %v3225_v14  ;;  %v3228_v24 = vpop.f32.mrb[26].mxu1 }
 0x50d   :  { %v3229_v21 = vpop.f32.mrb[27].mxu1 }
 0x50e   :  { %v2194_v20 = vadd.f32 %v3227_v13, %v3095_v63  ;;  %v3230_v22 = vadd.f32 %v3229_v21, %v3228_v24 }
 0x510   :  { %v2212_v26 = vmax.f32 %v2194_v20, 0.0  ;;  %v2197_v29 = vadd.f32 %v3230_v22, %v3095_v63 }
 0x512   :  { %v2216_v31 = vmax.f32 %v2208_v40, %v2212_v26  ;;  %v2213_v41 = vmax.f32 %v2197_v29, 0.0  ;;  %v3479_v29 = vld [vmem:[%s4605_s7 + $0xe0] sm:$0xff]  }
 0x513   :  { %3273 = vmatprep.subr.bf16.mxu1 %v3479_v29  ;;  %v3496_v29 = vld [vmem:[#allocation9 + $0x18] sm:$0xff]  }
 0x514   :  { %2220 = vst.msk [vmem:[#allocation4 + $0x8] sm:$0xff] %vm117_vm10, %v2216_v31  ;;  %v2217_v28 = vmax.f32 %v2209_v30, %v2213_v41  ;;  %v3480_v30 = vld [vmem:[%s4605_s7 + $0x78] sm:$0xff]   ;;  %v3481_v31 = vld [vmem:[%s4605_s7 + $0xa0] sm:$0xff]  }
 0x515   :  { %3251 = vmatprep.subr.bf16.mxu0 %v3480_v30  ;;  %3274 = vmatpush3.bf16.msra.mxu1 %v3481_v31  ;;  %v3497_v30 = vld [vmem:[#allocation9 + $0x60] sm:$0xff]  }
 0x516   :  { %2221 = vst.msk [vmem:[#allocation4 + $0x10] sm:$0xff] %vm117_vm10, %v2217_v28  ;;  %v3482_v28 = vld [vmem:[%s4605_s7 + $0x38] sm:$0xff]   ;;  %v3498_v31 = vld [vmem:[#allocation9 + $0x20] sm:$0xff]  }
 0x517   :  { %3252 = vmatpush3.bf16.msra.mxu0 %v3482_v28  ;;  %v3500_v28 = vld [vmem:[#allocation9 + $0x28] sm:$0xff]  }
 0x51a   :  { %v3231_v27 = vpop.f32.mrb[28].mxu1 }
 0x51b   :  { %v3232_v42 = vpop.f32.mrb[29].mxu1  ;;  %v2225_v1 = vld [vmem:[#allocation4 + $0x1] ss:$2 sm:$0xff] }
 0x51c   :  { %v3233_v33 = vadd.f32 %v3232_v42, %v3231_v27  ;;  %v3234_v44 = vpop.f32.mrb[30].mxu1  ;;  %v3483_v27 = vld [vmem:[%s4605_s7 + $0xe8] sm:$0xff]  }
 0x51d   :  { %v3235_v43 = vpop.f32.mrb[31].mxu1  ;;  %v2284_v2 = vld [vmem:[#allocation4 + $0x6] ss:$2 sm:$0xff]  ;;  %v2323_v46 = vld [vmem:[#allocation4 + $0x9] ss:$2 sm:$0xff]  ;;  %3275 = vmatprep.subr.bf16.mxu1 %v3483_v27 }
 0x51e   :  { %v2202_v47 = vadd.f32 %v3233_v33, %v3095_v63  ;;  %v3236_v34 = vadd.f32 %v3235_v43, %v3234_v44  ;;  %v2231_v36 = vld [vmem:[#allocation4 + $0x2] ss:$2 sm:$0xff]  ;;  %v2295_v12 = vld [vmem:[#allocation4 + $0x7] ss:$2 sm:$0xff] }
 0x51f   :  { %v2334_v9 = vld [vmem:[#allocation4 + $0xa] ss:$2 sm:$0xff]  ;;  %v2243_v15 = vld [vmem:[#allocation4 + $0x3] ss:$2 sm:$0xff] }
 0x520   :  { %v2214_v49 = vmax.f32 %v2202_v47, 0.0  ;;  %v2205_v50 = vadd.f32 %v3236_v34, %v3095_v63  ;;  %v2384_v38 = vld [vmem:[#allocation4 + $0xe] ss:$2 sm:$0xff]  ;;  %v2273_v39 = vld [vmem:[#allocation4 + $0x5] ss:$2 sm:$0xff] }
 0x521   :  { %v2373_v19 = vld [vmem:[#allocation4 + $0xd] ss:$2 sm:$0xff]  ;;  %v2309_v42 = vld [vmem:[#allocation4 + $0x8] ss:$2 sm:$0xff] }
 0x522   :  { %v2218_v52 = vmax.f32 %v2210_v48, %v2214_v49  ;;  %v2215_v53 = vmax.f32 %v2205_v50, 0.0  ;;  %v2258_v32 = vld [vmem:[#allocation4 + $0x4] ss:$2 sm:$0xff]  ;;  %v3487_v49 = vld [vmem:[%s4605_s7 + $0xf8] sm:$0xff]  }
 0x523   :  { %v3484_v43 = vld [vmem:[%s4605_s7 + $0xa8] sm:$0xff]   ;;  %v3486_v47 = vld [vmem:[%s4605_s7 + $0xb0] sm:$0xff]  }
 0x524   :  { %2222 = vst.msk [vmem:[#allocation4 + $0x28] sm:$0xff] %vm117_vm10, %v2218_v52  ;;  %v2219_v58 = vmax.f32 %v2211_v51, %v2215_v53  ;;  %3276 = vmatpush3.bf16.msra.mxu1 %v3484_v43  ;;  %v2345_v50 = vld [vmem:[#allocation4 + $0xb] ss:$2 sm:$0xff]  ;;  %v2359_v57 = vld [vmem:[#allocation4 + $0xc] ss:$2 sm:$0xff] }
 0x525   :  { %3277 = vmatprep.subr.bf16.mxu1 %v3485_v45  ;;  %v2395_v51 = vld [vmem:[#allocation4 + $0xf] ss:$2 sm:$0xff]  ;;  %v2409_v56 = vld [vmem:[#allocation4 + $0x10] ss:$2 sm:$0xff]  ;;  %v3112_v45 = vld [vmem:[%s4606_s8] ss:$0 sm:$0xff] }
 0x526   :  { %2223 = vst.msk [vmem:[#allocation4 + $0x30] sm:$0xff] %vm117_vm10, %v2219_v58 }
 0x528   :  { %3278 = vmatpush3.bf16.msra.mxu1 %v3486_v47 }
 0x529   :  { %3279 = vmatprep.subr.bf16.mxu1 %v3487_v49 }
 0x52b   :  { %v2227_v3 = vld [vmem:[#allocation4 + $0x21] ss:$2 sm:$0xff] }
 0x52c   :  { %v2228_v0 = vpack.c.bf16 %v2227_v3, %v2225_v1  ;;  %3280 = vmatpush3.bf16.msra.mxu1 %v3488_v35 }
 0x52d   :  { %v2286_v8 = vld [vmem:[#allocation4 + $0x26] ss:$2 sm:$0xff]  ;;  %v2297_v11 = vld [vmem:[#allocation4 + $0x27] ss:$2 sm:$0xff] }
 0x52e   :  { %v2233_v23 = vld [vmem:[#allocation4 + $0x22] ss:$2 sm:$0xff]  ;;  %v2287_v7 = vpack.c.bf16 %v2286_v8, %v2284_v2  ;;  %2229 = vst.msk [vmem:[#allocation5] sm:$0xff] %vm117_vm10, %v2228_v0  ;;  %v2245_v16 = vld [vmem:[#allocation4 + $0x23] ss:$2 sm:$0xff]  ;;  %v2298_v20 = vpack.c.bf16 %v2297_v11, %v2295_v12 }
 0x52f   :  { %v2234_v10 = vpack.c.bf16 %v2233_v23, %v2231_v36  ;;  %v2336_v17 = vld [vmem:[#allocation4 + $0x2a] ss:$2 sm:$0xff]  ;;  %v2325_v14 = vld [vmem:[#allocation4 + $0x29] ss:$2 sm:$0xff]  ;;  %v2246_v22 = vpack.c.bf16 %v2245_v16, %v2243_v15 }
 0x530   :  { %v2386_v37 = vld [vmem:[#allocation4 + $0x2e] ss:$2 sm:$0xff]  ;;  %2289 = vrot.lane.b32.xlu0 %v2287_v7, %s3563_s16  ;;  %2293 = vst.msk [vmem:[#allocation5 + $0x28] sm:$0xff] %vm117_vm10, %v2287_v7  ;;  %v2337_v18 = vpack.c.bf16 %v2336_v17, %v2334_v9  ;;  %v2326_v24 = vpack.c.bf16 %v2325_v14, %v2323_v46  ;;  %v2275_v21 = vld [vmem:[#allocation4 + $0x25] ss:$2 sm:$0xff] }
 0x531   :  { %2236 = vrot.lane.b32.xlu1 %v2234_v10, %s3563_s16  ;;  %2241 = vst.msk [vmem:[#allocation5 + $0x20] sm:$0xff] %vm117_vm10, %v2234_v10  ;;  %v2387_v63 = vpack.c.bf16 %v2386_v37, %v2384_v38  ;;  %v2311_v13 = vld [vmem:[#allocation4 + $0x28] ss:$2 sm:$0xff]  ;;  %v2375_v25 = vld [vmem:[#allocation4 + $0x2d] ss:$2 sm:$0xff]  ;;  %v2276_v40 = vpack.c.bf16 %v2275_v21, %v2273_v39 }
 0x532   :  { %2343 = vst.msk [vmem:[#allocation5 + $0x30] sm:$0xff] %vm117_vm10, %v2337_v18  ;;  %v2376_v26 = vpack.c.bf16 %v2375_v25, %v2373_v19  ;;  %v2260_v41 = vld [vmem:[#allocation4 + $0x24] ss:$2 sm:$0xff]  ;;  %2327 = vst.msk [vmem:[#allocation5 + $0x10] sm:$0xff] %vm117_vm10, %v2326_v24  ;;  %v2312_v33 = vpack.c.bf16 %v2311_v13, %v2309_v42  ;;  %v2347_v34 = vld [vmem:[#allocation4 + $0x2b] ss:$2 sm:$0xff] }
 0x533   :  { %2393 = vst.msk [vmem:[#allocation5 + $0x38] sm:$0xff] %vm117_vm10, %v2387_v63  ;;  %2277 = vst.msk [vmem:[#allocation5 + $0x8] sm:$0xff] %vm117_vm10, %v2276_v40  ;;  %v2261_v44 = vpack.c.bf16 %v2260_v41, %v2258_v32  ;;  %v2397_v48 = vld [vmem:[#allocation4 + $0x2f] ss:$2 sm:$0xff]  ;;  %v2348_v52 = vpack.c.bf16 %v2347_v34, %v2345_v50  ;;  %v2361_v54 = vld [vmem:[#allocation4 + $0x2c] ss:$2 sm:$0xff] }
 0x534   :  { %2300 = vrot.lane.b32.xlu0 %v2298_v20, %s3554_s19  ;;  %2377 = vst.msk [vmem:[#allocation5 + $0x18] sm:$0xff] %vm117_vm10, %v2376_v26  ;;  %v2398_v53 = vpack.c.bf16 %v2397_v48, %v2395_v51  ;;  %v2362_v58 = vpack.c.bf16 %v2361_v54, %v2359_v57  ;;  %v2411_v59 = vld [vmem:[#allocation4 + $0x30] ss:$2 sm:$0xff]  ;;  %v3490_v21 = vld [vmem:[#allocation9] sm:$0xff]  }
 0x535   :  { %2248 = vrot.lane.b32.xlu1 %v2246_v22, %s3554_s19  ;;  %v2412_v60 = vpack.c.bf16 %v2411_v59, %v2409_v56  ;;  %v3491_v25 = vld [vmem:[#allocation9 + $0x48] sm:$0xff]  }
 0x536   :  { %v3499_v41 = vld [vmem:[#allocation9 + $0x68] sm:$0xff]  }
 0x538   :  { %2314 = vrot.lane.b32.xlu0 %v2312_v33, %s3570_s20 }
 0x539   :  { %2263 = vrot.lane.b32.xlu1 %v2261_v44, %s3570_s20 }
 0x53c   :  { %2339 = vrot.lane.b32.xlu0 %v2337_v18, %s3563_s16 }
 0x53d   :  { %2389 = vrot.lane.b32.xlu1 %v2387_v63, %s3563_s16 }
 0x540   :  { %2350 = vrot.lane.b32.xlu0 %v2348_v52, %s3554_s19 }
 0x541   :  { %2400 = vrot.lane.b32.xlu1 %v2398_v53, %s3554_s19 }
 0x544   :  { %2364 = vrot.lane.b32.xlu0 %v2362_v58, %s3570_s20 }
 0x545   :  { %2304 = vrot.lane.b32.xlu1 %v2298_v20, %s3563_s16  ;;  %v3492_v20 = vld [vmem:[#allocation9 + $0x8] sm:$0xff]  }
 0x548   :  { %2253 = vrot.lane.b32.xlu0 %v2246_v22, %s3563_s16  ;;  %v3493_v22 = vld [vmem:[#allocation9 + $0x50] sm:$0xff]  }
 0x549   :  { %2318 = vrot.lane.b32.xlu1 %v2312_v33, %s3554_s19 }
 0x54c   :  { %2268 = vrot.lane.b32.xlu0 %v2261_v44, %s3554_s19 }
 0x54d   :  { %2329 = vrot.lane.b32.xlu1 %v2326_v24, %s3570_s20  ;;  %v3489_v24 = vld [vmem:[#allocation9 + $0x40] sm:$0xff]  }
 0x54e   :  { %3293 = vmatprep.subr.bf16.mxu0 %v3489_v24 }
 0x550   :  { %2279 = vrot.lane.b32.xlu0 %v2276_v40, %s3570_s20  ;;  %v3494_v40 = vld [vmem:[#allocation9 + $0x10] sm:$0xff]  }
 0x551   :  { %2354 = vrot.lane.b32.xlu1 %v2348_v52, %s3563_s16 }
 0x554   :  { %2404 = vrot.lane.b32.xlu0 %v2398_v53, %s3563_s16 }
 0x555   :  { %2368 = vrot.lane.b32.xlu1 %v2362_v58, %s3554_s19 }
 0x558   :  { %2414 = vrot.lane.b32.xlu0 %v2412_v60, %s3554_s19 }
 0x559   :  { %2379 = vrot.lane.b32.xlu1 %v2376_v26, %s3570_s20  ;;  %v3495_v26 = vld [vmem:[#allocation9 + $0x58] sm:$0xff]  }
 0x5a2   :  { %v2290_v61 = vpop.permute.xlu0 %2289 }
 0x5a3   :  { %v2237_v62 = vpop.permute.xlu1 %2236  ;;  %2292 = vst.msk [vmem:[#allocation5 + $0x8] sm:$0xff] %vm2239_vm11, %v2290_v61 }
 0x5a4   :  { %2240 = vst.msk [vmem:[#allocation5] sm:$0xff] %vm2239_vm11, %v2237_v62 }
 0x5a6   :  { %v2301_v1 = vpop.permute.xlu0 %2300 }
 0x5a7   :  { %v2249_v2 = vpop.permute.xlu1 %2248  ;;  %2303 = vst.msk [vmem:[#allocation5 + $0x8] sm:$0xff] %vm2251_vm12, %v2301_v1 }
 0x5a8   :  { %2252 = vst.msk [vmem:[#allocation5] sm:$0xff] %vm2251_vm12, %v2249_v2 }
 0x5aa   :  { %v2315_v3 = vpop.permute.xlu0 %2314 }
 0x5ab   :  { %v2264_v55 = vpop.permute.xlu1 %2263  ;;  %2317 = vst.msk [vmem:[#allocation5 + $0x8] sm:$0xff] %vm2266_vm13, %v2315_v3 }
 0x5ac   :  { %2267 = vst.msk [vmem:[#allocation5] sm:$0xff] %vm2266_vm13, %v2264_v55 }
 0x5ae   :  { %v2340_v5 = vpop.permute.xlu0 %2339 }
 0x5af   :  { %v2390_v36 = vpop.permute.xlu1 %2389  ;;  %2342 = vst.msk [vmem:[#allocation5 + $0x10] sm:$0xff] %vm2239_vm11, %v2340_v5 }
 0x5b0   :  { %2392 = vst.msk [vmem:[#allocation5 + $0x18] sm:$0xff] %vm2239_vm11, %v2390_v36 }
 0x5b2   :  { %v2351_v0 = vpop.permute.xlu0 %2350  ;;  %v2419_v4 = vld [vmem:[#allocation5 + $0x8] sm:$0xff] }
 0x5b3   :  { %v2401_v6 = vpop.permute.xlu1 %2400  ;;  %v2418_v8 = vld [vmem:[#allocation5] sm:$0xff]  ;;  %2353 = vst.msk [vmem:[#allocation5 + $0x10] sm:$0xff] %vm2251_vm12, %v2351_v0  ;;  %2721 = vmatprep.mubr.bf16.mxu0 %v2419_v4 }
 0x5b4   :  { %2403 = vst.msk [vmem:[#allocation5 + $0x18] sm:$0xff] %vm2251_vm12, %v2401_v6  ;;  %2722 = vmatmul.mubr.bf16.vlgmr.msra.gmra.mrb[32].mxu0 %v2418_v8 }
 0x5b5   :  { %3294 = vmatpush3.bf16.msra.mxu0 %v3490_v21 }
 0x5b6   :  { %v2365_v23 = vpop.permute.xlu0 %2364  ;;  %3295 = vmatprep.subr.bf16.mxu0 %v3491_v25 }
 0x5b7   :  { %v2305_v9 = vpop.permute.xlu1 %2304  ;;  %2367 = vst.msk [vmem:[#allocation5 + $0x10] sm:$0xff] %vm2266_vm13, %v2365_v23 }
 0x5b8   :  { %2307 = vst.msk [vmem:[#allocation5 + $0x28] sm:$0xff] %vm2239_vm11, %v2305_v9  ;;  %v3501_v9 = vld [vmem:[#allocation9 + $0x70] sm:$0xff]  }
 0x5b9   :  { %3296 = vmatpush3.bf16.msra.mxu0 %v3492_v20 }
 0x5ba   :  { %v2254_v7 = vpop.permute.xlu0 %2253  ;;  %3297 = vmatprep.subr.bf16.mxu0 %v3493_v22 }
 0x5bb   :  { %v2319_v10 = vpop.permute.xlu1 %2318  ;;  %v2421_v11 = vld [vmem:[#allocation5 + $0x18] sm:$0xff]  ;;  %2256 = vst.msk [vmem:[#allocation5 + $0x20] sm:$0xff] %vm2239_vm11, %v2254_v7 }
 0x5bc   :  { %2321 = vst.msk [vmem:[#allocation5 + $0x28] sm:$0xff] %vm2251_vm12, %v2319_v10  ;;  %2770 = vmatprep.mubr.bf16.mxu1 %v2421_v11  ;;  %v3502_v7 = vld [vmem:[#allocation9 + $0x30] sm:$0xff]  }
 0x5bd   :  { %3298 = vmatpush3.bf16.msra.mxu0 %v3494_v40 }
 0x5be   :  { %v2269_v38 = vpop.permute.xlu0 %2268  ;;  %v2420_v12 = vld [vmem:[#allocation5 + $0x10] sm:$0xff]  ;;  %3299 = vmatprep.subr.bf16.mxu0 %v3495_v26 }
 0x5bf   :  { %v2330_v46 = vpop.permute.xlu1 %2329  ;;  %2271 = vst.msk [vmem:[#allocation5 + $0x20] sm:$0xff] %vm2251_vm12, %v2269_v38  ;;  %2771 = vmatmul.mubr.bf16.vlgmr.msra.gmra.mrb[32].mxu1 %v2420_v12 }
 0x5c0   :  { %2332 = vst.msk [vmem:[#allocation5 + $0x28] sm:$0xff] %vm2266_vm13, %v2330_v46 }
 0x5c1   :  { %3300 = vmatpush3.bf16.msra.mxu0 %v3496_v29 }
 0x5c2   :  { %v2280_v15 = vpop.permute.xlu0 %2279  ;;  %3301 = vmatprep.subr.bf16.mxu0 %v3497_v30 }
 0x5c3   :  { %v2355_v16 = vpop.permute.xlu1 %2354  ;;  %2282 = vst.msk [vmem:[#allocation5 + $0x20] sm:$0xff] %vm2266_vm13, %v2280_v15 }
 0x5c4   :  { %2357 = vst.msk [vmem:[#allocation5 + $0x30] sm:$0xff] %vm2239_vm11, %v2355_v16 }
 0x5c5   :  { %3302 = vmatpush3.bf16.msra.mxu0 %v3498_v31 }
 0x5c6   :  { %v2405_v17 = vpop.permute.xlu0 %2404  ;;  %3303 = vmatprep.subr.bf16.mxu0 %v3499_v41 }
 0x5c7   :  { %v2369_v37 = vpop.permute.xlu1 %2368  ;;  %v2423_v18 = vld [vmem:[#allocation5 + $0x28] sm:$0xff]  ;;  %2407 = vst.msk [vmem:[#allocation5 + $0x38] sm:$0xff] %vm2239_vm11, %v2405_v17 }
 0x5c8   :  { %2371 = vst.msk [vmem:[#allocation5 + $0x30] sm:$0xff] %vm2251_vm12, %v2369_v37  ;;  %2729 = vmatprep.mubr.bf16.mxu0 %v2423_v18 }
 0x5c9   :  { %3304 = vmatpush3.bf16.msra.mxu0 %v3500_v28 }
 0x5ca   :  { %v2415_v63 = vpop.permute.xlu0 %2414  ;;  %v2422_v39 = vld [vmem:[#allocation5 + $0x20] sm:$0xff]  ;;  %3305 = vmatprep.subr.bf16.mxu0 %v3501_v9 }
 0x5cb   :  { %v2380_v14 = vpop.permute.xlu1 %2379  ;;  %2417 = vst.msk [vmem:[#allocation5 + $0x38] sm:$0xff] %vm2251_vm12, %v2415_v63  ;;  %2730 = vmatmul.mubr.bf16.gmra.mrb[36].mxu0 %v2422_v39  ;;  %v3503_v63 = vld [vmem:[#allocation9 + $0x78] sm:$0xff]  }
 0x5cc   :  { %2382 = vst.msk [vmem:[#allocation5 + $0x30] sm:$0xff] %vm2266_vm13, %v2380_v14  ;;  %v3504_v14 = vld [vmem:[#allocation9 + $0x38] sm:$0xff]  }
 0x5cd   :  { %3306 = vmatpush3.bf16.msra.mxu0 %v3502_v7 }
 0x5ce   :  { %3307 = vmatprep.subr.bf16.mxu0 %v3503_v63 }
 0x5d1   :  { %3308 = vmatpush3.bf16.msra.mxu0 %v3504_v14 }
 0x5d2   :  { %v2425_v19 = vld [vmem:[#allocation5 + $0x38] sm:$0xff] }
 0x5d3   :  { %v2424_v13 = vld [vmem:[#allocation5 + $0x30] sm:$0xff]  ;;  %2778 = vmatprep.mubr.bf16.mxu1 %v2425_v19 }
 0x5d4   :  { %2779 = vmatmul.mubr.bf16.gmra.mrb[36].mxu1 %v2424_v13 }
 0x687   :  { %v3253_v27 = vpop.f32.mrb[32].mxu0 }
 0x688   :  { %v3254_v42 = vpop.f32.mrb[33].mxu0 }
 0x689   :  { %v3255_v32 = vadd.f32 %v3254_v42, %v3253_v27  ;;  %v3256_v33 = vpop.f32.mrb[34].mxu0 }
 0x68a   :  { %v3257_v44 = vpop.f32.mrb[35].mxu0 }
 0x68b   :  { %v3258_v43 = vadd.f32 %v3257_v44, %v3256_v33  ;;  %v2724_v48 = vadd.f32 %v3255_v32, %v3112_v45 }
 0x68d   :  { %v2727_v52 = vadd.f32 %v3258_v43, %v3112_v45 }
 0x692   :  { %v3281_v47 = vpop.f32.mrb[32].mxu1 }
 0x693   :  { %v3282_v34 = vpop.f32.mrb[33].mxu1 }
 0x694   :  { %v3283_v49 = vadd.f32 %v3282_v34, %v3281_v47  ;;  %v3284_v50 = vpop.f32.mrb[34].mxu1 }
 0x695   :  { %v3285_v51 = vpop.f32.mrb[35].mxu1 }
 0x696   :  { %v2773_v53 = vadd.f32 %v3283_v49, %v2724_v48  ;;  %v3286_v35 = vadd.f32 %v3285_v51, %v3284_v50 }
 0x698   :  { %v2776_v54 = vadd.f32 %v3286_v35, %v2727_v52  ;;  %v2787_v4 = vmax.f32 %v2773_v53, 0.0 }
 0x69a   :  { %v2788_v10 = vmax.f32 %v2776_v54, 0.0 }
 0x69e   :  { %v3259_v57 = vpop.f32.mrb[36].mxu0 }
 0x69f   :  { %v3260_v58 = vpop.f32.mrb[37].mxu0 }
 0x6a0   :  { %v3261_v59 = vadd.f32 %v3260_v58, %v3259_v57  ;;  %v3262_v56 = vpop.f32.mrb[38].mxu0 }
 0x6a1   :  { %v3263_v60 = vpop.f32.mrb[39].mxu0 }
 0x6a2   :  { %v3264_v61 = vadd.f32 %v3263_v60, %v3262_v56  ;;  %v2732_v2 = vadd.f32 %v3261_v59, %v3112_v45 }
 0x6a4   :  { %v2735_v36 = vadd.f32 %v3264_v61, %v3112_v45  ;;  %v3145_v61 = vld [vmem:[%s4608_s10] ss:$0 sm:$0xff] }
 0x6a7   :  { %v3287_v62 = vpop.f32.mrb[36].mxu1 }
 0x6a8   :  { %v3288_v1 = vpop.f32.mrb[37].mxu1 }
 0x6a9   :  { %v3289_v3 = vadd.f32 %v3288_v1, %v3287_v62  ;;  %v3290_v55 = vpop.f32.mrb[38].mxu1 }
 0x6aa   :  { %v3291_v5 = vpop.f32.mrb[39].mxu1 }
 0x6ab   :  { %v2781_v0 = vadd.f32 %v3289_v3, %v2732_v2  ;;  %v3292_v6 = vadd.f32 %v3291_v5, %v3290_v55  ;;  %v3162_v5 = vld [vmem:[%s4609_s11] ss:$0 sm:$0xff] }
 0x6ad   :  { %v2789_v8 = vmax.f32 %v2781_v0, 0.0  ;;  %v2784_v23 = vadd.f32 %v3292_v6, %v2735_v36 }
 0x6af   :  { %v2791_v11 = vmax.f32 %v2787_v4, %v2789_v8  ;;  %v2790_v38 = vmax.f32 %v2784_v23, 0.0  ;;  %v3163_v4 = vld [vmem:[#allocation6] ss:$0 sm:$0xff] }
 0x6b1   :  { %v2792_v46 = vmax.f32 %v2788_v10, %v2790_v38  ;;  %v2804_v12 = vrot.slane %v2791_v11, 2  ;;  %v2799_v15 = vrot.slane %v2791_v11, 1  ;;  %v2826_v16 = vrot.slane %v2791_v11, 6 }
 0x6b2   :  { %v2820_v17 = vrot.slane %v2791_v11, 5  ;;  %v2810_v37 = vrot.slane %v2791_v11, 3  ;;  %v2832_v18 = vrot.slane %v2791_v11, 7  ;;  %v2816_v30 = vrot.slane %v2791_v11, 4 }
 0x6b3   :  { %v2805_v39 = vrot.slane %v2792_v46, 1  ;;  %v2827_v19 = vrot.slane %v2792_v46, 5  ;;  %v2800_v13 = vsel %vm2796_vm14, %v2792_v46, %v2799_v15  ;;  %v2821_v24 = vrot.slane %v2792_v46, 4 }
 0x6b4   :  { %v2811_v21 = vrot.slane %v2792_v46, 2  ;;  %v2833_v25 = vrot.slane %v2792_v46, 6  ;;  %v2795_v20 = vrot.slane %v2792_v46, 7  ;;  %v2817_v22 = vrot.slane %v2792_v46, 3 }
 0x6b5   :  { %v2806_v40 = vsel %vm2796_vm14, %v2805_v39, %v2804_v12  ;;  %v2828_v26 = vsel %vm2796_vm14, %v2827_v19, %v2826_v16  ;;  %v2822_v29 = vsel %vm2796_vm14, %v2821_v24, %v2820_v17 }
 0x6b6   :  { %v3406_v31 = vpack.i.bf16 %v2806_v40, %v2828_v26  ;;  %v3401_v41 = vpack.i.bf16 %v2800_v13, %v2822_v29  ;;  %v2812_v28 = vsel %vm2796_vm14, %v2811_v21, %v2810_v37  ;;  %v2834_v27 = vsel %vm2796_vm14, %v2833_v25, %v2832_v18 }
 0x6b7   :  { %v3411_v42 = vpack.i.bf16 %v2812_v28, %v2834_v27  ;;  %v2818_v32 = vsel %vm2796_vm14, %v2817_v22, %v2816_v30  ;;  %v2797_v33 = vsel %vm2796_vm14, %v2795_v20, %v2791_v11 }
 0x6b8   :  { %3407 = vrot.lane.b32.xlu1 %v3406_v31, %s3554_s19  ;;  %3402 = vrot.lane.b32.xlu0 %v3401_v41, %s3563_s16 }
 0x6bc   :  { %3412 = vrot.lane.b32.xlu0 %v3411_v42, %s3570_s20 }
 0x72a   :  { %v3408_v44 = vpop.permute.xlu1 %3407  ;;  %v3403_v43 = vpop.permute.xlu0 %3402 }
 0x72b   :  { %v3405_v45 = vunpack.i.h.bf16 %v3403_v43  ;;  %v3404_v47 = vunpack.i.l.bf16 %v3403_v43  ;;  %v3410_v34 = vunpack.i.h.bf16 %v3408_v44  ;;  %v3409_v48 = vunpack.i.l.bf16 %v3408_v44 }
 0x72d   :  { %v2838_v49 = vsel %vm117_vm10, %v2797_v33, %v3405_v45  ;;  %v2843_v50 = vsel %vm117_vm10, %v2818_v32, %v3404_v47 }
 0x72e   :  { %v3413_v51 = vpop.permute.xlu0 %3412  ;;  %v2840_v35 = vsel %vm2839_vm15, %v2838_v49, %v3410_v34  ;;  %v2844_v54 = vsel %vm2839_vm15, %v2843_v50, %v3409_v48 }
 0x72f   :  { %v3415_v52 = vunpack.i.h.bf16 %v3413_v51  ;;  %v3414_v53 = vunpack.i.l.bf16 %v3413_v51 }
 0x731   :  { %v2842_v57 = vsel %vm2841_vm0, %v2840_v35, %v3415_v52  ;;  %v2845_v58 = vsel %vm2841_vm0, %v2844_v54, %v3414_v53 }
 0x732   :  { %v2846_v59 = vpack.c.bf16 %v2842_v57, %v2842_v57  ;;  %v2847_v56 = vpack.c.bf16 %v2845_v58, %v2845_v58 }
 0x734   :  { %3015 = vmatprep.mubr.bf16.mxu0 %v2847_v56 }
 0x735   :  { %3016 = vmatmul.mubr.bf16.vlgmr.msra.gmra.mrb[40].mxu0 %v2846_v59 }
 0x808   :  { %v3309_v60 = vpop.f32.mrb[40].mxu0 }
 0x809   :  { %v3310_v62 = vpop.f32.mrb[41].mxu0 }
 0x80a   :  { %v3311_v1 = vadd.f32 %v3310_v62, %v3309_v60  ;;  %v3312_v2 = vpop.f32.mrb[42].mxu0 }
 0x80b   :  { %v3313_v3 = vpop.f32.mrb[43].mxu0 }
 0x80c   :  { %v3018_v55 = vadd.f32 %v3311_v1, %v3145_v61 }
 0x80e   :  { %v3023_v36 = vmax.f32 %v3018_v55, 0.0 }
 0x810   :  { %v3031_v0 = vmul.f32 %v3162_v5, %v3023_v36 }
 0x812   :  { %v3033_v6 = vsel %vm3032_vm1, %v3031_v0, 0.0 }
 0x813   :  { %3034 = vadd.xlane.f32.xlu1 %v3033_v6 }
 0x8a0   :  { %v3035_v8 = vpop.xlane.xlu1 %3034 }
 0x8a1   :  { %v3043_v23 = vadd.f32 %v3163_v4, %v3035_v8 }
 0x8a3   :  { %3045 = vst.msk [vmem:[%s4611_s13] sm:$0x3] %vm3044_vm2, %v3043_v23 }
 0x8a4   :  { %3050 = vsyncpa [#allocation8], 1 }
 0x8a5   :  { %3051 = vsyncpa [#allocation10], 1 }

</bundles_post_ra>
